<compile_context>
chip_gen: v5e
topology: v5e:2x2
jax: 0.10.0
libtpu: 0.0.40
codegen_flags: <defaults>
</compile_context>

<pallas_src>
import functools

import jax
import jax.numpy as jnp
from jax import lax
from jax.experimental import pallas as pl
from jax.experimental.pallas import tpu as pltpu

ALPHA = 0.1
BETA = 0.5


def _round_up(x, m):
    return ((x + m - 1) // m) * m


def _tpu_budget_and_cores():
    """Return (VMEM tile budget in bytes, TensorCores per chip)."""
    cap = None
    try:
        info = pltpu.get_tpu_info()
        cap = getattr(info, "vmem_capacity_bytes", None)
    except Exception:
        cap = None
    if cap is None:
        # Unknown part: conservative budget; assume 2 TCs so the parallel M
        # axis always gets >= 2 tiles (harmless on single-TC chips).
        return 48 << 20, 2
    if cap >= (128 << 20):      # v5e / v6e: 128 MiB physical VMEM, 1 TC.
        return 100 << 20, 1
    if cap >= (64 << 20):       # v7x: 64 MiB VMEM per TC, 2 TCs per chip.
        return 56 << 20, 2
    return max(cap - (8 << 20), 16 << 20), 2


def _vmem_bytes_2d(tm, tn2, n2_tiles, K, N1, itemsize, tmp_itemsize):
    a = 2 * tm * K * itemsize                      # double-buffered A row tile
    b = 1 * K * N1 * itemsize                      # Buffered(1): constant index
    c = (1 if n2_tiles == 1 else 2) * N1 * tn2 * itemsize
    d = 2 * tm * tn2 * itemsize
    o = 2 * tm * tn2 * itemsize
    tmp = tm * N1 * tmp_itemsize                   # (tm, N1) scratch
    return a + b + c + d + o + tmp


def _vmem_bytes_3d(tm, tn1, tn2, K, N1_pad, itemsize, tmp_itemsize):
    a = 2 * tm * K * itemsize
    b = 2 * K * tn1 * itemsize
    c = 2 * tn1 * tn2 * itemsize
    d = 2 * tm * tn2 * itemsize
    o = 2 * tm * tn2 * itemsize
    tmp = tm * N1_pad * tmp_itemsize
    acc = 4 * tm * tn2
    return a + b + c + d + o + tmp + acc


def _tm_candidates(M, sublane, cores):
    tm_cap = _round_up(max(M, 1), sublane)
    if cores >= 2 and M > sublane:
        # Keep >= 2 M tiles so the "parallel" axis can shard across the two
        # TensorCores of a v7x chip.
        tm_cap = min(tm_cap, _round_up(-(-M // 2), sublane))
    cands = [c for c in (1024, 512, 256, 128, 64, 32, 16, 8)
             if c % sublane == 0 and c <= tm_cap]
    if tm_cap not in cands:
        cands.append(tm_cap)
    return sorted(set(cands), reverse=True)


def _select_2d(M, K, N1, N2_pad, itemsize, tmp_itemsize, sublane, budget, cores):
    """Pick (tm, tn2) for the resident-B layout, or None if nothing fits."""
    cands = _tm_candidates(M, sublane, cores)

    def best_tm(tn2, n2_tiles):
        for tm in cands:
            if _vmem_bytes_2d(tm, tn2, n2_tiles, K, N1, itemsize,
                              tmp_itemsize) <= budget:
                return tm
        return None

    # 1) Resident C (single N2 tile): C is read from HBM exactly once.
    tm_res = best_tm(N2_pad, 1)
    if tm_res is not None and tm_res >= min(cands[0], 128):
        return tm_res, N2_pad
    # 2) Lane-dense C tiles, streamed once per M row block.
    for tn2 in (512, 256, 128):
        if N2_pad % tn2 == 0:
            tm = best_tm(tn2, N2_pad // tn2)
            if tm is not None:
                if tm_res is not None and tm_res >= tm:
                    return tm_res, N2_pad
                return tm, tn2
    if tm_res is not None:
        return tm_res, N2_pad
    return None


def _select_3d(M, K, N1_pad, N2_pad, itemsize, tmp_itemsize, sublane, budget,
               cores):
    cands = _tm_candidates(M, sublane, cores)
    for tn1 in (512, 256, 128):
        if N1_pad % tn1:
            continue
        for tn2 in (512, 256, 128):
            if N2_pad % tn2:
                continue
            for tm in cands:
                if _vmem_bytes_3d(tm, tn1, tn2, K, N1_pad, itemsize,
                                  tmp_itemsize) <= budget:
                    return tm, tn1, tn2
    # Last resort: smallest tiles; rely on the vmem_limit clamp.
    return cands[-1], 128, 128


def _mm(x, y, mxu_dtype):
    if mxu_dtype is None:
        # Exact f32 semantics (matches the PyTorch f32 reference).
        return jnp.dot(x, y, precision=lax.Precision.HIGHEST,
                       preferred_element_type=jnp.float32)
    return jnp.dot(x.astype(mxu_dtype), y.astype(mxu_dtype),
                   preferred_element_type=jnp.float32)


def _k2mm_kernel_2d(a_ref, b_ref, c_ref, d_ref, o_ref, tmp_ref, *,
                    alpha, beta, mxu_dtype):
    # a:(tm,K)  b:(K,N1)  c:(N1,tn2)  d/o:(tm,tn2)  tmp:(tm,N1) scratch.
    @pl.when(pl.program_id(1) == 0)
    def _():
        # First matmul: computed once per M row block, reused for every
        # N2 tile of that row block.
        tmp_ref[...] = _mm(a_ref[...], b_ref[...],
                           mxu_dtype).astype(tmp_ref.dtype)

    tmp2 = _mm(tmp_ref[...], c_ref[...], mxu_dtype)
    o_ref[...] = (tmp2 * beta
                  + d_ref[...].astype(jnp.float32) * alpha).astype(o_ref.dtype)


def _k2mm_kernel_3d(a_ref, b_ref, c_ref, d_ref, o_ref, tmp_ref, acc_ref, *,
                    alpha, beta, mxu_dtype, tn1):
    # Fallback for shapes where the resident-B layout cannot fit VMEM:
    # N1 is tiled as an accumulation axis.
    # a:(tm,K) b:(K,tn1) c:(tn1,tn2) d/o:(tm,tn2)
    # tmp:(tm,N1_pad) scratch, acc:(tm,tn2) f32 scratch.
    j = pl.program_id(1)
    l = pl.program_id(2)
    off = pl.multiple_of(l * tn1, tn1)

    @pl.when(j == 0)
    def _():
        # Slice l of the first matmul: once per (row block, l), reused for
        # every N2 tile of the row block.
        tmp_ref[:, pl.ds(off, tn1)] = _mm(
            a_ref[...], b_ref[...], mxu_dtype).astype(tmp_ref.dtype)

    @pl.when(l == 0)
    def _():
        acc_ref[...] = jnp.zeros_like(acc_ref)

    acc_ref[...] += _mm(tmp_ref[:, pl.ds(off, tn1)], c_ref[...], mxu_dtype)

    @pl.when(l == pl.num_programs(2) - 1)
    def _():
        o_ref[...] = (acc_ref[...] * beta
                      + d_ref[...].astype(jnp.float32) * alpha
                      ).astype(o_ref.dtype)


def k2mm(a, b, c, d_in, *, alpha=ALPHA, beta=BETA, mxu_dtype=None):
    a, b, c, d_in = map(jnp.asarray, (a, b, c, d_in))
    M, K = a.shape
    Kb, N1 = b.shape
    N1c, N2 = c.shape
    assert K == Kb and N1 == N1c and d_in.shape == (M, N2)

    out_dtype = d_in.dtype
    out_itemsize = jnp.dtype(out_dtype).itemsize
    itemsize = jnp.dtype(a.dtype).itemsize
    tmp_dtype = jnp.dtype(mxu_dtype) if mxu_dtype is not None else jnp.dtype(
        jnp.float32)
    tmp_itemsize = tmp_dtype.itemsize
    # Sublane multiple for second-to-last block dims (8 f32 / 16 bf16 / 32 i8).
    sublane = max(8, 32 // itemsize, 32 // tmp_itemsize)

    budget, cores = _tpu_budget_and_cores()

    # Lane-dense N2: pad C / D columns up to a multiple of 128 and slice the
    # pad off at the end (PolyBench N2 = 1200 / 2400 are not 128-aligned).
    N2_pad = _round_up(N2, 128)
    if N2_pad != N2:
        c = jnp.pad(c, ((0, 0), (0, N2_pad - N2)))
        d_in = jnp.pad(d_in, ((0, 0), (0, N2_pad - N2)))

    kern_kwargs = dict(alpha=alpha, beta=beta, mxu_dtype=mxu_dtype)
    sel = _select_2d(M, K, N1, N2_pad, itemsize, tmp_itemsize, sublane,
                     budget, cores)

    if sel is not None:
        tm, tn2 = sel
        M_pad = _round_up(M, tm)
        if M_pad != M:
            a = jnp.pad(a, ((0, M_pad - M), (0, 0)))
            d_in = jnp.pad(d_in, ((0, M_pad - M), (0, 0)))
        m_tiles, n2_tiles = M_pad // tm, N2_pad // tn2

        if n2_tiles == 1:
            # Resident C: constant index map -> single buffer, read once.
            c_spec = pl.BlockSpec((N1, tn2), lambda i, j: (0, 0),
                                  pipeline_mode=pl.Buffered(1))
        else:
            # Streamed C column tiles (default double-buffered; bump to
            # Buffered(3) only if profiling shows exposed DMA on v5e).
            c_spec = pl.BlockSpec((N1, tn2), lambda i, j: (0, j))

        vmem_need = _vmem_bytes_2d(tm, tn2, n2_tiles, K, N1, itemsize,
                                   tmp_itemsize)
        flops = (2 * M_pad * K * N1 + 2 * M_pad * N1 * N2_pad
                 + 3 * M_pad * N2_pad)
        c_reads = 1 if n2_tiles == 1 else m_tiles
        bytes_accessed = (itemsize * (M_pad * K + K * N1
                                      + c_reads * N1 * N2_pad
                                      + M_pad * N2_pad)
                          + out_itemsize * M_pad * N2_pad)

        out = pl.pallas_call(
            functools.partial(_k2mm_kernel_2d, **kern_kwargs),
            out_shape=jax.ShapeDtypeStruct((M_pad, N2_pad), out_dtype),
            grid_spec=pltpu.PrefetchScalarGridSpec(
                num_scalar_prefetch=0,
                grid=(m_tiles, n2_tiles),
                in_specs=[
                    pl.BlockSpec((tm, K), lambda i, j: (i, 0)),    # A row tile
                    pl.BlockSpec((K, N1), lambda i, j: (0, 0),     # B resident,
                                 pipeline_mode=pl.Buffered(1)),    # 1 buffer
                    c_spec,                                        # C
                    pl.BlockSpec((tm, tn2), lambda i, j: (i, j)),  # D_in tile
                ],
                out_specs=pl.BlockSpec((tm, tn2), lambda i, j: (i, j)),
                scratch_shapes=[pltpu.VMEM((tm, N1), tmp_dtype)],
            ),
            compiler_params=pltpu.CompilerParams(
                dimension_semantics=("parallel", "arbitrary"),
                vmem_limit_bytes=int(min(max(vmem_need + (2 << 20), 16 << 20),
                                         budget)),
            ),
            cost_estimate=pl.CostEstimate(
                flops=int(flops), transcendentals=0,
                bytes_accessed=int(bytes_accessed)),
        )(a, b, c, d_in)
    else:
        # 3-D fallback: tile N1 as an accumulation axis so VMEM stays bounded
        # even when resident B + full-width tmp scratch cannot fit (64 MiB
        # parts at extreme PolyBench shapes).
        N1_pad = _round_up(N1, 128)
        if N1_pad != N1:
            b = jnp.pad(b, ((0, 0), (0, N1_pad - N1)))
            c = jnp.pad(c, ((0, N1_pad - N1), (0, 0)))
        tm, tn1, tn2 = _select_3d(M, K, N1_pad, N2_pad, itemsize, tmp_itemsize,
                                  sublane, budget, cores)
        M_pad = _round_up(M, tm)
        if M_pad != M:
            a = jnp.pad(a, ((0, M_pad - M), (0, 0)))
            d_in = jnp.pad(d_in, ((0, M_pad - M), (0, 0)))
        m_tiles = M_pad // tm
        n2_tiles = N2_pad // tn2
        n1_tiles = N1_pad // tn1

        vmem_need = _vmem_bytes_3d(tm, tn1, tn2, K, N1_pad, itemsize,
                                   tmp_itemsize)
        flops = (2 * M_pad * K * N1_pad + 2 * M_pad * N1_pad * N2_pad
                 + 3 * M_pad * N2_pad)
        bytes_accessed = (itemsize * (M_pad * K
                                      + m_tiles * n2_tiles * K * N1_pad
                                      + m_tiles * N1_pad * N2_pad
                                      + M_pad * N2_pad)
                          + out_itemsize * M_pad * N2_pad)

        out = pl.pallas_call(
            functools.partial(_k2mm_kernel_3d, tn1=tn1, **kern_kwargs),
            out_shape=jax.ShapeDtypeStruct((M_pad, N2_pad), out_dtype),
            grid_spec=pltpu.PrefetchScalarGridSpec(
                num_scalar_prefetch=0,
                grid=(m_tiles, n2_tiles, n1_tiles),
                in_specs=[
                    pl.BlockSpec((tm, K), lambda i, j, l: (i, 0)),
                    pl.BlockSpec((K, tn1), lambda i, j, l: (0, l)),
                    pl.BlockSpec((tn1, tn2), lambda i, j, l: (l, j)),
                    pl.BlockSpec((tm, tn2), lambda i, j, l: (i, j)),
                ],
                out_specs=pl.BlockSpec((tm, tn2), lambda i, j, l: (i, j)),
                scratch_shapes=[pltpu.VMEM((tm, N1_pad), tmp_dtype),
                                pltpu.VMEM((tm, tn2), jnp.float32)],
            ),
            compiler_params=pltpu.CompilerParams(
                dimension_semantics=("parallel", "arbitrary", "arbitrary"),
                vmem_limit_bytes=int(min(max(vmem_need + (2 << 20), 16 << 20),
                                         budget)),
            ),
            cost_estimate=pl.CostEstimate(
                flops=int(flops), transcendentals=0,
                bytes_accessed=int(bytes_accessed)),
        )(a, b, c, d_in)

    if (M_pad, N2_pad) != (M, N2):
        out = out[:M, :N2]
    return out


if __name__ == "__main__":
    # Small shapes consistent with the 2mm forward pass.  N2 = 200 is
    # deliberately not a multiple of 128 to exercise the lane-padding path.
    M, K, N1, N2 = 256, 96, 160, 200
    key = jax.random.PRNGKey(0)
    ka, kb, kc, kd = jax.random.split(key, 4)
    a = jax.random.normal(ka, (M, K), dtype=jnp.float32)
    b = jax.random.normal(kb, (K, N1), dtype=jnp.float32)
    c = jax.random.normal(kc, (N1, N2), dtype=jnp.float32)
    d_in = jax.random.normal(kd, (M, N2), dtype=jnp.float32)

    # Pure-JAX reference at full f32 matmul precision.
    hp = lax.Precision.HIGHEST
    ref = (jnp.dot(jnp.dot(a, b, precision=hp), c, precision=hp) * BETA
           + d_in * ALPHA)

    out = jax.block_until_ready(k2mm(a, b, c, d_in))

    assert out.shape == ref.shape and out.dtype == ref.dtype
    assert jnp.allclose(out, ref, rtol=1e-4, atol=1e-3), "mismatch vs reference"

    print("KERNEL_OK")
</pallas_src>

<mosaic_0001>
module attributes {stable_mosaic.version = 11 : i64} {
  func.func @_k2mm_kernel_2d(%arg0: i32, %arg1: i32, %arg2: memref<128x96xf32, #tpu.memory_space<vmem>>, %arg3: memref<96x160xf32, #tpu.memory_space<vmem>>, %arg4: memref<160x256xf32, #tpu.memory_space<vmem>>, %arg5: memref<128x256xf32, #tpu.memory_space<vmem>>, %arg6: memref<128x256xf32, #tpu.memory_space<vmem>>, %arg7: memref<128x160xf32, #tpu.memory_space<vmem>>) attributes {dimension_semantics = [#tpu.dimension_semantics<parallel>, #tpu.dimension_semantics<arbitrary>], iteration_bounds = array<i64: 2, 1>, scalar_prefetch = 0 : i64, scratch_operands = 1 : i64, tpu.core_type = #tpu.core_type<tc>, window_params = [{transform_indices = @transform_0, window_bounds = array<i64: 128, 96>}, {pipeline_mode = #tpu.pipeline_mode<synchronous>, transform_indices = @transform_1, window_bounds = array<i64: 96, 160>}, {pipeline_mode = #tpu.pipeline_mode<synchronous>, transform_indices = @transform_2, window_bounds = array<i64: 160, 256>}, {transform_indices = @transform_3, window_bounds = array<i64: 128, 256>}, {transform_indices = @transform_4, window_bounds = array<i64: 128, 256>}]} {
    %c0_i32 = arith.constant 0 : i32
    %0 = arith.cmpi eq, %arg1, %c0_i32 : i32
    %1 = arith.extui %0 : i1 to i32
    %c0_i32_0 = arith.constant 0 : i32
    %2 = arith.cmpi ne, %1, %c0_i32_0 : i32
    scf.if %2 {
      %c0_10 = arith.constant 0 : index
      %c0_11 = arith.constant 0 : index
      %13 = vector.load %arg2[%c0_10, %c0_11] : memref<128x96xf32, #tpu.memory_space<vmem>>, vector<128x96xf32>
      %c0_12 = arith.constant 0 : index
      %c0_13 = arith.constant 0 : index
      %14 = vector.load %arg3[%c0_12, %c0_13] : memref<96x160xf32, #tpu.memory_space<vmem>>, vector<96x160xf32>
      %cst_14 = arith.constant dense<0.000000e+00> : vector<128x160xf32>
      %15 = tpu.matmul %13, %14, %cst_14 {dimension_numbers = #tpu.dot_dimension_numbers<[1], [0], [0], [1], [0, 0, 1, 1], [], []>, precision = #tpu.contract_precision<fp32>} : vector<128x96xf32>, vector<96x160xf32>, vector<128x160xf32> -> vector<128x160xf32>
      %c0_15 = arith.constant 0 : index
      %c0_16 = arith.constant 0 : index
      %16 = vector.load %arg7[%c0_15, %c0_16] : memref<128x160xf32, #tpu.memory_space<vmem>>, vector<128x160xf32>
      tpu.vector_store %arg7[%c0_15, %c0_16], %15 {strides = array<i32>} : memref<128x160xf32, #tpu.memory_space<vmem>>, vector<128x160xf32>,
    } else {
    }
    %c0 = arith.constant 0 : index
    %c0_1 = arith.constant 0 : index
    %3 = vector.load %arg7[%c0, %c0_1] : memref<128x160xf32, #tpu.memory_space<vmem>>, vector<128x160xf32>
    %c0_2 = arith.constant 0 : index
    %c0_3 = arith.constant 0 : index
    %4 = vector.load %arg4[%c0_2, %c0_3] : memref<160x256xf32, #tpu.memory_space<vmem>>, vector<160x256xf32>
    %cst = arith.constant dense<0.000000e+00> : vector<128x256xf32>
    %5 = tpu.matmul %3, %4, %cst {dimension_numbers = #tpu.dot_dimension_numbers<[1], [0], [0], [1], [0, 0, 1, 1], [], []>, precision = #tpu.contract_precision<fp32>} : vector<128x160xf32>, vector<160x256xf32>, vector<128x256xf32> -> vector<128x256xf32>
    %cst_4 = arith.constant 5.000000e-01 : f32
    %6 = vector.broadcast %cst_4 : f32 to vector<128x256xf32>
    %7 = arith.mulf %5, %6 : vector<128x256xf32>
    %c0_5 = arith.constant 0 : index
    %c0_6 = arith.constant 0 : index
    %8 = vector.load %arg5[%c0_5, %c0_6] : memref<128x256xf32, #tpu.memory_space<vmem>>, vector<128x256xf32>
    %cst_7 = arith.constant 1.000000e-01 : f32
    %9 = vector.broadcast %cst_7 : f32 to vector<128x256xf32>
    %10 = arith.mulf %8, %9 : vector<128x256xf32>
    %11 = arith.addf %7, %10 : vector<128x256xf32>
    %c0_8 = arith.constant 0 : index
    %c0_9 = arith.constant 0 : index
    %12 = vector.load %arg6[%c0_8, %c0_9] : memref<128x256xf32, #tpu.memory_space<vmem>>, vector<128x256xf32>
    tpu.vector_store %arg6[%c0_8, %c0_9], %11 {strides = array<i32>} : memref<128x256xf32, #tpu.memory_space<vmem>>, vector<128x256xf32>,
    return
  }
  func.func @transform_0(%arg0: i32, %arg1: i32) -> (i32, i32) {
    %c0_i32 = arith.constant 0 : i32
    %c0_i32_0 = arith.constant 0 : i32
    return %arg0, %c0_i32 : i32, i32
  }
  func.func @transform_1(%arg0: i32, %arg1: i32) -> (i32, i32) {
    %c0_i32 = arith.constant 0 : i32
    %c0_i32_0 = arith.constant 0 : i32
    %c0_i32_1 = arith.constant 0 : i32
    return %c0_i32, %c0_i32_0 : i32, i32
  }
  func.func @transform_2(%arg0: i32, %arg1: i32) -> (i32, i32) {
    %c0_i32 = arith.constant 0 : i32
    %c0_i32_0 = arith.constant 0 : i32
    %c0_i32_1 = arith.constant 0 : i32
    return %c0_i32, %c0_i32_0 : i32, i32
  }
  func.func @transform_3(%arg0: i32, %arg1: i32) -> (i32, i32) {
    %c0_i32 = arith.constant 0 : i32
    return %arg0, %arg1 : i32, i32
  }
  func.func @transform_4(%arg0: i32, %arg1: i32) -> (i32, i32) {
    %c0_i32 = arith.constant 0 : i32
    return %arg0, %arg1 : i32, i32
  }
}

</mosaic_0001>

<bundles_post_ra>
// kernel: tpu_custom_call.1
= control target key start
LH: loop header
LB: loop body
LE: loop exit
PB: predicated region body
PF: predicated region fallthrough
CT: control target
= control target key end

     0   :  { %9 = vsyncpa [#allocation4], 0  ;;  %s8211_s0 = inlined_call_operand.vmem [shape: f32[256,96], index: 0, kind: input, shape index: {}]   ;;  %s8212_s1 = inlined_call_operand.vmem [shape: f32[96,160], index: 1, kind: input, shape index: {}]   ;;  %s8213_s2 = inlined_call_operand.hbm [shape: f32[160,256], index: 2, kind: input, shape index: {}]   ;;  %s8214_s3 = inlined_call_operand.vmem [shape: f32[256,256], index: 3, kind: input, shape index: {}]   ;;  %s8215_s4 = inlined_call_operand.hbm [shape: f32[256,256], index: 4, kind: output, shape index: {}]  }
   0x1   :  { %10 = vsyncpa [#allocation5], 0 }
   0x2   :  { %12 = vsyncpa [#allocation5 + $0x1], 0  ;;  %s5457_s15 = smov 0   ;;  %s5459_s16 = smov 0  }
   0x3   :  { %s5461_s17 = smov 0   ;;  %s5463_s18 = smov 0  }
   0x4   :  { %s5465_s19 = smov 0   ;;  %s5467_s20 = smov 0  }
   0x5 LB: > { %s5221_s21 = sadd.s32 4294967295, %s5425_s20   ;;  %s5222_s22 = sadd.s32 4294967294, %s5425_s20   ;;  %s5425_s20 = sphi %s5467_s20, %s18_s20   ;;  %s5421_s19 = sphi %s5465_s19, %s8874_s19   ;;  %s5417_s18 = sphi %s5463_s18, %s8873_s18   ;;  %s5413_s17 = sphi %s5461_s17, %s8872_s17   ;;  %s5409_s16 = sphi %s5459_s16, %s8871_s16   ;;  %s5405_s15 = sphi %s5457_s15, %s8870_s15  }
   0x6   : > { %s30_s23 = sadd.s32 1, %s5421_s19  ;;  %s135_s24 = sadd.s32 1, %s5413_s17 }
   0x7   : > { %p32_p0 = scmp.ge.s32.totalorder %s30_s23, 2  ;;  %p145_p1 = scmp.ne.s32.totalorder %s5413_s17, %s5409_s16 }
   0x8   : > { %p146_p2 = scmp.eq.s32.totalorder %s5221_s21, 1  ;;  %p151_p3 = scmp.ne.s32.totalorder %s5409_s16, %s5405_s15 }
   0x9   : > { %s8876_s23 = smov (%p32_p0, %s30_s23), 0  ;;  %p152_p5 = scmp.eq.s32.totalorder %s5222_s22, 1 }
   0xa   : > { %p5497_p4 = por %p146_p2, %p145_p1  ;;  %s130_s26 = ssub.s32 %s5421_s19, %s8876_s23 }
   0xb   : > { %p5223_p6 = scmp.ge.s32.totalorder %s5425_s20, 1  ;;  %p133_p7 = scmp.eq.s32.totalorder %s130_s26, 0 }
   0xc   : > { %p5504_p8 = por %p152_p5, %p151_p3  ;;  %p159_p9 = scmp.lt.s32.totalorder %s5425_s20, 3 }
   0xd   : > { %s5510_s28 = scalar_select %p133_p7, %s5413_s17, %s135_s24  }
   0xe   : > { %p160_p10 = pnand %p5223_p6, %p159_p9  ;;  %p5257_p11 = scmp.eq.s32.totalorder %s5221_s21, 0 }
   0xf   : > { %s173_s5 = sshll.u32 %s8213_s2, 4  ;;  %s5427_s6 = smov [#allocation3]   ;;  %s174_s5 = int_to_ptr.hbm [resolvable:$true] %s173_s5 }
  0x10   : > { %p5249_p12 = pneg %p160_p10  ;;  %s175_s7 = sshll.u32 %s5427_s6, 4  ;;  %s176_s7 = int_to_ptr.vmem [resolvable:$true] %s175_s7 }
  0x11   : > { %s5428_s8 = smov 256   ;;  %s5429_s9 = smov 16  }
  0x12   : > { %p5250_p13 = pnand %p5257_p11, %p5249_p12  ;;  %215 = sbr.rel (%p160_p10) target bundleno = 1343 (0x53f), region = 36 }
  0x14   : > { %5252 = dma.hbm_to_vmem [thread:$0]  (!%p5250_p13), %s174_s5, 5120, %s176_s7, [#allocation4], %s5428_s8, %s5428_s8, %s5429_s9  }
  0x17   : > { %5396 = dma.done.wait (%p5257_p11), [#allocation4], 5120  }
  0x18   : > { %5398 = vsyncadd (%p5257_p11), [#allocation4], 4294962176  ;;  %s5229_s10 = sshll.u32 %s5417_s18, 4  ;;  %v314_v0 = vld [vmem:[%s8212_s1 + $0xb0] sm:$0xff]  ;;  %v312_v1 = vld [vmem:[%s8212_s1 + $0xa0] sm:$0xff]  ;;  %vm316_vm0 = vcmask 785408  }
  0x19   : > { %p253_p0 = scmp.lt.s32.totalorder %s5229_s10, 31  ;;  %v310_v2 = vld [vmem:[%s8212_s1 + $0x90] sm:$0xff]  ;;  %v5527_v3 = vand.u32 4294901760, %v314_v0  ;;  %v5529_v4 = vand.u32 4294901760, %v312_v1  ;;  %v308_v6 = vld [vmem:[%s8212_s1 + $0x80] sm:$0xff]  ;;  %v315_v46 = vld [vmem:[%s8212_s1 + $0xb8] sm:$0xff] }
  0x1a   : > { %v5531_v5 = vand.u32 4294901760, %v310_v2  ;;  %v306_v7 = vld [vmem:[%s8212_s1 + $0x70] sm:$0xff]  ;;  %v304_v8 = vld [vmem:[%s8212_s1 + $0x60] sm:$0xff]  ;;  %v5542_v9 = vand.u32 4294901760, %v308_v6  ;;  %v5665_v57 = vand.u32 4294901760, %v315_v46  ;;  %v313_v61 = vld [vmem:[%s8212_s1 + $0xa8] sm:$0xff] }
  0x1b   : > { %s8878_s10 = smov (!%p253_p0, %s5229_s10), 31  ;;  %v5544_v10 = vand.u32 4294901760, %v306_v7  ;;  %v5546_v11 = vand.u32 4294901760, %v304_v8  ;;  %v302_v12 = vld [vmem:[%s8212_s1 + $0x50] sm:$0xff]  ;;  %v300_v13 = vld [vmem:[%s8212_s1 + $0x40] sm:$0xff]  ;;  %370 = vmatpush.msra.mxu0 %v5527_v3  ;;  %789 = vmatpush.msra.mxu3 %v5527_v3  ;;  %v5557_v14 = vsub.f32 %v314_v0, %v5527_v3  ;;  %v5560_v15 = vsub.f32 %v312_v1, %v5529_v4  ;;  %s5242_s9 = sshll.u32 %s5417_s18, 8 }
  0x1c   : > { %v5563_v16 = vsub.f32 %v310_v2, %v5531_v5  ;;  %v5565_v17 = vand.u32 4294901760, %v302_v12  ;;  %s5230_s12 = sshll.u32 %s8878_s10, 3  ;;  %v5569_v18 = vsub.f32 %v308_v6, %v5542_v9  ;;  %v5574_v20 = vand.u32 4294901760, %v300_v13  ;;  %v298_v25 = vld [vmem:[%s8212_s1 + $0x30] sm:$0xff]  ;;  %v296_v32 = vld [vmem:[%s8212_s1 + $0x20] sm:$0xff]  ;;  %s5114_s13 = scalar_lea.hbm %s8215_s4, %s5242_s9 }
  0x1d   : > { %v5572_v19 = vsub.f32 %v306_v7, %v5544_v10  ;;  %372 = vmatpush.msra.mxu0 %v5529_v4  ;;  %669 = vmatpush.msra.mxu2 %v5557_v14  ;;  %v528_v21 = vand.u32 4294901760, %v5557_v14  ;;  %v534_v22 = vand.u32 4294901760, %v5560_v15  ;;  %v5582_v24 = vsub.f32 %v304_v8, %v5546_v11  ;;  %s5595_s24 = scalar_lea.vmem %s8211_s0, %s5230_s12  ;;  %v294_v39 = vld [vmem:[%s8212_s1 + $0x10] sm:$0xff]  ;;  %v292_v45 = vld [vmem:[%s8212_s1] sm:$0xff]  ;;  %s5117_s21 = sshll.u32 %s5114_s13, 4  ;;  %s5118_s21 = int_to_ptr.hbm [resolvable:$true] %s5117_s21 }
  0x1e   : > { %v540_v23 = vand.u32 4294901760, %v5563_v16  ;;  %791 = vmatpush.msra.mxu3 %v5529_v4  ;;  %v546_v26 = vand.u32 4294901760, %v5569_v18  ;;  %v5590_v27 = vsub.f32 %v302_v12, %v5565_v17  ;;  %v5613_v33 = vand.u32 4294901760, %v298_v25  ;;  %v276_v40 = vld [vmem:[%s5595_s24] sm:$0xff]  ;;  %v277_v54 = vld [vmem:[%s5595_s24 + $0x8] sm:$0xff]  ;;  %v278_v12 = vld [vmem:[%s5595_s24 + $0x10] sm:$0xff] }
  0x1f   : > { %374 = vmatpush.msra.mxu0 %v5531_v5  ;;  %672 = vmatpush.msra.mxu2 %v5560_v15  ;;  %v529_v28 = vsub.f32 %v5557_v14, %v528_v21  ;;  %v535_v29 = vsub.f32 %v5560_v15, %v534_v22  ;;  %v552_v31 = vand.u32 4294901760, %v5572_v19  ;;  %v5616_v34 = vsub.f32 %v300_v13, %v5574_v20  ;;  %s5357_s22 = sshra.s32 %s5118_s21, 4  ;;  %s5363_s30 = scalar_lea.hbm %s8215_s4, 512  ;;  %s5358_s22 = int_to_ptr.hbm [resolvable:$true] %s5357_s22 }
  0x20   : > { %v541_v30 = vsub.f32 %v5563_v16, %v540_v23  ;;  %793 = vmatpush.msra.mxu3 %v5531_v5  ;;  %v547_v37 = vsub.f32 %v5569_v18, %v546_v26  ;;  %v558_v38 = vand.u32 4294901760, %v5582_v24  ;;  %v5629_v41 = vand.u32 4294901760, %v296_v32  ;;  %s5359_s26 = scalar_lea.hbm %s5358_s22, 256  ;;  %p5364_p5 = scmp.lt.s32.totalorder %s5358_s22, %s8215_s4 }
  0x21   : > { %376 = vmatpush.msra.mxu0 %v5542_v9  ;;  %675 = vmatpush.msra.mxu2 %v5563_v16  ;;  %v530_v35 = vand.u32 4294901760, %v529_v28  ;;  %v536_v36 = vand.u32 4294901760, %v535_v29  ;;  %v553_v43 = vsub.f32 %v5572_v19, %v552_v31  ;;  %v564_v44 = vand.u32 4294901760, %v5590_v27  ;;  %p5360_p1 = scmp.ne.s32.totalorder %s5358_s22, %s5359_s26  ;;  %p5365_p6 = scmp.lt.s32.totalorder %s5363_s30, %s5359_s26 }
  0x22   : > { %795 = vmatpush.msra.mxu3 %v5542_v9  ;;  %v542_v42 = vand.u32 4294901760, %v541_v30  ;;  %v5645_v47 = vsub.f32 %v298_v25, %v5613_v33  ;;  %v5647_v48 = vand.u32 4294901760, %v294_v39  ;;  %v318_v49 = vsel %vm316_vm0, %v276_v40, 0 }
  0x23   : > { %378 = vmatpush.msra.mxu0 %v5544_v10  ;;  %531 = vmatpush.msra.mxu1 %v530_v35  ;;  %v548_v50 = vand.u32 4294901760, %v547_v37  ;;  %v559_v51 = vsub.f32 %v5582_v24, %v558_v38  ;;  %v570_v52 = vand.u32 4294901760, %v5616_v34  ;;  %v5655_v53 = vand.u32 4294901760, %v318_v49  ;;  %p5361_p2 = pnand %p5360_p1, %p5497_p4  ;;  %p5366_p7 = por %p5365_p6, %p5364_p5 }
  0x24   : > { %678 = vmatpush.msra.mxu2 %v5569_v18  ;;  %797 = vmatpush.msra.mxu3 %v5544_v10  ;;  %v5661_v55 = vsub.f32 %v296_v32, %v5629_v41  ;;  %v5663_v56 = vand.u32 4294901760, %v292_v45  ;;  %v554_v58 = vand.u32 4294901760, %v553_v43  ;;  %v565_v59 = vsub.f32 %v5590_v27, %v564_v44  ;;  %v311_v43 = vld [vmem:[%s8212_s1 + $0x98] sm:$0xff] }
  0x25   : > { %380 = vmatpush.msra.mxu0 %v5546_v11  ;;  %537 = vmatpush.msra.mxu1 %v536_v36  ;;  %v5672_v60 = vsub.f32 %v318_v49, %v5655_v53  ;;  %v5680_v62 = vsub.f32 %v294_v39, %v5647_v48  ;;  %v576_v63 = vand.u32 4294901760, %v5645_v47  ;;  %v5684_v0 = vsub.f32 %v315_v46, %v5665_v57  ;;  %p5362_p3 = pneg %p5361_p2 }
  0x26   : > { %681 = vmatpush.msra.mxu2 %v5572_v19  ;;  %799 = vmatpush.msra.mxu3 %v5546_v11  ;;  %v321_v1 = vsel %vm316_vm0, %v277_v54, 0  ;;  %v560_v2 = vand.u32 4294901760, %v559_v51  ;;  %v571_v6 = vsub.f32 %v5616_v34, %v570_v52  ;;  %v5700_v13 = vsub.f32 %v292_v45, %v5663_v56 }
  0x27   : > { %382 = vmatpush.msra.mxu0 %v5565_v17  ;;  %543 = vmatpush.msra.mxu1 %v542_v42  ;;  %8470 = vst [vmem:[#allocation9_spill] sm:$0xff] %v5672_v60  ;;  %v5692_v7 = vand.u32 4294901760, %v5672_v60  ;;  %v5694_v8 = vand.u32 4294901760, %v321_v1  ;;  %v582_v25 = vand.u32 4294901760, %v5661_v55  ;;  %v5703_v28 = vand.u32 4294901760, %v313_v61  ;;  %p5367_p9 = pnand %p5366_p7, %p5362_p3 }
  0x28   : > { %684 = vmatpush.msra.mxu2 %v5582_v24  ;;  %801 = vmatpush.msra.mxu3 %v5565_v17  ;;  %v566_v29 = vand.u32 4294901760, %v565_v59  ;;  %v8217_v32 = vand.u32 4294901760, %v5684_v0  ;;  %v577_v36 = vsub.f32 %v5645_v47, %v576_v63  ;;  %v588_v37 = vand.u32 4294901760, %v5680_v62  ;;  %v282_v24 = vld [vmem:[%s5595_s24 + $0x30] sm:$0xff] }
  0x29   : > { %384 = vmatpush.msra.mxu0 %v5574_v20  ;;  %549 = vmatpush.msra.mxu1 %v548_v50  ;;  %8471 = vst [vmem:[#allocation10_spill] sm:$0xff] %v5692_v7  ;;  %v396_v30 = vsub.f32 %v5672_v60, %v5692_v7  ;;  %v5710_v35 = vsub.f32 %v321_v1, %v5694_v8  ;;  %v324_v39 = vsel %vm316_vm0, %v278_v12, 0  ;;  %v572_v42 = vand.u32 4294901760, %v571_v6  ;;  %v279_v12 = vld [vmem:[%s5595_s24 + $0x18] sm:$0xff] }
  0x2a   : > { %687 = vmatpush.msra.mxu2 %v5590_v27  ;;  %803 = vmatpush.msra.mxu3 %v5574_v20  ;;  %v5720_v40 = vsub.f32 %v313_v61, %v5703_v28  ;;  %v583_v45 = vsub.f32 %v5661_v55, %v582_v25  ;;  %v8218_v46 = vand.u32 4294901760, %v5700_v13  ;;  %v5733_v50 = vand.u32 4294901760, %v311_v43 }
  0x2b   : > { %386 = vmatpush.msra.mxu0 %v5613_v33  ;;  %555 = vmatpush.msra.mxu1 %v554_v58  ;;  %8472 = vst [vmem:[#allocation11_spill] sm:$0xff] %v5710_v35  ;;  %v5736_v51 = vand.u32 4294901760, %v396_v30  ;;  %v1283_v54 = vsub.f32 %v5684_v0, %v8217_v32  ;;  %v5742_v58 = vand.u32 4294901760, %v5710_v35  ;;  %v5744_v59 = vand.u32 4294901760, %v324_v39 }
  0x2c   : > { %690 = vmatpush.msra.mxu2 %v5616_v34  ;;  %805 = vmatpush.msra.mxu3 %v5613_v33  ;;  %v8216_v49 = vand.u32 4294901760, %v5720_v40  ;;  %v578_v61 = vand.u32 4294901760, %v577_v36  ;;  %v589_v1 = vsub.f32 %v5680_v62, %v588_v37  ;;  %v595_v30 = vsub.f32 %v5700_v13, %v8218_v46 }
  0x2d   : > { %388 = vmatpush.msra.mxu0 %v5629_v41  ;;  %561 = vmatpush.msra.mxu1 %v560_v2  ;;  %8473 = vst [vmem:[#allocation12_spill] sm:$0xff] %v5742_v58  ;;  %v5752_v2 = vsub.f32 %v311_v43, %v5733_v50  ;;  %v404_v43 = vsub.f32 %v5710_v35, %v5742_v58  ;;  %v327_v32 = vsel %vm316_vm0, %v279_v12, 0  ;;  %vm1874_vm1 = vcmask 261120  }
  0x2e   : > { %693 = vmatpush.msra.mxu2 %v5645_v47  ;;  %807 = vmatpush.msra.mxu3 %v5629_v41  ;;  %v1289_v6 = vsub.f32 %v5720_v40, %v8216_v49  ;;  %v5770_v49 = vsub.f32 %v324_v39, %v5744_v59  ;;  %v309_v39 = vld [vmem:[%s8212_s1 + $0x88] sm:$0xff] }
  0x2f   : > { %390 = vmatpush.msra.mxu0 %v5647_v48  ;;  %567 = vmatpush.msra.mxu1 %v566_v29  ;;  %v584_v29 = vand.u32 4294901760, %v583_v45  ;;  %v8224_v36 = vand.u32 4294901760, %v5752_v2  ;;  %v590_v45 = vand.u32 4294901760, %v589_v1  ;;  %v5784_v1 = vand.u32 4294901760, %v309_v39 }
  0x30   : > { %696 = vmatpush.msra.mxu2 %v5661_v55  ;;  %809 = vmatpush.msra.mxu3 %v5647_v48  ;;  %8474 = vst [vmem:[#allocation13_spill] sm:$0xff] %v5770_v49  ;;  %v1290_v46 = vand.u32 4294901760, %v1289_v6  ;;  %v5786_v12 = vand.u32 4294901760, %v404_v43  ;;  %v5789_v14 = vand.u32 4294901760, %v5770_v49 }
  0x31   : > { %392 = vmatpush.msra.mxu0 %v5663_v56  ;;  %573 = vmatpush.msra.mxu1 %v572_v42  ;;  %v1284_v42 = vand.u32 4294901760, %v1283_v54  ;;  %v1295_v54 = vsub.f32 %v5752_v2, %v8224_v36  ;;  %v5797_v6 = vsub.f32 %v309_v39, %v5784_v1  ;;  %v281_v39 = vld [vmem:[%s5595_s24 + $0x28] sm:$0xff] }
  0x32   : > { %699 = vmatpush.msra.mxu2 %v5680_v62  ;;  %811 = vmatpush.msra.mxu3 %v5663_v56  ;;  %8475 = vst [vmem:[#allocation14_spill] sm:$0xff] %v5789_v14 }
  0x33   : > { %398 = vmatmul.f32.vlgmr.msra.gmra.mxu0 %v5736_v51  ;;  %815 = vmatmul.f32.vlgmr.msra.gmra.mxu3 %v5692_v7  ;;  %v8223_v15 = vand.u32 4294901760, %v5797_v6 }
  0x34   : > { %579 = vmatpush.msra.mxu1 %v578_v61  ;;  %702 = vmatpush.msra.mxu2 %v5700_v13  ;;  %v596_v61 = vand.u32 4294901760, %v595_v30  ;;  %v280_v30 = vld [vmem:[%s5595_s24 + $0x20] sm:$0xff] }
  0x35   : > { %705 = vmatmul.f32.vlgmr.msra.gmra.mxu2 %v5672_v60  ;;  %916 = vmatpush.msrb.mxu0 %v528_v21  ;;  %v5793_v21 = vand.u32 4294901760, %v327_v32  ;;  %v330_v16 = vsel %vm316_vm0, %v280_v30, 0 }
  0x36   : > { %585 = vmatpush.msra.mxu1 %v584_v29  ;;  %1124 = vmatpush.msrb.mxu2 %v5665_v57  ;;  %v1296_v29 = vand.u32 4294901760, %v1295_v54 }
  0x37   : > { %1285 = vmatpush.msrb.mxu3 %v1284_v42  ;;  %920 = vmatpush.msrb.mxu0 %v534_v22  ;;  %v412_v22 = vsub.f32 %v5770_v49, %v5789_v14  ;;  %v5809_v42 = vsub.f32 %v327_v32, %v5793_v21 }
  0x38   : > { %591 = vmatpush.msra.mxu1 %v590_v45  ;;  %1126 = vmatpush.msrb.mxu2 %v5703_v28  ;;  %v5828_v45 = vand.u32 4294901760, %v330_v16 }
  0x39   : > { %1291 = vmatpush.msrb.mxu3 %v1290_v46  ;;  %924 = vmatpush.msrb.mxu0 %v540_v23  ;;  %8476 = vst [vmem:[#allocation15_spill] sm:$0xff] %v5809_v42  ;;  %v1301_v23 = vsub.f32 %v5797_v6, %v8223_v15  ;;  %v307_v46 = vld [vmem:[%s8212_s1 + $0x78] sm:$0xff]  ;;  %v5826_v43 = vand.u32 4294901760, %v5809_v42 }
  0x3a   : > { %597 = vmatpush.msra.mxu1 %v596_v61  ;;  %1128 = vmatpush.msrb.mxu2 %v5733_v50  ;;  %v5832_v54 = vand.u32 4294901760, %v307_v46  ;;  %v5845_v18 = vsub.f32 %v330_v16, %v5828_v45 }
  0x3b   : > { %406 = vmatmul.f32.gmra.mxu0 %v5786_v12  ;;  %599 = vmatmul.f32.vlgmr.msra.gmra.mxu1 %v5655_v53  ;;  %v1302_v32 = vand.u32 4294901760, %v1301_v23  ;;  %8477 = vst [vmem:[#allocation16_spill] sm:$0xff] %v5826_v43 }
  0x3c   : > { %821 = vmatmul.f32.gmra.mxu3 %v5742_v58  ;;  %1031 = vmatpush.msrb.mxu1 %v5527_v3  ;;  %v5823_v3 = vand.u32 4294901760, %v412_v22  ;;  %8478 = vst [vmem:[#allocation17_spill] sm:$0xff] %v5845_v18  ;;  %v5850_v19 = vsub.f32 %v307_v46, %v5832_v54 }
  0x3d   : > { %710 = vmatmul.f32.gmra.mxu2 %v5710_v35  ;;  %1297 = vmatpush.msrb.mxu3 %v1296_v29  ;;  %v283_v29 = vld [vmem:[%s5595_s24 + $0x38] sm:$0xff]  ;;  %v8496_v35 = vand.u32 4294901760, %v5684_v0 }
  0x3e   : > { %1033 = vmatpush.msrb.mxu1 %v5529_v4  ;;  %1130 = vmatpush.msrb.mxu2 %v5784_v1  ;;  %v420_v4 = vsub.f32 %v5809_v42, %v5826_v43 }
  0x3f   : > { %928 = vmatpush.msrb.mxu0 %v546_v26  ;;  %1303 = vmatpush.msrb.mxu3 %v1302_v32 }
  0x40   : > { %1035 = vmatpush.msrb.mxu1 %v5531_v5  ;;  %1132 = vmatpush.msrb.mxu2 %v5832_v54  ;;  %v333_v5 = vsel %vm316_vm0, %v281_v39, 0  ;;  %v5858_v26 = vand.u32 4294901760, %v420_v4 }
  0x41   : > { %932 = vmatpush.msrb.mxu0 %v552_v31  ;;  %v5861_v31 = vand.u32 4294901760, %v5845_v18  ;;  %v5863_v61 = vand.u32 4294901760, %v333_v5 }
  0x42   : > { %1037 = vmatpush.msrb.mxu1 %v5542_v9  ;;  %v8222_v9 = vand.u32 4294901760, %v5850_v19 }
  0x43   : > { %414 = vmatmul.f32.gmra.mxu0 %v5823_v3  ;;  %603 = vmatmul.f32.gmra.mxu1 %v5694_v8  ;;  %8479 = vst [vmem:[#allocation18_spill] sm:$0xff] %v5861_v31  ;;  %v428_v27 = vsub.f32 %v5845_v18, %v5861_v31 }
  0x44   : > { %827 = vmatmul.f32.gmra.mxu3 %v5789_v14  ;;  %1039 = vmatpush.msrb.mxu1 %v5544_v10  ;;  %v1307_v10 = vsub.f32 %v5850_v19, %v8222_v9 }
  0x45   : > { %715 = vmatmul.f32.gmra.mxu2 %v5770_v49  ;;  %936 = vmatpush.msrb.mxu0 %v558_v38  ;;  %v5880_v38 = vsub.f32 %v333_v5, %v5863_v61 }
  0x46   : > { %1041 = vmatpush.msrb.mxu1 %v5546_v11  ;;  %v1308_v11 = vand.u32 4294901760, %v1307_v10 }
  0x47   : > { %940 = vmatpush.msrb.mxu0 %v564_v44  ;;  %8480 = vst [vmem:[#allocation19_spill] sm:$0xff] %v5880_v38  ;;  %v5895_v44 = vand.u32 4294901760, %v428_v27 }
  0x48   : > { %1043 = vmatpush.msrb.mxu1 %v5565_v17  ;;  %v336_v17 = vsel %vm316_vm0, %v282_v24, 0  ;;  %1309 = vmatpush.msrb.mxu3 %v1308_v11  ;;  %v301_v24 = vld [vmem:[%s8212_s1 + $0x48] sm:$0xff] }
  0x49   : > { %944 = vmatpush.msrb.mxu0 %v570_v52  ;;  %v5898_v52 = vand.u32 4294901760, %v5880_v38  ;;  %v5900_v47 = vand.u32 4294901760, %v336_v17  ;;  %v5968_v27 = vand.u32 4294901760, %v301_v24 }
  0x4a   : > { %1045 = vmatpush.msrb.mxu1 %v5574_v20  ;;  %v305_v20 = vld [vmem:[%s8212_s1 + $0x68] sm:$0xff] }
  0x4b   : > { %422 = vmatmul.f32.gmra.mxu0 %v5858_v26  ;;  %607 = vmatmul.f32.gmra.mxu1 %v5744_v59  ;;  %v5890_v34 = vand.u32 4294901760, %v305_v20  ;;  %8481 = vst [vmem:[#allocation20_spill] sm:$0xff] %v5898_v52  ;;  %v436_v55 = vsub.f32 %v5880_v38, %v5898_v52 }
  0x4c   : > { %833 = vmatmul.f32.gmra.mxu3 %v5826_v43  ;;  %948 = vmatpush.msrb.mxu0 %v576_v63 }
  0x4d   : > { %720 = vmatmul.f32.gmra.mxu2 %v5809_v42  ;;  %1047 = vmatpush.msrb.mxu1 %v5613_v33  ;;  %v5904_v63 = vsub.f32 %v305_v20, %v5890_v34  ;;  %v5935_v16 = vand.u32 4294901760, %v436_v55  ;;  %v285_v55 = vld [vmem:[%s5595_s24 + $0x48] sm:$0xff] }
  0x4e   : > { %952 = vmatpush.msrb.mxu0 %v582_v25  ;;  %1134 = vmatpush.msrb.mxu2 %v5890_v34  ;;  %v5917_v25 = vsub.f32 %v336_v17, %v5900_v47 }
  0x4f   : > { %1049 = vmatpush.msrb.mxu1 %v5629_v41  ;;  %v8221_v33 = vand.u32 4294901760, %v5904_v63  ;;  %v339_v41 = vsel %vm316_vm0, %v283_v29, 0 }
  0x50   : > { %956 = vmatpush.msrb.mxu0 %v588_v37  ;;  %8482 = vst [vmem:[#allocation21_spill] sm:$0xff] %v5917_v25  ;;  %v303_v37 = vld [vmem:[%s8212_s1 + $0x58] sm:$0xff]  ;;  %v5940_v23 = vand.u32 4294901760, %v339_v41 }
  0x51   : > { %1051 = vmatpush.msrb.mxu1 %v5647_v48  ;;  %v1313_v62 = vsub.f32 %v5904_v63, %v8221_v33  ;;  %v8483_v48 = vand.u32 4294901760, %v5700_v13  ;;  %v5931_v22 = vand.u32 4294901760, %v303_v37  ;;  %v5938_v13 = vand.u32 4294901760, %v5917_v25 }
  0x52   : > { %v5955_v4 = vsub.f32 %v339_v41, %v5940_v23 }
  0x53   : > { %430 = vmatmul.f32.gmra.mxu0 %v5895_v44  ;;  %611 = vmatmul.f32.gmra.mxu1 %v5793_v21  ;;  %v1314_v30 = vand.u32 4294901760, %v1313_v62  ;;  %8484 = vst [vmem:[#allocation22_spill] sm:$0xff] %v5938_v13  ;;  %v5944_v46 = vsub.f32 %v303_v37, %v5931_v22  ;;  %v444_v39 = vsub.f32 %v5917_v25, %v5938_v13 }
  0x54   : > { %839 = vmatmul.f32.gmra.mxu3 %v5861_v31  ;;  %960 = vmatpush.msrb.mxu0 %v8483_v48  ;;  %8485 = vst [vmem:[#allocation23_spill] sm:$0xff] %v5955_v4  ;;  %v5974_v20 = vand.u32 4294901760, %v5955_v4  ;;  %v345_v48 = vsel %vm316_vm0, %v285_v55, 0  ;;  %v5993_v37 = vsub.f32 %v301_v24, %v5968_v27  ;;  %v286_v24 = vld [vmem:[%s5595_s24 + $0x50] sm:$0xff]  ;;  %v295_v31 = vld [vmem:[%s8212_s1 + $0x18] sm:$0xff] }
  0x55   : > { %725 = vmatmul.f32.gmra.mxu2 %v5845_v18  ;;  %1053 = vmatpush.msrb.mxu1 %v5663_v56  ;;  %v284_v56 = vld [vmem:[%s5595_s24 + $0x40] sm:$0xff]  ;;  %v8220_v32 = vand.u32 4294901760, %v5944_v46  ;;  %v5971_v17 = vand.u32 4294901760, %v444_v39  ;;  %v6093_v43 = vand.u32 4294901760, %v295_v31 }
  0x56   : > { %1423 = vmatpush.msra.mxu0 %v5684_v0  ;;  %1315 = vmatpush.msrb.mxu3 %v1314_v30  ;;  %v342_v5 = vsel %vm316_vm0, %v284_v56, 0  ;;  %8486 = vst [vmem:[#allocation24_spill] sm:$0xff] %v5974_v20  ;;  %v452_v41 = vsub.f32 %v5955_v4, %v5974_v20  ;;  %v8219_v30 = vand.u32 4294901760, %v5993_v37 }
  0x57   : > { %1543 = vmatpush.msra.mxu1 %v5665_v57  ;;  %1136 = vmatpush.msrb.mxu2 %v5931_v22  ;;  %v1319_v10 = vsub.f32 %v5944_v46, %v8220_v32  ;;  %v5976_v29 = vand.u32 4294901760, %v342_v5 }
  0x58   : > { %1426 = vmatpush.msra.mxu0 %v5720_v40  ;;  %v6000_v56 = vand.u32 4294901760, %v452_v41 }
  0x59   : > { %1545 = vmatpush.msra.mxu1 %v5703_v28  ;;  %v1320_v11 = vand.u32 4294901760, %v1319_v10  ;;  %1138 = vmatpush.msrb.mxu2 %v5968_v27  ;;  %v5988_v62 = vsub.f32 %v342_v5, %v5976_v29  ;;  %v6005_v5 = vand.u32 4294901760, %v345_v48  ;;  %v1325_v10 = vsub.f32 %v5993_v37, %v8219_v30 }
  0x5a   : > { %1429 = vmatpush.msra.mxu0 %v5752_v2  ;;  %v348_v30 = vsel %vm316_vm0, %v286_v24, 0 }
  0x5b   : > { %438 = vmatmul.f32.gmra.mxu0 %v5935_v16  ;;  %615 = vmatmul.f32.gmra.mxu1 %v5828_v45  ;;  %8487 = vst [vmem:[#allocation25_spill] sm:$0xff] %v5988_v62  ;;  %v6003_v39 = vand.u32 4294901760, %v5988_v62  ;;  %v6019_v41 = vsub.f32 %v345_v48, %v6005_v5  ;;  %v6034_v48 = vand.u32 4294901760, %v348_v30 }
  0x5c   : > { %845 = vmatmul.f32.gmra.mxu3 %v5898_v52  ;;  %1547 = vmatpush.msra.mxu1 %v5733_v50 }
  0x5d   : > { %730 = vmatmul.f32.gmra.mxu2 %v5880_v38  ;;  %1432 = vmatpush.msra.mxu0 %v5797_v6  ;;  %8488 = vst [vmem:[#allocation26_spill] sm:$0xff] %v6003_v39  ;;  %v460_v55 = vsub.f32 %v5988_v62, %v6003_v39  ;;  %v6032_v9 = vand.u32 4294901760, %v6019_v41  ;;  %v6049_v36 = vsub.f32 %v348_v30, %v6034_v48 }
  0x5e   : > { %1549 = vmatpush.msra.mxu1 %v5784_v1  ;;  %1321 = vmatpush.msrb.mxu3 %v1320_v11  ;;  %v1326_v11 = vand.u32 4294901760, %v1325_v10  ;;  %8489 = vst [vmem:[#allocation27_spill] sm:$0xff] %v6019_v41  ;;  %v299_v10 = vld [vmem:[%s8212_s1 + $0x38] sm:$0xff] }
  0x5f   : > { %1435 = vmatpush.msra.mxu0 %v5850_v19  ;;  %v6027_v32 = vand.u32 4294901760, %v299_v10  ;;  %v6029_v33 = vand.u32 4294901760, %v460_v55  ;;  %8490 = vst [vmem:[#allocation28_spill] sm:$0xff] %v6032_v9  ;;  %v468_v55 = vsub.f32 %v6019_v41, %v6032_v9  ;;  %v6065_v30 = vand.u32 4294901760, %v6049_v36 }
  0x60   : > { %1551 = vmatpush.msra.mxu1 %v5832_v54  ;;  %1327 = vmatpush.msrb.mxu3 %v1326_v11  ;;  %v287_v11 = vld [vmem:[%s5595_s24 + $0x58] sm:$0xff]  ;;  %8491 = vst [vmem:[#allocation29_spill] sm:$0xff] %v6049_v36 }
  0x61   : > { %1438 = vmatpush.msra.mxu0 %v5904_v63  ;;  %1140 = vmatpush.msrb.mxu2 %v6027_v32  ;;  %v6038_v24 = vsub.f32 %v299_v10, %v6027_v32  ;;  %v351_v10 = vsel %vm316_vm0, %v287_v11, 0  ;;  %8492 = vst [vmem:[#allocation30_spill] sm:$0xff] %v6065_v30 }
  0x62   : > { %1553 = vmatpush.msra.mxu1 %v5890_v34 }
  0x63   : > { %446 = vmatmul.f32.gmra.mxu0 %v5971_v17  ;;  %619 = vmatmul.f32.gmra.mxu1 %v5863_v61  ;;  %v8231_v15 = vand.u32 4294901760, %v6038_v24 }
  0x64   : > { %851 = vmatmul.f32.gmra.mxu3 %v5938_v13  ;;  %1441 = vmatpush.msra.mxu0 %v5944_v46  ;;  %v297_v13 = vld [vmem:[%s8212_s1 + $0x28] sm:$0xff] }
  0x65   : > { %735 = vmatmul.f32.gmra.mxu2 %v5917_v25  ;;  %1555 = vmatpush.msra.mxu1 %v5931_v22  ;;  %v6060_v52 = vand.u32 4294901760, %v297_v13  ;;  %v6062_v25 = vand.u32 4294901760, %v468_v55 }
  0x66   : > { %1444 = vmatpush.msra.mxu0 %v5993_v37 }
  0x67   : > { %1557 = vmatpush.msra.mxu1 %v5968_v27  ;;  %1142 = vmatpush.msrb.mxu2 %v6060_v52  ;;  %v6071_v11 = vsub.f32 %v297_v13, %v6060_v52 }
  0x68   : > { %1447 = vmatpush.msra.mxu0 %v6038_v24 }
  0x69   : > { %1559 = vmatpush.msra.mxu1 %v6027_v32  ;;  %1144 = vmatpush.msrb.mxu2 %v6093_v43 }
  0x6a   : > { %1450 = vmatpush.msra.mxu0 %v6071_v11 }
  0x6b   : > { %454 = vmatmul.f32.gmra.mxu0 %v6000_v56  ;;  %623 = vmatmul.f32.gmra.mxu1 %v5900_v47 }
  0x6c   : > { %857 = vmatmul.f32.gmra.mxu3 %v5974_v20  ;;  %v1331_v20 = vsub.f32 %v6038_v24, %v8231_v15  ;;  %v288_v15 = vld [vmem:[%s5595_s24 + $0x60] sm:$0xff]  ;;  %1561 = vmatpush.msra.mxu1 %v6060_v52 }
  0x6d   : > { %740 = vmatmul.f32.gmra.mxu2 %v5955_v4  ;;  %v354_v13 = vsel %vm316_vm0, %v288_v15, 0  ;;  %v289_v15 = vld [vmem:[%s5595_s24 + $0x68] sm:$0xff] }
  0x6e   : > { %v1332_v4 = vand.u32 4294901760, %v1331_v20  ;;  %v8238_v20 = vand.u32 4294901760, %v6071_v11  ;;  %1563 = vmatpush.msra.mxu1 %v6093_v43 }
  0x70   : > { %1333 = vmatpush.msrb.mxu3 %v1332_v4  ;;  %v476_v4 = vsub.f32 %v6049_v36, %v6065_v30 }
  0x72   : > { %v6095_v18 = vand.u32 4294901760, %v476_v4 }
  0x73   : > { %462 = vmatmul.f32.gmra.mxu0 %v6029_v33  ;;  %627 = vmatmul.f32.gmra.mxu1 %v5940_v23 }
  0x74   : > { %863 = vmatmul.f32.gmra.mxu3 %v6003_v39  ;;  %v6067_v39 = vand.u32 4294901760, %v351_v10 }
  0x75   : > { %745 = vmatmul.f32.gmra.mxu2 %v5988_v62  ;;  %v1337_v62 = vsub.f32 %v6071_v11, %v8238_v20  ;;  %v6115_v20 = vsub.f32 %v295_v31, %v6093_v43  ;;  %v293_v31 = vld [vmem:[%s8212_s1 + $0x8] sm:$0xff] }
  0x76   : > { %v6082_v55 = vsub.f32 %v351_v10, %v6067_v39 }
  0x77   : > { %v1338_v38 = vand.u32 4294901760, %v1337_v62  ;;  %1453 = vmatpush.msra.mxu0 %v6115_v20 }
  0x78   : > { %8493 = vst [vmem:[#allocation31_spill] sm:$0xff] %v6082_v55  ;;  %v6098_v10 = vand.u32 4294901760, %v6082_v55 }
  0x79   : > { %1339 = vmatpush.msrb.mxu3 %v1338_v38  ;;  %v357_v38 = vsel %vm316_vm0, %v289_v15, 0 }
  0x7a   : > { %8494 = vst [vmem:[#allocation32_spill] sm:$0xff] %v6098_v10  ;;  %v484_v62 = vsub.f32 %v6082_v55, %v6098_v10 }
  0x7b   : > { %470 = vmatmul.f32.gmra.mxu0 %v6062_v25  ;;  %631 = vmatmul.f32.gmra.mxu1 %v5976_v29 }
  0x7c   : > { %869 = vmatmul.f32.gmra.mxu3 %v6032_v9  ;;  %v6100_v9 = vand.u32 4294901760, %v354_v13  ;;  %v6120_v14 = vand.u32 4294901760, %v484_v62 }
  0x7d   : > { %750 = vmatmul.f32.gmra.mxu2 %v6019_v41  ;;  %v8246_v41 = vand.u32 4294901760, %v6115_v20 }
  0x7e   : > { %v6110_v4 = vsub.f32 %v354_v13, %v6100_v9  ;;  %8495 = vst [vmem:[#allocation33_spill] sm:$0xff] %v6120_v14  ;;  %v6125_v13 = vand.u32 4294901760, %v357_v38 }
  0x7f   : > { %v1343_v15 = vsub.f32 %v6115_v20, %v8246_v41 }
  0x80   : > { %v6123_v42 = vand.u32 4294901760, %v6110_v4  ;;  %v6141_v49 = vsub.f32 %v357_v38, %v6125_v13 }
  0x81   : > { %v1344_v58 = vand.u32 4294901760, %v1343_v15 }
  0x82   : > { %v492_v62 = vsub.f32 %v6110_v4, %v6123_v42  ;;  %v6153_v38 = vand.u32 4294901760, %v6141_v49 }
  0x83   : > { %478 = vmatmul.f32.gmra.mxu0 %v6095_v18  ;;  %635 = vmatmul.f32.gmra.mxu1 %v6005_v5 }
  0x84   : > { %875 = vmatmul.f32.gmra.mxu3 %v6065_v30  ;;  %v290_v30 = vld [vmem:[%s5595_s24 + $0x70] sm:$0xff]  ;;  %v6150_v60 = vand.u32 4294901760, %v492_v62  ;;  %v500_v0 = vsub.f32 %v6141_v49, %v6153_v38  ;;  %v8505_v62 = vand.u32 4294901760, %v6071_v11 }
  0x85   : > { %755 = vmatmul.f32.gmra.mxu2 %v6049_v36  ;;  %v6134_v36 = vand.u32 4294901760, %v293_v31  ;;  %v360_v7 = vsel %vm316_vm0, %v290_v30, 0  ;;  %1345 = vmatpush.msrb.mxu3 %v1344_v58  ;;  %v8497_v30 = vand.u32 4294901760, %v5720_v40 }
  0x87   : > { %v1347_v41 = vsub.f32 %v293_v31, %v6134_v36  ;;  %1146 = vmatpush.msrb.mxu2 %v6134_v36  ;;  %v6155_v31 = vand.u32 4294901760, %v360_v7  ;;  %1565 = vmatpush.msra.mxu1 %v6134_v36 }
  0x89   : > { %v1348_v15 = vand.u32 4294901760, %v1347_v41  ;;  %1670 = vmatpush.msra.mxu2 %v8496_v35  ;;  %1456 = vmatpush.msra.mxu0 %v1347_v41  ;;  %v6168_v35 = vsub.f32 %v360_v7, %v6155_v31 }
  0x8b   : > { %486 = vmatmul.f32.gmra.mxu0 %v6120_v14  ;;  %639 = vmatmul.f32.gmra.mxu1 %v6034_v48  ;;  %v8498_v14 = vand.u32 4294901760, %v5752_v2  ;;  %v8500_v2 = vand.u32 4294901760, %v5850_v19  ;;  %v6181_v7 = vand.u32 4294901760, %v6168_v35 }
  0x8c   : > { %881 = vmatmul.f32.gmra.mxu3 %v6098_v10  ;;  %v1349_v10 = vsub.f32 %v1347_v41, %v1348_v15  ;;  %1674 = vmatpush.msra.mxu2 %v8497_v30  ;;  %v8499_v41 = vand.u32 4294901760, %v5797_v6  ;;  %v8501_v6 = vand.u32 4294901760, %v5904_v63 }
  0x8d   : > { %760 = vmatmul.f32.gmra.mxu2 %v6082_v55  ;;  %v291_v55 = vld [vmem:[%s5595_s24 + $0x78] sm:$0xff]  ;;  %s5240_s24 = sshll.u32 %s8878_s10, 4  ;;  %s249_s10 = sand.u32 1, %s5409_s16  }
  0x8e   : > { %v1350_v58 = vand.u32 4294901760, %v1349_v10  ;;  %1678 = vmatpush.msra.mxu2 %v8498_v14  ;;  %v363_v40 = vsel %vm316_vm0, %v291_v55, 0  ;;  %v6178_v14 = vand.u32 4294901760, %v500_v0  ;;  %v8502_v55 = vand.u32 4294901760, %v5944_v46  ;;  %s7750_s6 = scalar_lea.vmem %s8214_s3, %s5240_s24  ;;  %s5228_s7 = sshll.u32 %s249_s10, 8 }
  0x8f   : > { %v6183_v10 = vand.u32 4294901760, %v363_v40  ;;  %s7778_s8 = scalar_lea.vmem [#allocation6], %s5228_s7  ;;  %s5100_s18 = scalar_lea.sflag [#allocation5], %s249_s10 }
  0x90   : > { %1682 = vmatpush.msra.mxu2 %v8499_v41  ;;  %1351 = vmatpush.msrb.mxu3 %v1350_v58  ;;  %s5115_s14 = sshll.u32 %s7778_s8, 4  ;;  %s5116_s14 = int_to_ptr.vmem [resolvable:$true] %s5115_s14 }
  0x91   : > { %v6196_v19 = vsub.f32 %v363_v40, %v6183_v10 }
  0x92   : > { %1785 = vmatpush.msra.mxu3 %v5665_v57  ;;  %1686 = vmatpush.msra.mxu2 %v8500_v2  ;;  %v508_v57 = vsub.f32 %v6168_v35, %v6181_v7 }
  0x93   : > { %494 = vmatmul.f32.gmra.mxu0 %v6150_v60  ;;  %643 = vmatmul.f32.gmra.mxu1 %v6067_v39  ;;  %v6208_v46 = vand.u32 4294901760, %v6196_v19 }
  0x94   : > { %887 = vmatmul.f32.gmra.mxu3 %v6123_v42  ;;  %1690 = vmatpush.msra.mxu2 %v8501_v6  ;;  %v6205_v63 = vand.u32 4294901760, %v508_v57 }
  0x95   : > { %765 = vmatmul.f32.gmra.mxu2 %v6110_v4  ;;  %1787 = vmatpush.msra.mxu3 %v5703_v28  ;;  %v8503_v28 = vand.u32 4294901760, %v5993_v37  ;;  %v8506_v37 = vand.u32 4294901760, %v6115_v20 }
  0x96   : > { %1694 = vmatpush.msra.mxu2 %v8502_v55 }
  0x97   : > { %1789 = vmatpush.msra.mxu3 %v5733_v50  ;;  %v8504_v50 = vand.u32 4294901760, %v6038_v24 }
  0x98   : > { %1698 = vmatpush.msra.mxu2 %v8503_v28 }
  0x99   : > { %1791 = vmatpush.msra.mxu3 %v5784_v1  ;;  %v516_v1 = vsub.f32 %v6196_v19, %v6208_v46 }
  0x9a   : > { %1702 = vmatpush.msra.mxu2 %v8504_v50 }
  0x9b   : > { %502 = vmatmul.f32.gmra.mxu0 %v6178_v14  ;;  %647 = vmatmul.f32.gmra.mxu1 %v6100_v9 }
  0x9c   : > { %893 = vmatmul.f32.gmra.mxu3 %v6153_v38  ;;  %1706 = vmatpush.msra.mxu2 %v8505_v62 }
  0x9d   : > { %770 = vmatmul.f32.gmra.mxu2 %v6141_v49  ;;  %1793 = vmatpush.msra.mxu3 %v5832_v54  ;;  %v6223_v54 = vand.u32 4294901760, %v516_v1 }
  0x9e   : > { %1710 = vmatpush.msra.mxu2 %v8506_v37 }
  0x9f   : > { %1795 = vmatpush.msra.mxu3 %v5890_v34 }
  0xa0   : > { %1714 = vmatpush.msra.mxu2 %v1348_v15 }
  0xa1   : > { %1797 = vmatpush.msra.mxu3 %v5931_v22 }
  0xa3   : > { %510 = vmatmul.f32.gmra.mxu0 %v6205_v63  ;;  %651 = vmatmul.f32.gmra.mxu1 %v6125_v13 }
  0xa4   : > { %899 = vmatmul.f32.gmra.mxu3 %v6181_v7 }
  0xa5   : > { %775 = vmatmul.f32.gmra.mxu2 %v6168_v35  ;;  %1799 = vmatpush.msra.mxu3 %v5968_v27 }
  0xa7   : > { %1801 = vmatpush.msra.mxu3 %v6027_v32 }
  0xa9   : > { %1803 = vmatpush.msra.mxu3 %v6060_v52 }
  0xab   : > { %518 = vmatmul.f32.gmra.mxu0 %v6223_v54  ;;  %655 = vmatmul.f32.gmra.mxu1 %v6155_v31 }
  0xac   : > { %905 = vmatmul.f32.gmra.mxu3 %v6208_v46 }
  0xad   : > { %780 = vmatmul.f32.gmra.mxu2 %v6196_v19  ;;  %1805 = vmatpush.msra.mxu3 %v6093_v43 }
  0xaf   : > { %1807 = vmatpush.msra.mxu3 %v6134_v36 }
  0xb0   : > { %v399_v34 = vpop.f32.mrf.mxu0 }
  0xb3   : > { %659 = vmatmul.f32.gmra.mxu1 %v6183_v10  ;;  %962 = vmatmul.f32.vlgmr.msrb.gmra.mxu0 %v5655_v53 }
  0xb4   : > { %1353 = vmatmul.f32.vlgmr.msrb.gmra.mxu3 %v5655_v53 }
  0xb5   : > { %1152 = vmatmul.f32.vlgmr.msrb.gmra.mxu2 %v5736_v51 }
  0xb6   : > { %v816_v22 = vpop.f32.mrf.mxu3 }
  0xb8   : > { %v407_v32 = vpop.f32.mrf.mxu0  ;;  %v600_v27 = vpop.f32.mrf.mxu1 }
  0xb9   : > { %v601_v24 = vadd.f32 %v600_v27, %v399_v34  ;;  %v706_v11 = vpop.f32.mrf.mxu2 }
  0xbb   : > { %v707_v20 = vadd.f32 %v706_v11, %v601_v24  ;;  %966 = vmatmul.f32.gmra.mxu0 %v5694_v8  ;;  %1055 = vmatmul.f32.vlgmr.msrb.gmra.mxu1 %v5655_v53 }
  0xbc   : > { %1357 = vmatmul.f32.gmra.mxu3 %v5694_v8 }
  0xbd   : > { %1160 = vmatmul.f32.gmra.mxu2 %v5786_v12  ;;  %v6242_v36 = vadd.f32 %v816_v22, %v707_v20 }
  0xbf   : > { %v822_v43 = vpop.f32.mrf.mxu3 }
  0xc0   : > { %v415_v52 = vpop.f32.mrf.mxu0  ;;  %v604_v15 = vpop.f32.mrf.mxu1 }
  0xc1   : > { %v605_v51 = vadd.f32 %v604_v15, %v407_v32  ;;  %v711_v30 = vpop.f32.mrf.mxu2 }
  0xc3   : > { %v712_v58 = vadd.f32 %v711_v30, %v605_v51  ;;  %970 = vmatmul.f32.gmra.mxu0 %v5744_v59  ;;  %1059 = vmatmul.f32.gmra.mxu1 %v5694_v8 }
  0xc4   : > { %1361 = vmatmul.f32.gmra.mxu3 %v5744_v59 }
  0xc5   : > { %1168 = vmatmul.f32.gmra.mxu2 %v5823_v3  ;;  %v6248_v0 = vadd.f32 %v822_v43, %v712_v58 }
  0xc7   : > { %v828_v40 = vpop.f32.mrf.mxu3 }
  0xc8   : > { %v423_v12 = vpop.f32.mrf.mxu0  ;;  %v608_v41 = vpop.f32.mrf.mxu1 }
  0xc9   : > { %v609_v2 = vadd.f32 %v608_v41, %v415_v52  ;;  %v716_v6 = vpop.f32.mrf.mxu2 }
  0xcb   : > { %v717_v55 = vadd.f32 %v716_v6, %v609_v2  ;;  %974 = vmatmul.f32.gmra.mxu0 %v5793_v21  ;;  %1063 = vmatmul.f32.gmra.mxu1 %v5744_v59 }
  0xcc   : > { %1365 = vmatmul.f32.gmra.mxu3 %v5793_v21 }
  0xcd   : > { %1176 = vmatmul.f32.gmra.mxu2 %v5858_v26  ;;  %v6254_v57 = vadd.f32 %v828_v40, %v717_v55 }
  0xcf   : > { %v834_v28 = vpop.f32.mrf.mxu3 }
  0xd0   : > { %v431_v3 = vpop.f32.mrf.mxu0  ;;  %v612_v50 = vpop.f32.mrf.mxu1 }
  0xd1   : > { %v613_v62 = vadd.f32 %v612_v50, %v423_v12  ;;  %v721_v37 = vpop.f32.mrf.mxu2 }
  0xd3   : > { %v722_v1 = vadd.f32 %v721_v37, %v613_v62  ;;  %978 = vmatmul.f32.gmra.mxu0 %v5828_v45  ;;  %1067 = vmatmul.f32.gmra.mxu1 %v5793_v21 }
  0xd4   : > { %1369 = vmatmul.f32.gmra.mxu3 %v5828_v45 }
  0xd5   : > { %1184 = vmatmul.f32.gmra.mxu2 %v5895_v44  ;;  %v6260_v34 = vadd.f32 %v834_v28, %v722_v1 }
  0xd7   : > { %v840_v22 = vpop.f32.mrf.mxu3 }
  0xd8   : > { %v439_v26 = vpop.f32.mrf.mxu0  ;;  %v616_v32 = vpop.f32.mrf.mxu1 }
  0xd9   : > { %v617_v27 = vadd.f32 %v616_v32, %v431_v3  ;;  %v726_v24 = vpop.f32.mrf.mxu2 }
  0xdb   : > { %v727_v11 = vadd.f32 %v726_v24, %v617_v27  ;;  %982 = vmatmul.f32.gmra.mxu0 %v5863_v61  ;;  %1071 = vmatmul.f32.gmra.mxu1 %v5828_v45 }
  0xdc   : > { %1373 = vmatmul.f32.gmra.mxu3 %v5863_v61 }
  0xdd   : > { %1192 = vmatmul.f32.gmra.mxu2 %v5935_v16  ;;  %v6266_v20 = vadd.f32 %v840_v22, %v727_v11 }
  0xdf   : > { %v846_v43 = vpop.f32.mrf.mxu3 }
  0xe0   : > { %v447_v44 = vpop.f32.mrf.mxu0  ;;  %v620_v52 = vpop.f32.mrf.mxu1 }
  0xe1   : > { %v621_v15 = vadd.f32 %v620_v52, %v439_v26  ;;  %v731_v51 = vpop.f32.mrf.mxu2 }
  0xe3   : > { %v732_v30 = vadd.f32 %v731_v51, %v621_v15  ;;  %986 = vmatmul.f32.gmra.mxu0 %v5900_v47  ;;  %1075 = vmatmul.f32.gmra.mxu1 %v5863_v61 }
  0xe4   : > { %1377 = vmatmul.f32.gmra.mxu3 %v5900_v47 }
  0xe5   : > { %1200 = vmatmul.f32.gmra.mxu2 %v5971_v17  ;;  %v6272_v58 = vadd.f32 %v846_v43, %v732_v30 }
  0xe7   : > { %v852_v40 = vpop.f32.mrf.mxu3 }
  0xe8   : > { %v455_v16 = vpop.f32.mrf.mxu0  ;;  %v624_v12 = vpop.f32.mrf.mxu1 }
  0xe9   : > { %v625_v41 = vadd.f32 %v624_v12, %v447_v44  ;;  %v736_v2 = vpop.f32.mrf.mxu2 }
  0xeb   : > { %v737_v6 = vadd.f32 %v736_v2, %v625_v41  ;;  %990 = vmatmul.f32.gmra.mxu0 %v5940_v23  ;;  %1079 = vmatmul.f32.gmra.mxu1 %v5900_v47 }
  0xec   : > { %1381 = vmatmul.f32.gmra.mxu3 %v5940_v23 }
  0xed   : > { %1208 = vmatmul.f32.gmra.mxu2 %v6000_v56  ;;  %v6278_v55 = vadd.f32 %v852_v40, %v737_v6  ;;  %v8507_v6 = vld [vmem:[#allocation33_spill] sm:$0xff] }
  0xef   : > { %v858_v28 = vpop.f32.mrf.mxu3 }
  0xf0   : > { %v463_v17 = vpop.f32.mrf.mxu0  ;;  %v628_v3 = vpop.f32.mrf.mxu1 }
  0xf1   : > { %v629_v50 = vadd.f32 %v628_v3, %v455_v16  ;;  %v741_v62 = vpop.f32.mrf.mxu2 }
  0xf3   : > { %v742_v37 = vadd.f32 %v741_v62, %v629_v50  ;;  %994 = vmatmul.f32.gmra.mxu0 %v5976_v29  ;;  %1083 = vmatmul.f32.gmra.mxu1 %v5940_v23 }
  0xf4   : > { %1385 = vmatmul.f32.gmra.mxu3 %v5976_v29 }
  0xf5   : > { %1216 = vmatmul.f32.gmra.mxu2 %v6029_v33  ;;  %v6284_v1 = vadd.f32 %v858_v28, %v742_v37 }
  0xf7   : > { %v864_v22 = vpop.f32.mrf.mxu3 }
  0xf8   : > { %v471_v56 = vpop.f32.mrf.mxu0  ;;  %v632_v26 = vpop.f32.mrf.mxu1 }
  0xf9   : > { %v633_v32 = vadd.f32 %v632_v26, %v463_v17  ;;  %v746_v27 = vpop.f32.mrf.mxu2  ;;  %v1968_v26 = vld [vmem:[#allocation3 + $0xf0] sm:$0xff] }
  0xfb   : > { %v747_v24 = vadd.f32 %v746_v27, %v633_v32  ;;  %998 = vmatmul.f32.gmra.mxu0 %v6005_v5  ;;  %1087 = vmatmul.f32.gmra.mxu1 %v5976_v29 }
  0xfc   : > { %1389 = vmatmul.f32.gmra.mxu3 %v6005_v5 }
  0xfd   : > { %1224 = vmatmul.f32.gmra.mxu2 %v6062_v25  ;;  %v6290_v11 = vadd.f32 %v864_v22, %v747_v24  ;;  %v6310_v24 = vand.u32 4294901760, %v1968_v26 }
  0xff   : > { %v870_v43 = vpop.f32.mrf.mxu3  ;;  %2028 = vmatpush.msrb.mxu0 %v6310_v24  ;;  %2479 = vmatpush.msrb.mxu3 %v6310_v24 }
 0x100   : > { %v479_v33 = vpop.f32.mrf.mxu0  ;;  %v636_v44 = vpop.f32.mrf.mxu1 }
 0x101   : > { %v637_v52 = vadd.f32 %v636_v44, %v471_v56  ;;  %v751_v15 = vpop.f32.mrf.mxu2  ;;  %v6313_v44 = vsub.f32 %v1968_v26, %v6310_v24 }
 0x103   : > { %v752_v51 = vadd.f32 %v751_v15, %v637_v52  ;;  %1002 = vmatmul.f32.gmra.mxu0 %v6034_v48  ;;  %1091 = vmatmul.f32.gmra.mxu1 %v6005_v5 }
 0x104   : > { %1393 = vmatmul.f32.gmra.mxu3 %v6034_v48  ;;  %2351 = vmatpush.msrb.mxu2 %v6313_v44 }
 0x105   : > { %1232 = vmatmul.f32.gmra.mxu2 %v6095_v18  ;;  %v6296_v30 = vadd.f32 %v870_v43, %v752_v51 }
 0x107   : > { %v876_v40 = vpop.f32.mrf.mxu3 }
 0x108   : > { %v487_v25 = vpop.f32.mrf.mxu0  ;;  %v640_v16 = vpop.f32.mrf.mxu1 }
 0x109   : > { %v641_v12 = vadd.f32 %v640_v16, %v479_v33  ;;  %v756_v41 = vpop.f32.mrf.mxu2 }
 0x10b   : > { %v757_v2 = vadd.f32 %v756_v41, %v641_v12  ;;  %1006 = vmatmul.f32.gmra.mxu0 %v6067_v39  ;;  %1095 = vmatmul.f32.gmra.mxu1 %v6034_v48 }
 0x10c   : > { %1397 = vmatmul.f32.gmra.mxu3 %v6067_v39 }
 0x10d   : > { %1240 = vmatmul.f32.gmra.mxu2 %v8507_v6  ;;  %v6302_v28 = vadd.f32 %v876_v40, %v757_v2 }
 0x10f   : > { %v882_v17 = vpop.f32.mrf.mxu3 }
 0x110   : > { %v495_v18 = vpop.f32.mrf.mxu0  ;;  %v644_v3 = vpop.f32.mrf.mxu1 }
 0x111   : > { %v645_v50 = vadd.f32 %v644_v3, %v487_v25  ;;  %v761_v62 = vpop.f32.mrf.mxu2  ;;  %v1966_v25 = vld [vmem:[#allocation3 + $0xe0] sm:$0xff] }
 0x112   : > { %v6328_v2 = vand.u32 4294901760, %v1966_v25 }
 0x113   : > { %v762_v37 = vadd.f32 %v761_v62, %v645_v50  ;;  %1010 = vmatmul.f32.gmra.mxu0 %v6100_v9  ;;  %1099 = vmatmul.f32.gmra.mxu1 %v6067_v39 }
 0x114   : > { %1401 = vmatmul.f32.gmra.mxu3 %v6100_v9  ;;  %2030 = vmatpush.msrb.mxu0 %v6328_v2 }
 0x115   : > { %1248 = vmatmul.f32.gmra.mxu2 %v6150_v60  ;;  %v6308_v22 = vadd.f32 %v882_v17, %v762_v37  ;;  %v8257_v60 = vand.u32 4294901760, %v6313_v44  ;;  %2481 = vmatpush.msrb.mxu3 %v6328_v2 }
 0x117   : > { %v888_v56 = vpop.f32.mrf.mxu3  ;;  %v2191_v51 = vsub.f32 %v6313_v44, %v8257_v60 }
 0x118   : > { %v503_v32 = vpop.f32.mrf.mxu0  ;;  %v648_v27 = vpop.f32.mrf.mxu1 }
 0x119   : > { %v649_v43 = vadd.f32 %v648_v27, %v495_v18  ;;  %v766_v33 = vpop.f32.mrf.mxu2  ;;  %v2192_v41 = vand.u32 4294901760, %v2191_v51  ;;  %v6331_v18 = vsub.f32 %v1966_v25, %v6328_v2 }
 0x11b   : > { %v767_v52 = vadd.f32 %v766_v33, %v649_v43  ;;  %1014 = vmatmul.f32.gmra.mxu0 %v6125_v13  ;;  %1103 = vmatmul.f32.gmra.mxu1 %v6100_v9  ;;  %v8255_v3 = vand.u32 4294901760, %v6331_v18 }
 0x11c   : > { %1405 = vmatmul.f32.gmra.mxu3 %v6125_v13  ;;  %2193 = vmatpush.msrb.mxu1 %v2192_v41  ;;  %v1962_v41 = vld [vmem:[#allocation3 + $0xc0] sm:$0xff] }
 0x11d   : > { %1256 = vmatmul.f32.gmra.mxu2 %v6178_v14  ;;  %v6323_v15 = vadd.f32 %v888_v56, %v767_v52  ;;  %v2197_v62 = vsub.f32 %v6331_v18, %v8255_v3  ;;  %v1964_v56 = vld [vmem:[#allocation3 + $0xd0] sm:$0xff] }
 0x11e   : > { %2354 = vmatpush.msrb.mxu2 %v6331_v18  ;;  %v6346_v43 = vand.u32 4294901760, %v1964_v56 }
 0x11f   : > { %v894_v40 = vpop.f32.mrf.mxu3  ;;  %v2198_v27 = vand.u32 4294901760, %v2197_v62  ;;  %v6364_v62 = vand.u32 4294901760, %v1962_v41 }
 0x120   : > { %v511_v16 = vpop.f32.mrf.mxu0  ;;  %v652_v12 = vpop.f32.mrf.mxu1  ;;  %2032 = vmatpush.msrb.mxu0 %v6346_v43  ;;  %2483 = vmatpush.msrb.mxu3 %v6346_v43 }
 0x121   : > { %v653_v6 = vadd.f32 %v652_v12, %v503_v32  ;;  %v771_v17 = vpop.f32.mrf.mxu2  ;;  %2199 = vmatpush.msrb.mxu1 %v2198_v27  ;;  %v8508_v27 = vld [vmem:[#allocation9_spill] sm:$0xff] }
 0x122   : > { %2034 = vmatpush.msrb.mxu0 %v6364_v62  ;;  %2485 = vmatpush.msrb.mxu3 %v6364_v62 }
 0x123   : > { %v772_v14 = vadd.f32 %v771_v17, %v653_v6  ;;  %1018 = vmatmul.f32.gmra.mxu0 %v6155_v31  ;;  %1107 = vmatmul.f32.gmra.mxu1 %v6125_v13 }
 0x124   : > { %1409 = vmatmul.f32.gmra.mxu3 %v6155_v31 }
 0x125   : > { %1264 = vmatmul.f32.gmra.mxu2 %v6205_v63  ;;  %v6341_v50 = vadd.f32 %v894_v40, %v772_v14  ;;  %v6349_v63 = vsub.f32 %v1964_v56, %v6346_v43 }
 0x127   : > { %v900_v37 = vpop.f32.mrf.mxu3  ;;  %2357 = vmatpush.msrb.mxu2 %v6349_v63  ;;  %v8253_v40 = vand.u32 4294901760, %v6349_v63 }
 0x128   : > { %v519_v26 = vpop.f32.mrf.mxu0  ;;  %v656_v32 = vpop.f32.mrf.mxu1 }
 0x129   : > { %v657_v33 = vadd.f32 %v656_v32, %v511_v16  ;;  %v776_v52 = vpop.f32.mrf.mxu2  ;;  %v2203_v16 = vsub.f32 %v6349_v63, %v8253_v40 }
 0x12b   : > { %v777_v51 = vadd.f32 %v776_v52, %v657_v33  ;;  %1022 = vmatmul.f32.gmra.mxu0 %v6183_v10  ;;  %1111 = vmatmul.f32.gmra.mxu1 %v6155_v31  ;;  %v2204_v14 = vand.u32 4294901760, %v2203_v16 }
 0x12c   : > { %1413 = vmatmul.f32.gmra.mxu3 %v6183_v10 }
 0x12d   : > { %1272 = vmatmul.f32.gmra.mxu2 %v6223_v54  ;;  %v6359_v25 = vadd.f32 %v900_v37, %v777_v51  ;;  %2205 = vmatpush.msrb.mxu1 %v2204_v14  ;;  %v6367_v54 = vsub.f32 %v1962_v41, %v6364_v62  ;;  %v1960_v41 = vld [vmem:[#allocation3 + $0xb0] sm:$0xff] }
 0x12f   : > { %v906_v12 = vpop.f32.mrf.mxu3  ;;  %2360 = vmatpush.msrb.mxu2 %v6367_v54  ;;  %v8254_v33 = vand.u32 4294901760, %v6367_v54 }
 0x130   : > { %v660_v6 = vpop.f32.mrf.mxu1  ;;  %v963_v17 = vpop.f32.mrf.mxu0 }
 0x131   : > { %v661_v56 = vadd.f32 %v660_v6, %v519_v26  ;;  %v781_v32 = vpop.f32.mrf.mxu2  ;;  %v2209_v52 = vsub.f32 %v6367_v54, %v8254_v33  ;;  %v964_v51 = vadd.f32 %v963_v17, %v6242_v36  ;;  %v8511_v36 = vld [vmem:[#allocation10_spill] sm:$0xff] }
 0x133   : > { %v782_v37 = vadd.f32 %v781_v32, %v661_v56  ;;  %1115 = vmatmul.f32.gmra.mxu1 %v6183_v10  ;;  %1459 = vmatmul.f32.vlgmr.msra.gmra.mxu0 %v8508_v27  ;;  %v2210_v56 = vand.u32 4294901760, %v2209_v52  ;;  %v6383_v32 = vand.u32 4294901760, %v1960_v41 }
 0x134   : > { %1809 = vmatmul.f32.vlgmr.msra.gmra.mxu3 %v5655_v53 }
 0x135   : > { %1716 = vmatmul.f32.vlgmr.msra.gmra.mxu2 %v5655_v53  ;;  %v6377_v26 = vadd.f32 %v906_v12, %v782_v37  ;;  %2211 = vmatpush.msrb.mxu1 %v2210_v56  ;;  %v6390_v12 = vsub.f32 %v1960_v41, %v6383_v32  ;;  %v8510_v37 = vld [vmem:[#allocation11_spill] sm:$0xff]  ;;  %v1958_v41 = vld [vmem:[#allocation3 + $0xa0] sm:$0xff] }
 0x136   : > { %2036 = vmatpush.msrb.mxu0 %v6383_v32  ;;  %2487 = vmatpush.msrb.mxu3 %v6383_v32 }
 0x137   : > { %v1354_v16 = vpop.f32.mrf.mxu3  ;;  %2363 = vmatpush.msrb.mxu2 %v6390_v12  ;;  %v8256_v17 = vand.u32 4294901760, %v6390_v12 }
 0x138   : > { %v967_v6 = vpop.f32.mrf.mxu0  ;;  %v1056_v14 = vpop.f32.mrf.mxu1 }
 0x139   : > { %v6385_v27 = vadd.f32 %v1056_v14, %v964_v51  ;;  %v1153_v53 = vpop.f32.mrf.mxu2  ;;  %v2215_v52 = vsub.f32 %v6390_v12, %v8256_v17  ;;  %v968_v51 = vadd.f32 %v967_v6, %v6248_v0  ;;  %v8513_v17 = vld [vmem:[#allocation13_spill] sm:$0xff]  ;;  %v8514_v0 = vld [vmem:[#allocation12_spill] sm:$0xff] }
 0x13a   : > { %v6387_v40 = vadd.f32 %v1354_v16, %v1153_v53 }
 0x13b   : > { %1464 = vmatmul.f32.gmra.mxu0 %v8510_v37  ;;  %1569 = vmatmul.f32.vlgmr.msra.gmra.mxu1 %v8511_v36  ;;  %v2216_v53 = vand.u32 4294901760, %v2215_v52  ;;  %v6404_v37 = vand.u32 4294901760, %v1958_v41 }
 0x13c   : > { %8509 = vst [vmem:[#allocation33_spill] sm:$0xff] %v6387_v40  ;;  %1813 = vmatmul.f32.gmra.mxu3 %v5694_v8 }
 0x13d   : > { %1720 = vmatmul.f32.gmra.mxu2 %v5694_v8  ;;  %2217 = vmatpush.msrb.mxu1 %v2216_v53  ;;  %v6411_v8 = vsub.f32 %v1958_v41, %v6404_v37 }
 0x13e   : > { %2038 = vmatpush.msrb.mxu0 %v6404_v37  ;;  %2489 = vmatpush.msrb.mxu3 %v6404_v37 }
 0x13f   : > { %v1358_v16 = vpop.f32.mrf.mxu3  ;;  %2366 = vmatpush.msrb.mxu2 %v6411_v8  ;;  %v8258_v6 = vand.u32 4294901760, %v6411_v8 }
 0x140   : > { %v971_v14 = vpop.f32.mrf.mxu0  ;;  %v1060_v56 = vpop.f32.mrf.mxu1 }
 0x141   : > { %v6406_v36 = vadd.f32 %v1060_v56, %v968_v51  ;;  %v1161_v33 = vpop.f32.mrf.mxu2  ;;  %v972_v52 = vadd.f32 %v971_v14, %v6254_v57  ;;  %v8517_v57 = vld [vmem:[#allocation14_spill] sm:$0xff] }
 0x142   : > { %v6408_v3 = vadd.f32 %v1358_v16, %v1161_v33  ;;  %v2221_v33 = vsub.f32 %v6411_v8, %v8258_v6  ;;  %v8516_v6 = vld [vmem:[#allocation15_spill] sm:$0xff] }
 0x143   : > { %1469 = vmatmul.f32.gmra.mxu0 %v8513_v17  ;;  %1575 = vmatmul.f32.gmra.mxu1 %v8514_v0  ;;  %v1956_v17 = vld [vmem:[#allocation3 + $0x90] sm:$0xff] }
 0x144   : > { %8512 = vst [vmem:[#allocation9_spill] sm:$0xff] %v6408_v3  ;;  %1817 = vmatmul.f32.gmra.mxu3 %v5744_v59  ;;  %v2222_v56 = vand.u32 4294901760, %v2221_v33  ;;  %v6425_v53 = vand.u32 4294901760, %v1956_v17 }
 0x145   : > { %1724 = vmatmul.f32.gmra.mxu2 %v5744_v59 }
 0x146   : > { %2223 = vmatpush.msrb.mxu1 %v2222_v56  ;;  %v6432_v59 = vsub.f32 %v1956_v17, %v6425_v53  ;;  %2040 = vmatpush.msrb.mxu0 %v6425_v53 }
 0x147   : > { %v1362_v51 = vpop.f32.mrf.mxu3  ;;  %2491 = vmatpush.msrb.mxu3 %v6425_v53 }
 0x148   : > { %v975_v16 = vpop.f32.mrf.mxu0  ;;  %v1064_v41 = vpop.f32.mrf.mxu1  ;;  %2369 = vmatpush.msrb.mxu2 %v6432_v59  ;;  %v8259_v14 = vand.u32 4294901760, %v6432_v59 }
 0x149   : > { %v6427_v0 = vadd.f32 %v1064_v41, %v972_v52  ;;  %v1169_v60 = vpop.f32.mrf.mxu2  ;;  %v976_v33 = vadd.f32 %v975_v16, %v6260_v34  ;;  %v8521_v34 = vld [vmem:[#allocation16_spill] sm:$0xff] }
 0x14a   : > { %v6429_v3 = vadd.f32 %v1362_v51, %v1169_v60  ;;  %v2227_v60 = vsub.f32 %v6432_v59, %v8259_v14  ;;  %v8520_v14 = vld [vmem:[#allocation17_spill] sm:$0xff] }
 0x14b   : > { %1474 = vmatmul.f32.gmra.mxu0 %v8516_v6  ;;  %1581 = vmatmul.f32.gmra.mxu1 %v8517_v57  ;;  %v1954_v6 = vld [vmem:[#allocation3 + $0x80] sm:$0xff] }
 0x14c   : > { %8515 = vst [vmem:[#allocation11_spill] sm:$0xff] %v6429_v3  ;;  %1821 = vmatmul.f32.gmra.mxu3 %v5793_v21  ;;  %v2228_v41 = vand.u32 4294901760, %v2227_v60  ;;  %v6446_v56 = vand.u32 4294901760, %v1954_v6 }
 0x14d   : > { %1728 = vmatmul.f32.gmra.mxu2 %v5793_v21 }
 0x14e   : > { %2229 = vmatpush.msrb.mxu1 %v2228_v41  ;;  %v6453_v21 = vsub.f32 %v1954_v6, %v6446_v56  ;;  %2042 = vmatpush.msrb.mxu0 %v6446_v56 }
 0x14f   : > { %v1366_v52 = vpop.f32.mrf.mxu3  ;;  %2493 = vmatpush.msrb.mxu3 %v6446_v56 }
 0x150   : > { %v979_v51 = vpop.f32.mrf.mxu0  ;;  %v1068_v17 = vpop.f32.mrf.mxu1  ;;  %2372 = vmatpush.msrb.mxu2 %v6453_v21  ;;  %v8261_v16 = vand.u32 4294901760, %v6453_v21 }
 0x151   : > { %v6448_v57 = vadd.f32 %v1068_v17, %v976_v33  ;;  %v1177_v3 = vpop.f32.mrf.mxu2  ;;  %v980_v60 = vadd.f32 %v979_v51, %v6266_v20  ;;  %v8525_v20 = vld [vmem:[#allocation18_spill] sm:$0xff] }
 0x152   : > { %v6450_v40 = vadd.f32 %v1366_v52, %v1177_v3  ;;  %v2233_v3 = vsub.f32 %v6453_v21, %v8261_v16  ;;  %v8524_v16 = vld [vmem:[#allocation19_spill] sm:$0xff] }
 0x153   : > { %8518 = vst [vmem:[#allocation10_spill] sm:$0xff] %v6448_v57  ;;  %1479 = vmatmul.f32.gmra.mxu0 %v8520_v14  ;;  %1587 = vmatmul.f32.gmra.mxu1 %v8521_v34  ;;  %v1952_v14 = vld [vmem:[#allocation3 + $0x70] sm:$0xff] }
 0x154   : > { %8519 = vst [vmem:[#allocation13_spill] sm:$0xff] %v6450_v40  ;;  %1825 = vmatmul.f32.gmra.mxu3 %v5828_v45  ;;  %v2234_v17 = vand.u32 4294901760, %v2233_v3  ;;  %v6467_v41 = vand.u32 4294901760, %v1952_v14 }
 0x155   : > { %1732 = vmatmul.f32.gmra.mxu2 %v5828_v45 }
 0x156   : > { %2235 = vmatpush.msrb.mxu1 %v2234_v17  ;;  %v6474_v45 = vsub.f32 %v1952_v14, %v6467_v41  ;;  %2044 = vmatpush.msrb.mxu0 %v6467_v41 }
 0x157   : > { %v1370_v33 = vpop.f32.mrf.mxu3  ;;  %2495 = vmatpush.msrb.mxu3 %v6467_v41 }
 0x158   : > { %v983_v52 = vpop.f32.mrf.mxu0  ;;  %v1072_v6 = vpop.f32.mrf.mxu1  ;;  %2375 = vmatpush.msrb.mxu2 %v6474_v45  ;;  %v8263_v51 = vand.u32 4294901760, %v6474_v45 }
 0x159   : > { %v6469_v34 = vadd.f32 %v1072_v6, %v980_v60  ;;  %v1185_v40 = vpop.f32.mrf.mxu2  ;;  %v984_v3 = vadd.f32 %v983_v52, %v6272_v58  ;;  %v8529_v58 = vld [vmem:[#allocation20_spill] sm:$0xff] }
 0x15a   : > { %v6471_v57 = vadd.f32 %v1370_v33, %v1185_v40  ;;  %v2239_v40 = vsub.f32 %v6474_v45, %v8263_v51  ;;  %v8528_v51 = vld [vmem:[#allocation21_spill] sm:$0xff] }
 0x15b   : > { %8522 = vst [vmem:[#allocation12_spill] sm:$0xff] %v6469_v34  ;;  %1484 = vmatmul.f32.gmra.mxu0 %v8524_v16  ;;  %1593 = vmatmul.f32.gmra.mxu1 %v8525_v20  ;;  %v1950_v16 = vld [vmem:[#allocation3 + $0x60] sm:$0xff] }
 0x15c   : > { %8523 = vst [vmem:[#allocation15_spill] sm:$0xff] %v6471_v57  ;;  %1829 = vmatmul.f32.gmra.mxu3 %v5863_v61  ;;  %v2240_v6 = vand.u32 4294901760, %v2239_v40  ;;  %v6488_v17 = vand.u32 4294901760, %v1950_v16 }
 0x15d   : > { %1736 = vmatmul.f32.gmra.mxu2 %v5863_v61 }
 0x15e   : > { %2241 = vmatpush.msrb.mxu1 %v2240_v6  ;;  %v6495_v61 = vsub.f32 %v1950_v16, %v6488_v17  ;;  %2046 = vmatpush.msrb.mxu0 %v6488_v17 }
 0x15f   : > { %v1374_v60 = vpop.f32.mrf.mxu3  ;;  %2497 = vmatpush.msrb.mxu3 %v6488_v17 }
 0x160   : > { %v987_v33 = vpop.f32.mrf.mxu0  ;;  %v1076_v14 = vpop.f32.mrf.mxu1  ;;  %2378 = vmatpush.msrb.mxu2 %v6495_v61  ;;  %v8265_v52 = vand.u32 4294901760, %v6495_v61 }
 0x161   : > { %v6490_v20 = vadd.f32 %v1076_v14, %v984_v3  ;;  %v1193_v57 = vpop.f32.mrf.mxu2  ;;  %v988_v40 = vadd.f32 %v987_v33, %v6278_v55  ;;  %v8533_v55 = vld [vmem:[#allocation22_spill] sm:$0xff] }
 0x162   : > { %v6492_v34 = vadd.f32 %v1374_v60, %v1193_v57  ;;  %v2245_v57 = vsub.f32 %v6495_v61, %v8265_v52  ;;  %v8532_v52 = vld [vmem:[#allocation23_spill] sm:$0xff] }
 0x163   : > { %8526 = vst [vmem:[#allocation14_spill] sm:$0xff] %v6490_v20  ;;  %1489 = vmatmul.f32.gmra.mxu0 %v8528_v51  ;;  %1599 = vmatmul.f32.gmra.mxu1 %v8529_v58  ;;  %v1948_v51 = vld [vmem:[#allocation3 + $0x50] sm:$0xff] }
 0x164   : > { %8527 = vst [vmem:[#allocation17_spill] sm:$0xff] %v6492_v34  ;;  %1833 = vmatmul.f32.gmra.mxu3 %v5900_v47  ;;  %v2246_v14 = vand.u32 4294901760, %v2245_v57  ;;  %v6509_v6 = vand.u32 4294901760, %v1948_v51 }
 0x165   : > { %1740 = vmatmul.f32.gmra.mxu2 %v5900_v47 }
 0x166   : > { %2247 = vmatpush.msrb.mxu1 %v2246_v14  ;;  %v6516_v47 = vsub.f32 %v1948_v51, %v6509_v6  ;;  %2048 = vmatpush.msrb.mxu0 %v6509_v6 }
 0x167   : > { %v1378_v3 = vpop.f32.mrf.mxu3  ;;  %2499 = vmatpush.msrb.mxu3 %v6509_v6 }
 0x168   : > { %v991_v60 = vpop.f32.mrf.mxu0  ;;  %v1080_v16 = vpop.f32.mrf.mxu1  ;;  %2381 = vmatpush.msrb.mxu2 %v6516_v47  ;;  %v8267_v33 = vand.u32 4294901760, %v6516_v47 }
 0x169   : > { %v6511_v58 = vadd.f32 %v1080_v16, %v988_v40  ;;  %v1201_v34 = vpop.f32.mrf.mxu2  ;;  %v992_v57 = vadd.f32 %v991_v60, %v6284_v1  ;;  %v8537_v1 = vld [vmem:[#allocation24_spill] sm:$0xff] }
 0x16a   : > { %v6513_v20 = vadd.f32 %v1378_v3, %v1201_v34  ;;  %v2251_v34 = vsub.f32 %v6516_v47, %v8267_v33  ;;  %v8536_v33 = vld [vmem:[#allocation25_spill] sm:$0xff] }
 0x16b   : > { %8530 = vst [vmem:[#allocation16_spill] sm:$0xff] %v6511_v58  ;;  %1494 = vmatmul.f32.gmra.mxu0 %v8532_v52  ;;  %1605 = vmatmul.f32.gmra.mxu1 %v8533_v55  ;;  %v1946_v52 = vld [vmem:[#allocation3 + $0x40] sm:$0xff] }
 0x16c   : > { %8531 = vst [vmem:[#allocation19_spill] sm:$0xff] %v6513_v20  ;;  %1837 = vmatmul.f32.gmra.mxu3 %v5940_v23  ;;  %v2252_v16 = vand.u32 4294901760, %v2251_v34  ;;  %v6530_v14 = vand.u32 4294901760, %v1946_v52 }
 0x16d   : > { %1744 = vmatmul.f32.gmra.mxu2 %v5940_v23 }
 0x16e   : > { %2253 = vmatpush.msrb.mxu1 %v2252_v16  ;;  %v6537_v23 = vsub.f32 %v1946_v52, %v6530_v14  ;;  %2050 = vmatpush.msrb.mxu0 %v6530_v14 }
 0x16f   : > { %v1382_v40 = vpop.f32.mrf.mxu3  ;;  %2501 = vmatpush.msrb.mxu3 %v6530_v14 }
 0x170   : > { %v995_v3 = vpop.f32.mrf.mxu0  ;;  %v1084_v51 = vpop.f32.mrf.mxu1  ;;  %2384 = vmatpush.msrb.mxu2 %v6537_v23  ;;  %v8269_v60 = vand.u32 4294901760, %v6537_v23 }
 0x171   : > { %v6532_v55 = vadd.f32 %v1084_v51, %v992_v57  ;;  %v1209_v20 = vpop.f32.mrf.mxu2  ;;  %v996_v34 = vadd.f32 %v995_v3, %v6290_v11  ;;  %v8541_v11 = vld [vmem:[#allocation26_spill] sm:$0xff] }
 0x172   : > { %v6534_v58 = vadd.f32 %v1382_v40, %v1209_v20  ;;  %v2257_v20 = vsub.f32 %v6537_v23, %v8269_v60  ;;  %v8540_v60 = vld [vmem:[#allocation27_spill] sm:$0xff] }
 0x173   : > { %8534 = vst [vmem:[#allocation18_spill] sm:$0xff] %v6532_v55  ;;  %1499 = vmatmul.f32.gmra.mxu0 %v8536_v33  ;;  %1611 = vmatmul.f32.gmra.mxu1 %v8537_v1  ;;  %v1944_v33 = vld [vmem:[#allocation3 + $0x30] sm:$0xff] }
 0x174   : > { %8535 = vst [vmem:[#allocation21_spill] sm:$0xff] %v6534_v58  ;;  %1841 = vmatmul.f32.gmra.mxu3 %v5976_v29  ;;  %v2258_v51 = vand.u32 4294901760, %v2257_v20  ;;  %v6551_v16 = vand.u32 4294901760, %v1944_v33 }
 0x175   : > { %1748 = vmatmul.f32.gmra.mxu2 %v5976_v29 }
 0x176   : > { %2259 = vmatpush.msrb.mxu1 %v2258_v51  ;;  %v6558_v29 = vsub.f32 %v1944_v33, %v6551_v16  ;;  %2052 = vmatpush.msrb.mxu0 %v6551_v16 }
 0x177   : > { %v1386_v57 = vpop.f32.mrf.mxu3  ;;  %2503 = vmatpush.msrb.mxu3 %v6551_v16 }
 0x178   : > { %v999_v40 = vpop.f32.mrf.mxu0  ;;  %v1088_v52 = vpop.f32.mrf.mxu1  ;;  %2387 = vmatpush.msrb.mxu2 %v6558_v29  ;;  %v8271_v3 = vand.u32 4294901760, %v6558_v29 }
 0x179   : > { %v6553_v1 = vadd.f32 %v1088_v52, %v996_v34  ;;  %v1217_v58 = vpop.f32.mrf.mxu2  ;;  %v1000_v20 = vadd.f32 %v999_v40, %v6296_v30  ;;  %v8545_v30 = vld [vmem:[#allocation28_spill] sm:$0xff] }
 0x17a   : > { %v6555_v55 = vadd.f32 %v1386_v57, %v1217_v58  ;;  %v2263_v58 = vsub.f32 %v6558_v29, %v8271_v3  ;;  %v8544_v3 = vld [vmem:[#allocation29_spill] sm:$0xff] }
 0x17b   : > { %8538 = vst [vmem:[#allocation20_spill] sm:$0xff] %v6553_v1  ;;  %1504 = vmatmul.f32.gmra.mxu0 %v8540_v60  ;;  %1617 = vmatmul.f32.gmra.mxu1 %v8541_v11  ;;  %v1942_v60 = vld [vmem:[#allocation3 + $0x20] sm:$0xff] }
 0x17c   : > { %8539 = vst [vmem:[#allocation23_spill] sm:$0xff] %v6555_v55  ;;  %1845 = vmatmul.f32.gmra.mxu3 %v6005_v5  ;;  %v2264_v52 = vand.u32 4294901760, %v2263_v58  ;;  %v6572_v51 = vand.u32 4294901760, %v1942_v60 }
 0x17d   : > { %1752 = vmatmul.f32.gmra.mxu2 %v6005_v5 }
 0x17e   : > { %2265 = vmatpush.msrb.mxu1 %v2264_v52  ;;  %v6579_v5 = vsub.f32 %v1942_v60, %v6572_v51  ;;  %2054 = vmatpush.msrb.mxu0 %v6572_v51 }
 0x17f   : > { %v1390_v34 = vpop.f32.mrf.mxu3  ;;  %2505 = vmatpush.msrb.mxu3 %v6572_v51 }
 0x180   : > { %v1003_v57 = vpop.f32.mrf.mxu0  ;;  %v1092_v33 = vpop.f32.mrf.mxu1  ;;  %2390 = vmatpush.msrb.mxu2 %v6579_v5  ;;  %v8273_v40 = vand.u32 4294901760, %v6579_v5 }
 0x181   : > { %v6574_v11 = vadd.f32 %v1092_v33, %v1000_v20  ;;  %v1225_v55 = vpop.f32.mrf.mxu2  ;;  %v1004_v58 = vadd.f32 %v1003_v57, %v6302_v28  ;;  %v8549_v28 = vld [vmem:[#allocation30_spill] sm:$0xff] }
 0x182   : > { %v6576_v1 = vadd.f32 %v1390_v34, %v1225_v55  ;;  %v2269_v55 = vsub.f32 %v6579_v5, %v8273_v40  ;;  %v8548_v40 = vld [vmem:[#allocation31_spill] sm:$0xff] }
 0x183   : > { %8542 = vst [vmem:[#allocation22_spill] sm:$0xff] %v6574_v11  ;;  %1509 = vmatmul.f32.gmra.mxu0 %v8544_v3  ;;  %1623 = vmatmul.f32.gmra.mxu1 %v8545_v30  ;;  %v1940_v3 = vld [vmem:[#allocation3 + $0x10] sm:$0xff] }
 0x184   : > { %8543 = vst [vmem:[#allocation25_spill] sm:$0xff] %v6576_v1  ;;  %1849 = vmatmul.f32.gmra.mxu3 %v6034_v48  ;;  %v2270_v33 = vand.u32 4294901760, %v2269_v55  ;;  %v6593_v52 = vand.u32 4294901760, %v1940_v3 }
 0x185   : > { %1756 = vmatmul.f32.gmra.mxu2 %v6034_v48 }
 0x186   : > { %2271 = vmatpush.msrb.mxu1 %v2270_v33  ;;  %v6600_v48 = vsub.f32 %v1940_v3, %v6593_v52  ;;  %2056 = vmatpush.msrb.mxu0 %v6593_v52 }
 0x187   : > { %v1394_v20 = vpop.f32.mrf.mxu3  ;;  %2507 = vmatpush.msrb.mxu3 %v6593_v52 }
 0x188   : > { %v1007_v34 = vpop.f32.mrf.mxu0  ;;  %v1096_v60 = vpop.f32.mrf.mxu1  ;;  %2393 = vmatpush.msrb.mxu2 %v6600_v48  ;;  %v8275_v57 = vand.u32 4294901760, %v6600_v48 }
 0x189   : > { %v6595_v30 = vadd.f32 %v1096_v60, %v1004_v58  ;;  %v1233_v1 = vpop.f32.mrf.mxu2  ;;  %v1008_v55 = vadd.f32 %v1007_v34, %v6308_v22  ;;  %v8552_v22 = vld [vmem:[#allocation32_spill] sm:$0xff] }
 0x18a   : > { %v6597_v11 = vadd.f32 %v1394_v20, %v1233_v1  ;;  %v2275_v1 = vsub.f32 %v6600_v48, %v8275_v57 }
 0x18b   : > { %8546 = vst [vmem:[#allocation24_spill] sm:$0xff] %v6595_v30  ;;  %1514 = vmatmul.f32.gmra.mxu0 %v8548_v40  ;;  %1629 = vmatmul.f32.gmra.mxu1 %v8549_v28  ;;  %v1938_v40 = vld [vmem:[#allocation3] sm:$0xff] }
 0x18c   : > { %8547 = vst [vmem:[#allocation27_spill] sm:$0xff] %v6597_v11  ;;  %1853 = vmatmul.f32.gmra.mxu3 %v6067_v39  ;;  %v2276_v60 = vand.u32 4294901760, %v2275_v1  ;;  %v6614_v33 = vand.u32 4294901760, %v1938_v40  ;;  %v8553_v1 = vand.u32 4294901760, %v6313_v44 }
 0x18d   : > { %1760 = vmatmul.f32.gmra.mxu2 %v6067_v39 }
 0x18e   : > { %2277 = vmatpush.msrb.mxu1 %v2276_v60  ;;  %v6621_v39 = vsub.f32 %v1938_v40, %v6614_v33  ;;  %2058 = vmatpush.msrb.mxu0 %v6614_v33 }
 0x18f   : > { %v1398_v58 = vpop.f32.mrf.mxu3  ;;  %2509 = vmatpush.msrb.mxu3 %v6614_v33 }
 0x190   : > { %v1011_v20 = vpop.f32.mrf.mxu0  ;;  %v1100_v3 = vpop.f32.mrf.mxu1  ;;  %2396 = vmatpush.msrb.mxu2 %v6621_v39  ;;  %v2280_v34 = vand.u32 4294901760, %v6621_v39  ;;  %2610 = vmatpush.msra.mxu0 %v8553_v1 }
 0x191   : > { %v6616_v28 = vadd.f32 %v1100_v3, %v1008_v55  ;;  %v1241_v11 = vpop.f32.mrf.mxu2 }
 0x192   : > { %v6618_v30 = vadd.f32 %v1398_v58, %v1241_v11  ;;  %v2281_v11 = vsub.f32 %v6621_v39, %v2280_v34  ;;  %v1976_v58 = vld [vmem:[#allocation3 + $0x130] sm:$0xff] }
 0x193   : > { %8550 = vst [vmem:[#allocation26_spill] sm:$0xff] %v6616_v28  ;;  %1519 = vmatmul.f32.gmra.mxu0 %v6110_v4  ;;  %1635 = vmatmul.f32.gmra.mxu1 %v8552_v22  ;;  %v1012_v4 = vadd.f32 %v1011_v20, %v6323_v15  ;;  %v6637_v22 = vand.u32 4294901760, %v1976_v58  ;;  %v8555_v15 = vand.u32 4294901760, %v6349_v63  ;;  %v6665_v63 = vand.u32 4294901760, %v6385_v27 }
 0x194   : > { %8551 = vst [vmem:[#allocation29_spill] sm:$0xff] %v6618_v30  ;;  %1857 = vmatmul.f32.gmra.mxu3 %v6100_v9  ;;  %v2282_v60 = vand.u32 4294901760, %v2281_v11 }
 0x195   : > { %1764 = vmatmul.f32.gmra.mxu2 %v6100_v9  ;;  %v8554_v9 = vand.u32 4294901760, %v6331_v18  ;;  %v6649_v44 = vsub.f32 %v1976_v58, %v6637_v22  ;;  %8557 = vst [vmem:[#allocation28_spill] sm:$0xff] %v6665_v63 }
 0x196   : > { %2283 = vmatpush.msrb.mxu1 %v2282_v60  ;;  %2846 = vmatpush.msra.mxu2 %v6637_v22 }
 0x197   : > { %v1402_v55 = vpop.f32.mrf.mxu3  ;;  %2614 = vmatpush.msra.mxu0 %v8554_v9 }
 0x198   : > { %v1015_v40 = vpop.f32.mrf.mxu0  ;;  %v1104_v3 = vpop.f32.mrf.mxu1  ;;  %2737 = vmatpush.msra.mxu1 %v6310_v24 }
 0x199   : > { %v6641_v57 = vadd.f32 %v1104_v3, %v1012_v4  ;;  %v1249_v30 = vpop.f32.mrf.mxu2  ;;  %2618 = vmatpush.msra.mxu0 %v8555_v15  ;;  %v1016_v18 = vadd.f32 %v1015_v40, %v6341_v50  ;;  %v8558_v50 = vand.u32 4294901760, %v6390_v12  ;;  %v8560_v12 = vand.u32 4294901760, %v6411_v8  ;;  %v1974_v15 = vld [vmem:[#allocation3 + $0x120] sm:$0xff] }
 0x19a   : > { %v6643_v28 = vadd.f32 %v1402_v55, %v1249_v30  ;;  %2739 = vmatpush.msra.mxu1 %v6328_v2  ;;  %v8561_v55 = vand.u32 4294901760, %v6432_v59  ;;  %v6697_v8 = vand.u32 4294901760, %v6406_v36  ;;  %v8569_v40 = vand.u32 4294901760, %v6516_v47 }
 0x19b   : > { %1524 = vmatmul.f32.gmra.mxu0 %v6141_v49  ;;  %1641 = vmatmul.f32.gmra.mxu1 %v6123_v42  ;;  %v8279_v49 = vand.u32 4294901760, %v6649_v44  ;;  %v8556_v42 = vand.u32 4294901760, %v6367_v54  ;;  %v6682_v54 = vsub.f32 %v6385_v27, %v6665_v63 }
 0x19c   : > { %1861 = vmatmul.f32.gmra.mxu3 %v6125_v13  ;;  %2741 = vmatpush.msra.mxu1 %v6346_v43  ;;  %8563 = vst [vmem:[#allocation32_spill] sm:$0xff] %v6697_v8 }
 0x19d   : > { %1768 = vmatmul.f32.gmra.mxu2 %v6125_v13  ;;  %2622 = vmatpush.msra.mxu0 %v8556_v42  ;;  %v2997_v2 = vsub.f32 %v6649_v44, %v8279_v49  ;;  %8559 = vst [vmem:[#allocation31_spill] sm:$0xff] %v6682_v54  ;;  %v6694_v27 = vand.u32 4294901760, %v6682_v54  ;;  %v6758_v42 = vand.u32 4294901760, %v1974_v15 }
 0x19e   : > { %2743 = vmatpush.msra.mxu1 %v6364_v62 }
 0x19f   : > { %v1406_v30 = vpop.f32.mrf.mxu3  ;;  %2626 = vmatpush.msra.mxu0 %v8558_v50  ;;  %v2998_v43 = vand.u32 4294901760, %v2997_v2  ;;  %8562 = vst [vmem:[#allocation30_spill] sm:$0xff] %v6694_v27  ;;  %v2062_v59 = vsub.f32 %v6682_v54, %v6694_v27  ;;  %v8581_v2 = vand.u32 4294901760, %v6600_v48  ;;  %2848 = vmatpush.msra.mxu2 %v6758_v42  ;;  %v8583_v50 = vld [vmem:[#allocation9_spill] sm:$0xff]  ;;  %v6788_v39 = vsub.f32 %v1974_v15, %v6758_v42  ;;  %v8592_v15 = vld [vmem:[#allocation14_spill] sm:$0xff] }
 0x1a0   : > { %v1019_v20 = vpop.f32.mrf.mxu0  ;;  %v1108_v11 = vpop.f32.mrf.mxu1  ;;  %2745 = vmatpush.msra.mxu1 %v6383_v32 }
 0x1a1   : > { %v6662_v24 = vadd.f32 %v1108_v11, %v1016_v18  ;;  %v1257_v13 = vpop.f32.mrf.mxu2  ;;  %2999 = vmatpush.msra.mxu3 %v2998_v43  ;;  %2630 = vmatpush.msra.mxu0 %v8560_v12  ;;  %v8576_v18 = vand.u32 4294901760, %v6579_v5 }
 0x1a2   : > { %v6672_v1 = vadd.f32 %v1406_v30, %v1257_v13  ;;  %2747 = vmatpush.msra.mxu1 %v6404_v37 }
 0x1a3   : > { %1529 = vmatmul.f32.gmra.mxu0 %v6168_v35  ;;  %1647 = vmatmul.f32.gmra.mxu1 %v6153_v38  ;;  %v1020_v35 = vadd.f32 %v1019_v20, %v6359_v25  ;;  %v8564_v25 = vand.u32 4294901760, %v6453_v21  ;;  %v6714_v21 = vsub.f32 %v6406_v36, %v6697_v8 }
 0x1a4   : > { %1865 = vmatmul.f32.gmra.mxu3 %v6155_v31  ;;  %2634 = vmatpush.msra.mxu0 %v8561_v55  ;;  %v8586_v55 = vld [vmem:[#allocation12_spill] sm:$0xff] }
 0x1a5   : > { %1772 = vmatmul.f32.gmra.mxu2 %v6155_v31  ;;  %2749 = vmatpush.msra.mxu1 %v6425_v53  ;;  %v8565_v53 = vand.u32 4294901760, %v6474_v45  ;;  %8566 = vst [vmem:[#allocation34_spill] sm:$0xff] %v6714_v21 }
 0x1a6   : > { %2638 = vmatpush.msra.mxu0 %v8564_v25  ;;  %v8278_v25 = vand.u32 4294901760, %v6788_v39 }
 0x1a7   : > { %v1410_v38 = vpop.f32.mrf.mxu3  ;;  %2751 = vmatpush.msra.mxu1 %v6446_v56 }
 0x1a8   : > { %v1023_v62 = vpop.f32.mrf.mxu0  ;;  %v1112_v4 = vpop.f32.mrf.mxu1  ;;  %2642 = vmatpush.msra.mxu0 %v8565_v53 }
 0x1a9   : > { %v6691_v31 = vadd.f32 %v1112_v4, %v1020_v35  ;;  %v1265_v32 = vpop.f32.mrf.mxu2  ;;  %2753 = vmatpush.msra.mxu1 %v6467_v41  ;;  %v6728_v41 = vand.u32 4294901760, %v2062_v59  ;;  %v3003_v59 = vsub.f32 %v6788_v39, %v8278_v25  ;;  %v8616_v25 = vld [vmem:[#allocation22_spill] sm:$0xff] }
 0x1aa   : > { %v6699_v37 = vadd.f32 %v1410_v38, %v1265_v32  ;;  %v6797_v32 = vand.u32 4294901760, %v8586_v55  ;;  %v6914_v49 = vand.u32 4294901760, %v8616_v25 }
 0x1ab   : > { %1534 = vmatmul.f32.gmra.mxu0 %v6196_v19  ;;  %1653 = vmatmul.f32.gmra.mxu1 %v6181_v7  ;;  %v8567_v19 = vand.u32 4294901760, %v6495_v61  ;;  %v1024_v7 = vadd.f32 %v1023_v62, %v6377_v26  ;;  %8570 = vst [vmem:[#allocation36_spill] sm:$0xff] %v6728_v41  ;;  %v6731_v61 = vand.u32 4294901760, %v6714_v21 }
 0x1ac   : > { %1869 = vmatmul.f32.gmra.mxu3 %v6183_v10  ;;  %2755 = vmatpush.msra.mxu1 %v6488_v17  ;;  %v8572_v17 = vand.u32 4294901760, %v6537_v23  ;;  %v8574_v23 = vand.u32 4294901760, %v6558_v29  ;;  %8587 = vst [vmem:[#allocation12_spill] sm:$0xff] %v6797_v32 }
 0x1ad   : > { %1776 = vmatmul.f32.gmra.mxu2 %v6183_v10  ;;  %2646 = vmatpush.msra.mxu0 %v8567_v19  ;;  %v6722_v10 = vand.u32 4294901760, %v6427_v0  ;;  %8571 = vst [vmem:[#allocation37_spill] sm:$0xff] %v6731_v61 }
 0x1ae   : > { %2757 = vmatpush.msra.mxu1 %v6509_v6  ;;  %v2070_v6 = vsub.f32 %v6714_v21, %v6731_v61  ;;  %8617 = vst [vmem:[#allocation22_spill] sm:$0xff] %v6914_v49 }
 0x1af   : > { %v1414_v56 = vpop.f32.mrf.mxu3  ;;  %8568 = vst [vmem:[#allocation35_spill] sm:$0xff] %v6722_v10  ;;  %2650 = vmatpush.msra.mxu0 %v8569_v40  ;;  %v6743_v47 = vsub.f32 %v6427_v0, %v6722_v10 }
 0x1b0   : > { %v1116_v45 = vpop.f32.mrf.mxu1  ;;  %v1460_v58 = vpop.f32.mrf.mxu0  ;;  %2759 = vmatpush.msra.mxu1 %v6530_v14  ;;  %v6761_v11 = vand.u32 4294901760, %v2070_v6 }
 0x1b1   : > { %v6726_v36 = vadd.f32 %v1116_v45, %v1024_v7  ;;  %v1273_v3 = vpop.f32.mrf.mxu2  ;;  %2654 = vmatpush.msra.mxu0 %v8572_v17  ;;  %8573 = vst [vmem:[#allocation38_spill] sm:$0xff] %v6743_v47  ;;  %v6756_v14 = vand.u32 4294901760, %v6743_v47  ;;  %v3004_v45 = vand.u32 4294901760, %v3003_v59 }
 0x1b2   : > { %v6734_v26 = vadd.f32 %v1414_v56, %v1273_v3  ;;  %2761 = vmatpush.msra.mxu1 %v6551_v16  ;;  %8578 = vst [vmem:[#allocation39_spill] sm:$0xff] %v6761_v11  ;;  %v8579_v16 = vld [vmem:[#allocation10_spill] sm:$0xff]  ;;  %v6812_v56 = vsub.f32 %v8586_v55, %v6797_v32 }
 0x1b3   : > { %1659 = vmatmul.f32.gmra.mxu1 %v6208_v46  ;;  %2064 = vmatmul.f32.vlgmr.msrb.gmra.mxu0 %v6728_v41  ;;  %v8575_v46 = vld [vmem:[#allocation33_spill] sm:$0xff]  ;;  %v6764_v13 = vand.u32 4294901760, %v8579_v16 }
 0x1b4   : > { %2513 = vmatmul.f32.vlgmr.msrb.gmra.mxu3 %v6694_v27  ;;  %2658 = vmatpush.msra.mxu0 %v8574_v23  ;;  %v1461_v60 = vadd.f32 %v1460_v58, %v8575_v46  ;;  %8577 = vst [vmem:[#allocation33_spill] sm:$0xff] %v6756_v14  ;;  %v8589_v58 = vld [vmem:[#allocation11_spill] sm:$0xff] }
 0x1b5   : > { %2399 = vmatmul.f32.vlgmr.msrb.gmra.mxu2 %v6682_v54  ;;  %2763 = vmatpush.msra.mxu1 %v6572_v51  ;;  %8580 = vst [vmem:[#allocation10_spill] sm:$0xff] %v6764_v13  ;;  %v2078_v51 = vsub.f32 %v6743_v47, %v6756_v14 }
 0x1b6   : > { %2662 = vmatpush.msra.mxu0 %v8576_v18  ;;  %8588 = vst [vmem:[#allocation42_spill] sm:$0xff] %v6812_v56  ;;  %3005 = vmatpush.msra.mxu3 %v3004_v45  ;;  %v6822_v18 = vand.u32 4294901760, %v8592_v15 }
 0x1b7   : > { %v1810_v9 = vpop.f32.mrf.mxu3  ;;  %2765 = vmatpush.msra.mxu1 %v6593_v52  ;;  %v6780_v52 = vsub.f32 %v8579_v16, %v6764_v13  ;;  %v6790_v38 = vand.u32 4294901760, %v2078_v51  ;;  %v8595_v16 = vld [vmem:[#allocation13_spill] sm:$0xff] }
 0x1b8   : > { %v1465_v0 = vpop.f32.mrf.mxu0  ;;  %v1570_v30 = vpop.f32.mrf.mxu1  ;;  %2666 = vmatpush.msra.mxu0 %v8581_v2  ;;  %8593 = vst [vmem:[#allocation14_spill] sm:$0xff] %v6822_v18 }
 0x1b9   : > { %v1571_v29 = vadd.f32 %v1570_v30, %v1461_v60  ;;  %v1717_v20 = vpop.f32.mrf.mxu2  ;;  %8582 = vst [vmem:[#allocation40_spill] sm:$0xff] %v6780_v52  ;;  %2767 = vmatpush.msra.mxu1 %v6614_v33  ;;  %v1466_v43 = vadd.f32 %v1465_v0, %v8583_v50  ;;  %v6794_v4 = vand.u32 4294901760, %v6780_v52  ;;  %v8596_v50 = vld [vmem:[#allocation16_spill] sm:$0xff] }
 0x1ba   : > { %2670 = vmatpush.msra.mxu0 %v2280_v34  ;;  %8584 = vst [vmem:[#allocation9_spill] sm:$0xff] %v6790_v38 }
 0x1bb   : > { %v1718_v5 = vadd.f32 %v1717_v20, %v1571_v29  ;;  %2072 = vmatmul.f32.gmra.mxu0 %v6761_v11  ;;  %2285 = vmatmul.f32.vlgmr.msrb.gmra.mxu1 %v6665_v63  ;;  %8585 = vst [vmem:[#allocation41_spill] sm:$0xff] %v6794_v4  ;;  %v2086_v7 = vsub.f32 %v6780_v52, %v6794_v4 }
 0x1bc   : > { %2519 = vmatmul.f32.gmra.mxu3 %v6731_v61  ;;  %3097 = vmatpush.msrb.mxu0 %v6649_v44  ;;  %v6832_v20 = vsub.f32 %v8592_v15, %v6822_v18 }
 0x1bd   : > { %v1811_v48 = vadd.f32 %v1810_v9, %v1718_v5  ;;  %2404 = vmatmul.f32.gmra.mxu2 %v6714_v21  ;;  %3201 = vmatpush.msrb.mxu1 %v6637_v22  ;;  %v6816_v60 = vand.u32 4294901760, %v2086_v7  ;;  %v6819_v9 = vand.u32 4294901760, %v6812_v56 }
 0x1be   : > { %3100 = vmatpush.msrb.mxu0 %v6788_v39  ;;  %8594 = vst [vmem:[#allocation44_spill] sm:$0xff] %v6832_v20 }
 0x1bf   : > { %1875 = vst.msk [vmem:[#allocation2 + $0x8] sm:$0xff] %vm1874_vm1, %v1811_v48  ;;  %v1814_v12 = vpop.f32.mrf.mxu3  ;;  %3203 = vmatpush.msrb.mxu1 %v6758_v42  ;;  %v2094_v29 = vsub.f32 %v6812_v56, %v6819_v9 }
 0x1c0   : > { %v1470_v34 = vpop.f32.mrf.mxu0  ;;  %v1576_v35 = vpop.f32.mrf.mxu1  ;;  %8590 = vst [vmem:[#allocation11_spill] sm:$0xff] %v6816_v60 }
 0x1c1   : > { %v1577_v62 = vadd.f32 %v1576_v35, %v1466_v43  ;;  %v1721_v33 = vpop.f32.mrf.mxu2  ;;  %v1471_v40 = vadd.f32 %v1470_v34, %v8589_v58  ;;  %8591 = vst [vmem:[#allocation43_spill] sm:$0xff] %v6819_v9  ;;  %v6837_v43 = vand.u32 4294901760, %v8596_v50  ;;  %v6839_v35 = vand.u32 4294901760, %v2094_v29  ;;  %v1972_v58 = vld [vmem:[#allocation3 + $0x110] sm:$0xff] }
 0x1c3   : > { %v1722_v53 = vadd.f32 %v1721_v33, %v1577_v62  ;;  %2080 = vmatmul.f32.gmra.mxu0 %v6790_v38  ;;  %2289 = vmatmul.f32.gmra.mxu1 %v6697_v8  ;;  %8597 = vst [vmem:[#allocation13_spill] sm:$0xff] %v6837_v43  ;;  %v6842_v62 = vand.u32 4294901760, %v6832_v20  ;;  %v6849_v55 = vsub.f32 %v8596_v50, %v6837_v43 }
 0x1c4   : > { %2525 = vmatmul.f32.gmra.mxu3 %v6756_v14  ;;  %8598 = vst [vmem:[#allocation16_spill] sm:$0xff] %v6839_v35 }
 0x1c5   : > { %v1815_v19 = vadd.f32 %v1814_v12, %v1722_v53  ;;  %2409 = vmatmul.f32.gmra.mxu2 %v6743_v47  ;;  %8599 = vst [vmem:[#allocation45_spill] sm:$0xff] %v6842_v62  ;;  %v2102_v59 = vsub.f32 %v6832_v20, %v6842_v62 }
 0x1c6   : > { %8600 = vst [vmem:[#allocation46_spill] sm:$0xff] %v6849_v55 }
 0x1c7   : > { %1877 = vst.msk [vmem:[#allocation2 + $0x18] sm:$0xff] %vm1874_vm1, %v1815_v19  ;;  %v1818_v3 = vpop.f32.mrf.mxu3  ;;  %v8601_v19 = vld [vmem:[#allocation15_spill] sm:$0xff]  ;;  %v6861_v15 = vand.u32 4294901760, %v2102_v59 }
 0x1c8   : > { %v1475_v17 = vpop.f32.mrf.mxu0  ;;  %v1582_v6 = vpop.f32.mrf.mxu1 }
 0x1c9   : > { %v1583_v23 = vadd.f32 %v1582_v6, %v1471_v40  ;;  %v1725_v46 = vpop.f32.mrf.mxu2  ;;  %v1476_v2 = vadd.f32 %v1475_v17, %v8595_v16  ;;  %v6857_v17 = vand.u32 4294901760, %v6849_v55  ;;  %v6859_v6 = vand.u32 4294901760, %v1972_v58  ;;  %8603 = vst [vmem:[#allocation47_spill] sm:$0xff] %v6861_v15 }
 0x1cb   : > { %v1726_v0 = vadd.f32 %v1725_v46, %v1583_v23  ;;  %2088 = vmatmul.f32.gmra.mxu0 %v6816_v60  ;;  %2293 = vmatmul.f32.gmra.mxu1 %v6722_v10  ;;  %8602 = vst [vmem:[#allocation15_spill] sm:$0xff] %v6857_v17  ;;  %v2110_v16 = vsub.f32 %v6849_v55, %v6857_v17 }
 0x1cc   : > { %2531 = vmatmul.f32.gmra.mxu3 %v6794_v4  ;;  %2850 = vmatpush.msra.mxu2 %v6859_v6 }
 0x1cd   : > { %v1819_v30 = vadd.f32 %v1818_v3, %v1726_v0  ;;  %2414 = vmatmul.f32.gmra.mxu2 %v6780_v52  ;;  %v8604_v0 = vld [vmem:[#allocation18_spill] sm:$0xff]  ;;  %3205 = vmatpush.msrb.mxu1 %v6859_v6 }
 0x1cf   : > { %1879 = vst.msk [vmem:[#allocation2 + $0x28] sm:$0xff] %vm1874_vm1, %v1819_v30  ;;  %v1822_v5 = vpop.f32.mrf.mxu3  ;;  %v6864_v30 = vand.u32 4294901760, %v8604_v0 }
 0x1d0   : > { %v1480_v51 = vpop.f32.mrf.mxu0  ;;  %v1588_v48 = vpop.f32.mrf.mxu1 }
 0x1d1   : > { %v1589_v12 = vadd.f32 %v1588_v48, %v1476_v2  ;;  %v1729_v34 = vpop.f32.mrf.mxu2  ;;  %v1481_v7 = vadd.f32 %v1480_v51, %v8601_v19  ;;  %8605 = vst [vmem:[#allocation18_spill] sm:$0xff] %v6864_v30  ;;  %v8607_v51 = vld [vmem:[#allocation17_spill] sm:$0xff] }
 0x1d3   : > { %v1730_v33 = vadd.f32 %v1729_v34, %v1589_v12  ;;  %2096 = vmatmul.f32.gmra.mxu0 %v6839_v35  ;;  %2297 = vmatmul.f32.gmra.mxu1 %v6764_v13  ;;  %v6881_v12 = vsub.f32 %v1972_v58, %v6859_v6 }
 0x1d4   : > { %2537 = vmatmul.f32.gmra.mxu3 %v6819_v9 }
 0x1d5   : > { %v1823_v53 = vadd.f32 %v1822_v5, %v1730_v33  ;;  %2419 = vmatmul.f32.gmra.mxu2 %v6812_v56  ;;  %v6876_v5 = vsub.f32 %v8604_v0, %v6864_v30  ;;  %3103 = vmatpush.msrb.mxu0 %v6881_v12 }
 0x1d7   : > { %1881 = vst.msk [vmem:[#allocation2 + $0x38] sm:$0xff] %vm1874_vm1, %v1823_v53  ;;  %v1826_v45 = vpop.f32.mrf.mxu3  ;;  %v6883_v53 = vand.u32 4294901760, %v2110_v16 }
 0x1d8   : > { %v1485_v40 = vpop.f32.mrf.mxu0  ;;  %v1594_v3 = vpop.f32.mrf.mxu1  ;;  %8606 = vst [vmem:[#allocation48_spill] sm:$0xff] %v6876_v5 }
 0x1d9   : > { %v1595_v23 = vadd.f32 %v1594_v3, %v1481_v7  ;;  %v1733_v46 = vpop.f32.mrf.mxu2  ;;  %v1486_v48 = vadd.f32 %v1485_v40, %v8607_v51  ;;  %8608 = vst [vmem:[#allocation17_spill] sm:$0xff] %v6883_v53  ;;  %v6886_v7 = vand.u32 4294901760, %v6876_v5  ;;  %v8277_v40 = vand.u32 4294901760, %v6881_v12 }
 0x1db   : > { %v1734_v29 = vadd.f32 %v1733_v46, %v1595_v23  ;;  %2104 = vmatmul.f32.gmra.mxu0 %v6861_v15  ;;  %2301 = vmatmul.f32.gmra.mxu1 %v6797_v32  ;;  %8609 = vst [vmem:[#allocation49_spill] sm:$0xff] %v6886_v7  ;;  %v3009_v58 = vsub.f32 %v6881_v12, %v8277_v40 }
 0x1dc   : > { %2543 = vmatmul.f32.gmra.mxu3 %v6842_v62  ;;  %v2118_v0 = vsub.f32 %v6876_v5, %v6886_v7 }
 0x1dd   : > { %v1827_v2 = vadd.f32 %v1826_v45, %v1734_v29  ;;  %2424 = vmatmul.f32.gmra.mxu2 %v6832_v20  ;;  %v8610_v45 = vld [vmem:[#allocation20_spill] sm:$0xff]  ;;  %v3010_v16 = vand.u32 4294901760, %v3009_v58 }
 0x1de   : > { %v6889_v3 = vand.u32 4294901760, %v8610_v45 }
 0x1df   : > { %1883 = vst.msk [vmem:[#allocation2 + $0x48] sm:$0xff] %vm1874_vm1, %v1827_v2  ;;  %v1830_v50 = vpop.f32.mrf.mxu3  ;;  %v8613_v2 = vld [vmem:[#allocation19_spill] sm:$0xff]  ;;  %3011 = vmatpush.msra.mxu3 %v3010_v16 }
 0x1e0   : > { %v1490_v34 = vpop.f32.mrf.mxu0  ;;  %v1600_v33 = vpop.f32.mrf.mxu1  ;;  %8611 = vst [vmem:[#allocation20_spill] sm:$0xff] %v6889_v3  ;;  %v6904_v29 = vsub.f32 %v8610_v45, %v6889_v3 }
 0x1e1   : > { %v1601_v59 = vadd.f32 %v1600_v33, %v1486_v48  ;;  %v1737_v19 = vpop.f32.mrf.mxu2  ;;  %v1491_v51 = vadd.f32 %v1490_v34, %v8613_v2 }
 0x1e2   : > { %8612 = vst [vmem:[#allocation50_spill] sm:$0xff] %v6904_v29  ;;  %v6911_v40 = vand.u32 4294901760, %v6904_v29 }
 0x1e3   : > { %v1738_v23 = vadd.f32 %v1737_v19, %v1601_v59  ;;  %2112 = vmatmul.f32.gmra.mxu0 %v6883_v53  ;;  %2305 = vmatmul.f32.gmra.mxu1 %v6822_v18 }
 0x1e4   : > { %2549 = vmatmul.f32.gmra.mxu3 %v6857_v17  ;;  %8615 = vst [vmem:[#allocation51_spill] sm:$0xff] %v6911_v40  ;;  %v2126_v58 = vsub.f32 %v6904_v29, %v6911_v40 }
 0x1e5   : > { %v1831_v46 = vadd.f32 %v1830_v50, %v1738_v23  ;;  %2429 = vmatmul.f32.gmra.mxu2 %v6849_v55  ;;  %v6908_v23 = vand.u32 4294901760, %v2118_v0  ;;  %v8619_v0 = vld [vmem:[#allocation21_spill] sm:$0xff] }
 0x1e7   : > { %1885 = vst.msk [vmem:[#allocation2 + $0x58] sm:$0xff] %vm1874_vm1, %v1831_v46  ;;  %v1834_v48 = vpop.f32.mrf.mxu3  ;;  %v6924_v46 = vsub.f32 %v8616_v25, %v6914_v49 }
 0x1e8   : > { %v1495_v33 = vpop.f32.mrf.mxu0  ;;  %v1606_v59 = vpop.f32.mrf.mxu1  ;;  %8614 = vst [vmem:[#allocation19_spill] sm:$0xff] %v6908_v23 }
 0x1e9   : > { %v1607_v19 = vadd.f32 %v1606_v59, %v1491_v51  ;;  %v1741_v50 = vpop.f32.mrf.mxu2  ;;  %8618 = vst [vmem:[#allocation52_spill] sm:$0xff] %v6924_v46  ;;  %v1496_v16 = vadd.f32 %v1495_v33, %v8619_v0 }
 0x1eb   : > { %v1742_v45 = vadd.f32 %v1741_v50, %v1607_v19  ;;  %2120 = vmatmul.f32.gmra.mxu0 %v6908_v23  ;;  %2309 = vmatmul.f32.gmra.mxu1 %v6837_v43  ;;  %v8620_v19 = vld [vmem:[#allocation24_spill] sm:$0xff] }
 0x1ec   : > { %2555 = vmatmul.f32.gmra.mxu3 %v6886_v7  ;;  %v6929_v50 = vand.u32 4294901760, %v8620_v19  ;;  %v6934_v7 = vand.u32 4294901760, %v6924_v46 }
 0x1ed   : > { %v1835_v34 = vadd.f32 %v1834_v48, %v1742_v45  ;;  %2434 = vmatmul.f32.gmra.mxu2 %v6876_v5  ;;  %v6931_v5 = vand.u32 4294901760, %v2126_v58  ;;  %v8625_v58 = vld [vmem:[#allocation23_spill] sm:$0xff] }
 0x1ee   : > { %8621 = vst [vmem:[#allocation21_spill] sm:$0xff] %v6929_v50  ;;  %v6941_v25 = vsub.f32 %v8620_v19, %v6929_v50 }
 0x1ef   : > { %1887 = vst.msk [vmem:[#allocation2 + $0x68] sm:$0xff] %vm1874_vm1, %v1835_v34  ;;  %v1838_v2 = vpop.f32.mrf.mxu3  ;;  %v2134_v34 = vsub.f32 %v6924_v46, %v6934_v7 }
 0x1f0   : > { %v1500_v51 = vpop.f32.mrf.mxu0  ;;  %v1612_v59 = vpop.f32.mrf.mxu1  ;;  %8622 = vst [vmem:[#allocation24_spill] sm:$0xff] %v6931_v5 }
 0x1f1   : > { %v1613_v48 = vadd.f32 %v1612_v59, %v1496_v16  ;;  %v1745_v45 = vpop.f32.mrf.mxu2  ;;  %8623 = vst [vmem:[#allocation53_spill] sm:$0xff] %v6934_v7  ;;  %v1501_v0 = vadd.f32 %v1500_v51, %v8625_v58  ;;  %v1970_v59 = vld [vmem:[#allocation3 + $0x100] sm:$0xff] }
 0x1f2   : > { %8624 = vst [vmem:[#allocation54_spill] sm:$0xff] %v6941_v25 }
 0x1f3   : > { %v1746_v23 = vadd.f32 %v1745_v45, %v1613_v48  ;;  %2128 = vmatmul.f32.gmra.mxu0 %v6931_v5  ;;  %2313 = vmatmul.f32.gmra.mxu1 %v6864_v30  ;;  %v6951_v5 = vand.u32 4294901760, %v1970_v59 }
 0x1f4   : > { %2561 = vmatmul.f32.gmra.mxu3 %v6911_v40  ;;  %v6949_v40 = vand.u32 4294901760, %v6941_v25 }
 0x1f5   : > { %v1839_v33 = vadd.f32 %v1838_v2, %v1746_v23  ;;  %2439 = vmatmul.f32.gmra.mxu2 %v6904_v29  ;;  %v6953_v2 = vand.u32 4294901760, %v2134_v34  ;;  %v8628_v29 = vld [vmem:[#allocation26_spill] sm:$0xff]  ;;  %3207 = vmatpush.msrb.mxu1 %v6951_v5  ;;  %v8630_v34 = vand.u32 4294901760, %v6649_v44 }
 0x1f6   : > { %8626 = vst [vmem:[#allocation23_spill] sm:$0xff] %v6949_v40  ;;  %v6956_v55 = vand.u32 4294901760, %v8628_v29  ;;  %2852 = vmatpush.msra.mxu2 %v6951_v5 }
 0x1f7   : > { %1889 = vst.msk [vmem:[#allocation2 + $0x78] sm:$0xff] %vm1874_vm1, %v1839_v33  ;;  %v1842_v16 = vpop.f32.mrf.mxu3  ;;  %v2142_v33 = vsub.f32 %v6941_v25, %v6949_v40 }
 0x1f8   : > { %v1505_v48 = vpop.f32.mrf.mxu0  ;;  %v1618_v45 = vpop.f32.mrf.mxu1  ;;  %8627 = vst [vmem:[#allocation55_spill] sm:$0xff] %v6953_v2  ;;  %3320 = vmatpush.msrb.mxu2 %v8630_v34 }
 0x1f9   : > { %v1619_v19 = vadd.f32 %v1618_v45, %v1501_v0  ;;  %v1749_v23 = vpop.f32.mrf.mxu2  ;;  %8629 = vst [vmem:[#allocation26_spill] sm:$0xff] %v6956_v55  ;;  %v6970_v0 = vsub.f32 %v8628_v29, %v6956_v55  ;;  %v8632_v45 = vand.u32 4294901760, %v6788_v39  ;;  %v6977_v34 = vand.u32 4294901760, %v2142_v33 }
 0x1fa   : > { %v6985_v39 = vand.u32 4294901760, %v6641_v57 }
 0x1fb   : > { %v1750_v51 = vadd.f32 %v1749_v23, %v1619_v19  ;;  %2136 = vmatmul.f32.gmra.mxu0 %v6953_v2  ;;  %2317 = vmatmul.f32.gmra.mxu1 %v6889_v3  ;;  %8631 = vst [vmem:[#allocation56_spill] sm:$0xff] %v6970_v0  ;;  %v8633_v19 = vld [vmem:[#allocation25_spill] sm:$0xff]  ;;  %v3013_v2 = vsub.f32 %v1970_v59, %v6951_v5 }
 0x1fc   : > { %2567 = vmatmul.f32.gmra.mxu3 %v6934_v7  ;;  %3324 = vmatpush.msrb.mxu2 %v8632_v45  ;;  %v1506_v23 = vadd.f32 %v1505_v48, %v8633_v19  ;;  %8634 = vst [vmem:[#allocation25_spill] sm:$0xff] %v6977_v34  ;;  %v6995_v45 = vsub.f32 %v6641_v57, %v6985_v39  ;;  %v7006_v57 = vand.u32 4294901760, %v6662_v24 }
 0x1fd   : > { %v1843_v58 = vadd.f32 %v1842_v16, %v1750_v51  ;;  %2444 = vmatmul.f32.gmra.mxu2 %v6924_v46  ;;  %v8635_v16 = vand.u32 4294901760, %v6881_v12  ;;  %v6982_v46 = vand.u32 4294901760, %v6970_v0  ;;  %8637 = vst [vmem:[#allocation58_spill] sm:$0xff] %v6985_v39  ;;  %v3014_v48 = vand.u32 4294901760, %v3013_v2  ;;  %3106 = vmatpush.msrb.mxu0 %v3013_v2 }
 0x1fe   : > { %8638 = vst [vmem:[#allocation59_spill] sm:$0xff] %v6995_v45 }
 0x1ff   : > { %1891 = vst.msk [vmem:[#allocation2 + $0x88] sm:$0xff] %vm1874_vm1, %v1843_v58  ;;  %v1846_v7 = vpop.f32.mrf.mxu3  ;;  %3328 = vmatpush.msrb.mxu2 %v8635_v16  ;;  %v3015_v59 = vsub.f32 %v3013_v2, %v3014_v48  ;;  %v2150_v33 = vsub.f32 %v6970_v0, %v6982_v46 }
 0x200   : > { %v1510_v17 = vpop.f32.mrf.mxu0  ;;  %v1624_v44 = vpop.f32.mrf.mxu1  ;;  %8636 = vst [vmem:[#allocation57_spill] sm:$0xff] %v6982_v46 }
 0x201   : > { %v1625_v51 = vadd.f32 %v1624_v44, %v1506_v23  ;;  %v1753_v29 = vpop.f32.mrf.mxu2  ;;  %3332 = vmatpush.msrb.mxu2 %v3014_v48  ;;  %v3016_v19 = vand.u32 4294901760, %v3015_v59  ;;  %v8639_v23 = vld [vmem:[#allocation27_spill] sm:$0xff]  ;;  %v7000_v48 = vand.u32 4294901760, %v2150_v33  ;;  %8642 = vst [vmem:[#allocation61_spill] sm:$0xff] %v7006_v57 }
 0x202   : > { %v1511_v44 = vadd.f32 %v1510_v17, %v8639_v23 }
 0x203   : > { %v1754_v58 = vadd.f32 %v1753_v29, %v1625_v51  ;;  %2144 = vmatmul.f32.gmra.mxu0 %v6977_v34  ;;  %2321 = vmatmul.f32.gmra.mxu1 %v6914_v49  ;;  %8640 = vst [vmem:[#allocation27_spill] sm:$0xff] %v7000_v48 }
 0x204   : > { %2573 = vmatmul.f32.gmra.mxu3 %v6949_v40 }
 0x205   : > { %v1847_v12 = vadd.f32 %v1846_v7, %v1754_v58  ;;  %2449 = vmatmul.f32.gmra.mxu2 %v6941_v25  ;;  %3017 = vmatpush.msra.mxu3 %v3016_v19  ;;  %v7003_v58 = vand.u32 4294901760, %v6995_v45 }
 0x207   : > { %1893 = vst.msk [vmem:[#allocation2 + $0x98] sm:$0xff] %vm1874_vm1, %v1847_v12  ;;  %v1850_v16 = vpop.f32.mrf.mxu3  ;;  %3411 = vmatpush.msrb.mxu3 %v6637_v22  ;;  %v2158_v59 = vsub.f32 %v6995_v45, %v7003_v58  ;;  %v7017_v12 = vsub.f32 %v6662_v24, %v7006_v57  ;;  %v7029_v24 = vand.u32 4294901760, %v6691_v31 }
 0x208   : > { %v1515_v2 = vpop.f32.mrf.mxu0  ;;  %v1630_v51 = vpop.f32.mrf.mxu1  ;;  %8641 = vst [vmem:[#allocation60_spill] sm:$0xff] %v7003_v58 }
 0x209   : > { %v1631_v7 = vadd.f32 %v1630_v51, %v1511_v44  ;;  %v1757_v29 = vpop.f32.mrf.mxu2  ;;  %3413 = vmatpush.msrb.mxu3 %v6758_v42  ;;  %8643 = vst [vmem:[#allocation62_spill] sm:$0xff] %v7017_v12  ;;  %v8644_v42 = vld [vmem:[#allocation29_spill] sm:$0xff] }
 0x20a   : > { %v1516_v33 = vadd.f32 %v1515_v2, %v8644_v42  ;;  %8647 = vst [vmem:[#allocation64_spill] sm:$0xff] %v7029_v24 }
 0x20b   : > { %v1758_v17 = vadd.f32 %v1757_v29, %v1631_v7  ;;  %2152 = vmatmul.f32.gmra.mxu0 %v7000_v48  ;;  %2325 = vmatmul.f32.gmra.mxu1 %v6929_v50  ;;  %v7023_v7 = vand.u32 4294901760, %v2158_v59  ;;  %v7026_v29 = vand.u32 4294901760, %v7017_v12 }
 0x20c   : > { %2579 = vmatmul.f32.gmra.mxu3 %v6982_v46 }
 0x20d   : > { %v1851_v22 = vadd.f32 %v1850_v16, %v1758_v17  ;;  %2454 = vmatmul.f32.gmra.mxu2 %v6970_v0  ;;  %3415 = vmatpush.msrb.mxu3 %v6859_v6  ;;  %8645 = vst [vmem:[#allocation29_spill] sm:$0xff] %v7023_v7  ;;  %v2166_v2 = vsub.f32 %v7017_v12, %v7026_v29 }
 0x20e   : > { %8646 = vst [vmem:[#allocation63_spill] sm:$0xff] %v7026_v29  ;;  %v7039_v17 = vsub.f32 %v6691_v31, %v7029_v24 }
 0x20f   : > { %1895 = vst.msk [vmem:[#allocation2 + $0xa8] sm:$0xff] %vm1874_vm1, %v1851_v22  ;;  %v1854_v19 = vpop.f32.mrf.mxu3  ;;  %3417 = vmatpush.msrb.mxu3 %v6951_v5 }
 0x210   : > { %v1520_v23 = vpop.f32.mrf.mxu0  ;;  %v1636_v44 = vpop.f32.mrf.mxu1  ;;  %8648 = vst [vmem:[#allocation65_spill] sm:$0xff] %v7039_v17 }
 0x211   : > { %v1637_v16 = vadd.f32 %v1636_v44, %v1516_v33  ;;  %v1761_v51 = vpop.f32.mrf.mxu2  ;;  %v1521_v22 = vadd.f32 %v1520_v23, %v6643_v28 }
 0x213   : > { %v1762_v6 = vadd.f32 %v1761_v51, %v1637_v16  ;;  %2160 = vmatmul.f32.gmra.mxu0 %v7023_v7  ;;  %2329 = vmatmul.f32.gmra.mxu1 %v6956_v55  ;;  %v7043_v51 = vand.u32 4294901760, %v2166_v2 }
 0x214   : > { %2585 = vmatmul.f32.gmra.mxu3 %v7003_v58 }
 0x215   : > { %v1855_v5 = vadd.f32 %v1854_v19, %v1762_v6  ;;  %2459 = vmatmul.f32.gmra.mxu2 %v6995_v45  ;;  %8649 = vst [vmem:[#allocation66_spill] sm:$0xff] %v7043_v51  ;;  %v7046_v19 = vand.u32 4294901760, %v7039_v17  ;;  %v7049_v6 = vand.u32 4294901760, %v6726_v36 }
 0x217   : > { %1897 = vst.msk [vmem:[#allocation2 + $0xb8] sm:$0xff] %vm1874_vm1, %v1855_v5  ;;  %v1858_v59 = vpop.f32.mrf.mxu3  ;;  %v2174_v31 = vsub.f32 %v7039_v17, %v7046_v19  ;;  %v7059_v23 = vsub.f32 %v6726_v36, %v7049_v6  ;;  %v1907_v5 = vld [vmem:[#allocation2 + $0x8] sm:$0xff] }
 0x218   : > { %v1525_v42 = vpop.f32.mrf.mxu0  ;;  %v1642_v33 = vpop.f32.mrf.mxu1  ;;  %8650 = vst [vmem:[#allocation67_spill] sm:$0xff] %v7046_v19 }
 0x219   : > { %v1643_v44 = vadd.f32 %v1642_v33, %v1521_v22  ;;  %v1765_v16 = vpop.f32.mrf.mxu2  ;;  %8651 = vst [vmem:[#allocation68_spill] sm:$0xff] %v7049_v6  ;;  %v1526_v2 = vadd.f32 %v1525_v42, %v6672_v1 }
 0x21a   : > { %8652 = vst [vmem:[#allocation69_spill] sm:$0xff] %v7059_v23 }
 0x21b   : > { %v1766_v45 = vadd.f32 %v1765_v16, %v1643_v44  ;;  %2168 = vmatmul.f32.gmra.mxu0 %v7043_v51  ;;  %2333 = vmatmul.f32.gmra.mxu1 %v6985_v39  ;;  %v1980_v16 = vsel %vm1874_vm1, %v1907_v5, 0 }
 0x21c   : > { %2591 = vmatmul.f32.gmra.mxu3 %v7026_v29  ;;  %v7067_v29 = vand.u32 4294901760, %v7059_v23  ;;  %v7071_v1 = vand.u32 4294901760, %v1980_v16 }
 0x21d   : > { %v1859_v28 = vadd.f32 %v1858_v59, %v1766_v45  ;;  %2464 = vmatmul.f32.gmra.mxu2 %v7017_v12  ;;  %v7064_v12 = vand.u32 4294901760, %v2174_v31 }
 0x21e   : > { %8654 = vst [vmem:[#allocation71_spill] sm:$0xff] %v7067_v29  ;;  %v2182_v42 = vsub.f32 %v7059_v23, %v7067_v29 }
 0x21f   : > { %1899 = vst.msk [vmem:[#allocation2 + $0xc8] sm:$0xff] %vm1874_vm1, %v1859_v28  ;;  %v1862_v22 = vpop.f32.mrf.mxu3  ;;  %v1909_v28 = vld [vmem:[#allocation2 + $0x18] sm:$0xff] }
 0x220   : > { %v1530_v33 = vpop.f32.mrf.mxu0  ;;  %v1648_v44 = vpop.f32.mrf.mxu1  ;;  %8653 = vst [vmem:[#allocation70_spill] sm:$0xff] %v7064_v12 }
 0x221   : > { %v1649_v45 = vadd.f32 %v1648_v44, %v1526_v2  ;;  %v1769_v59 = vpop.f32.mrf.mxu2  ;;  %8655 = vst [vmem:[#allocation72_spill] sm:$0xff] %v7071_v1  ;;  %v1531_v31 = vadd.f32 %v1530_v33, %v6699_v37  ;;  %v7080_v2 = vsub.f32 %v1980_v16, %v7071_v1 }
 0x223   : > { %v1770_v51 = vadd.f32 %v1769_v59, %v1649_v45  ;;  %2176 = vmatmul.f32.gmra.mxu0 %v7064_v12  ;;  %2337 = vmatmul.f32.gmra.mxu1 %v7006_v57  ;;  %8656 = vst [vmem:[#allocation73_spill] sm:$0xff] %v7080_v2  ;;  %v1983_v59 = vsel %vm1874_vm1, %v1909_v28, 0  ;;  %v7088_v37 = vand.u32 4294901760, %v7080_v2 }
 0x224   : > { %2597 = vmatmul.f32.gmra.mxu3 %v7046_v19  ;;  %v7090_v33 = vand.u32 4294901760, %v1983_v59 }
 0x225   : > { %v1863_v36 = vadd.f32 %v1862_v22, %v1770_v51  ;;  %2469 = vmatmul.f32.gmra.mxu2 %v7039_v17  ;;  %v7083_v22 = vand.u32 4294901760, %v2182_v42  ;;  %8658 = vst [vmem:[#allocation75_spill] sm:$0xff] %v7088_v37  ;;  %v2856_v42 = vsub.f32 %v7080_v2, %v7088_v37 }
 0x227   : > { %1901 = vst.msk [vmem:[#allocation2 + $0xd8] sm:$0xff] %vm1874_vm1, %v1863_v36  ;;  %v1866_v5 = vpop.f32.mrf.mxu3  ;;  %v1911_v36 = vld [vmem:[#allocation2 + $0x28] sm:$0xff] }
 0x228   : > { %v1535_v44 = vpop.f32.mrf.mxu0  ;;  %v1654_v45 = vpop.f32.mrf.mxu1  ;;  %8657 = vst [vmem:[#allocation74_spill] sm:$0xff] %v7083_v22 }
 0x229   : > { %v1655_v19 = vadd.f32 %v1654_v45, %v1531_v31  ;;  %v1773_v51 = vpop.f32.mrf.mxu2  ;;  %v1536_v28 = vadd.f32 %v1535_v44, %v6734_v26  ;;  %v7099_v31 = vsub.f32 %v1983_v59, %v7090_v33  ;;  %v7104_v26 = vand.u32 4294901760, %v2856_v42 }
 0x22b   : > { %v1774_v17 = vadd.f32 %v1773_v51, %v1655_v19  ;;  %2184 = vmatmul.f32.gmra.mxu0 %v7083_v22  ;;  %2341 = vmatmul.f32.gmra.mxu1 %v7029_v24  ;;  %8659 = vst [vmem:[#allocation76_spill] sm:$0xff] %v7099_v31  ;;  %v1986_v22 = vsel %vm1874_vm1, %v1911_v36, 0  ;;  %v7107_v44 = vand.u32 4294901760, %v7099_v31  ;;  %v1913_v36 = vld [vmem:[#allocation2 + $0x38] sm:$0xff] }
 0x22c   : > { %2603 = vmatmul.f32.gmra.mxu3 %v7067_v29  ;;  %8660 = vst [vmem:[#allocation77_spill] sm:$0xff] %v7104_v26 }
 0x22d   : > { %v1867_v16 = vadd.f32 %v1866_v5, %v1774_v17  ;;  %2474 = vmatmul.f32.gmra.mxu2 %v7059_v23  ;;  %8661 = vst [vmem:[#allocation78_spill] sm:$0xff] %v7107_v44  ;;  %v1989_v23 = vsel %vm1874_vm1, %v1913_v36, 0 }
 0x22f   : > { %1903 = vst.msk [vmem:[#allocation2 + $0xe8] sm:$0xff] %vm1874_vm1, %v1867_v16  ;;  %v1870_v19 = vpop.f32.mrf.mxu3  ;;  %v7109_v16 = vand.u32 4294901760, %v1986_v22 }
 0x230   : > { %v1660_v45 = vpop.f32.mrf.mxu1  ;;  %v2065_v51 = vpop.f32.mrf.mxu0 }
 0x231   : > { %v1661_v29 = vadd.f32 %v1660_v45, %v1536_v28  ;;  %v1777_v17 = vpop.f32.mrf.mxu2  ;;  %v2864_v28 = vsub.f32 %v7099_v31, %v7107_v44  ;;  %v7117_v42 = vsub.f32 %v1986_v22, %v7109_v16  ;;  %v1915_v22 = vld [vmem:[#allocation2 + $0x48] sm:$0xff] }
 0x233   : > { %v1778_v5 = vadd.f32 %v1777_v17, %v1661_v29  ;;  %2345 = vmatmul.f32.gmra.mxu1 %v7049_v6  ;;  %2672 = vmatmul.f32.vlgmr.msra.gmra.mxu0 %v6665_v63  ;;  %8662 = vst [vmem:[#allocation79_spill] sm:$0xff] %v7117_v42 }
 0x234   : > { %3019 = vmatmul.f32.vlgmr.msra.gmra.mxu3 %v7071_v1 }
 0x235   : > { %v1871_v59 = vadd.f32 %v1870_v19, %v1778_v5  ;;  %2858 = vmatmul.f32.vlgmr.msra.gmra.mxu2 %v7104_v26  ;;  %v7122_v19 = vand.u32 4294901760, %v2864_v28  ;;  %v7125_v5 = vand.u32 4294901760, %v7117_v42  ;;  %v1992_v26 = vsel %vm1874_vm1, %v1915_v22, 0 }
 0x237   : > { %1905 = vst.msk [vmem:[#allocation2 + $0xf8] sm:$0xff] %vm1874_vm1, %v1871_v59  ;;  %v2514_v29 = vpop.f32.mrf.mxu3  ;;  %v7127_v59 = vand.u32 4294901760, %v1989_v23 }
 0x238   : > { %v2073_v45 = vpop.f32.mrf.mxu0  ;;  %v2286_v17 = vpop.f32.mrf.mxu1  ;;  %8663 = vst [vmem:[#allocation80_spill] sm:$0xff] %v7122_v19 }
 0x239   : > { %v2287_v12 = vadd.f32 %v2286_v17, %v2065_v51  ;;  %v2400_v58 = vpop.f32.mrf.mxu2  ;;  %8664 = vst [vmem:[#allocation81_spill] sm:$0xff] %v7125_v5 }
 0x23b   : > { %v2401_v7 = vadd.f32 %v2400_v58, %v2287_v12  ;;  %2676 = vmatmul.f32.gmra.mxu0 %v6697_v8  ;;  %2769 = vmatmul.f32.vlgmr.msra.gmra.mxu1 %v6665_v63  ;;  %v2872_v58 = vsub.f32 %v7117_v42, %v7125_v5  ;;  %v7136_v12 = vsub.f32 %v1989_v23, %v7127_v59  ;;  %v1917_v23 = vld [vmem:[#allocation2 + $0x58] sm:$0xff] }
 0x23c   : > { %3023 = vmatmul.f32.gmra.mxu3 %v7090_v33  ;;  %v1995_v25 = vsel %vm1874_vm1, %v1917_v23, 0 }
 0x23d   : > { %2866 = vmatmul.f32.gmra.mxu2 %v7122_v19  ;;  %v7131_v36 = vadd.f32 %v2514_v29, %v2401_v7  ;;  %8665 = vst [vmem:[#allocation82_spill] sm:$0xff] %v7136_v12  ;;  %v7141_v7 = vand.u32 4294901760, %v2872_v58  ;;  %v7144_v29 = vand.u32 4294901760, %v7136_v12  ;;  %v7146_v19 = vand.u32 4294901760, %v1992_v26 }
 0x23f   : > { %v2520_v51 = vpop.f32.mrf.mxu3  ;;  %8666 = vst [vmem:[#allocation83_spill] sm:$0xff] %v7141_v7 }
 0x240   : > { %v2081_v28 = vpop.f32.mrf.mxu0  ;;  %v2290_v17 = vpop.f32.mrf.mxu1  ;;  %8667 = vst [vmem:[#allocation84_spill] sm:$0xff] %v7144_v29 }
 0x241   : > { %v2291_v0 = vadd.f32 %v2290_v17, %v2073_v45  ;;  %v2405_v46 = vpop.f32.mrf.mxu2  ;;  %8668 = vst [vmem:[#allocation85_spill] sm:$0xff] %v7146_v19 }
 0x243   : > { %v2406_v48 = vadd.f32 %v2405_v46, %v2291_v0  ;;  %2680 = vmatmul.f32.gmra.mxu0 %v6722_v10  ;;  %2773 = vmatmul.f32.gmra.mxu1 %v6697_v8  ;;  %v2880_v46 = vsub.f32 %v7136_v12, %v7144_v29  ;;  %v7155_v0 = vsub.f32 %v1992_v26, %v7146_v19  ;;  %v1919_v26 = vld [vmem:[#allocation2 + $0x68] sm:$0xff] }
 0x244   : > { %3027 = vmatmul.f32.gmra.mxu3 %v7109_v16  ;;  %v1998_v20 = vsel %vm1874_vm1, %v1919_v26, 0 }
 0x245   : > { %2874 = vmatmul.f32.gmra.mxu2 %v7141_v7  ;;  %v7150_v22 = vadd.f32 %v2520_v51, %v2406_v48  ;;  %8669 = vst [vmem:[#allocation86_spill] sm:$0xff] %v7155_v0  ;;  %v7160_v48 = vand.u32 4294901760, %v2880_v46  ;;  %v7163_v51 = vand.u32 4294901760, %v7155_v0  ;;  %v7165_v7 = vand.u32 4294901760, %v1995_v25 }
 0x247   : > { %v2526_v45 = vpop.f32.mrf.mxu3  ;;  %8670 = vst [vmem:[#allocation87_spill] sm:$0xff] %v7160_v48 }
 0x248   : > { %v2089_v58 = vpop.f32.mrf.mxu0  ;;  %v2294_v17 = vpop.f32.mrf.mxu1  ;;  %8671 = vst [vmem:[#allocation88_spill] sm:$0xff] %v7163_v51 }
 0x249   : > { %v2295_v40 = vadd.f32 %v2294_v17, %v2081_v28  ;;  %v2410_v34 = vpop.f32.mrf.mxu2  ;;  %8672 = vst [vmem:[#allocation89_spill] sm:$0xff] %v7165_v7 }
 0x24b   : > { %v2411_v53 = vadd.f32 %v2410_v34, %v2295_v40  ;;  %2684 = vmatmul.f32.gmra.mxu0 %v6764_v13  ;;  %2777 = vmatmul.f32.gmra.mxu1 %v6722_v10  ;;  %v2888_v40 = vsub.f32 %v7155_v0, %v7163_v51  ;;  %v7174_v34 = vsub.f32 %v1995_v25, %v7165_v7  ;;  %v1921_v25 = vld [vmem:[#allocation2 + $0x78] sm:$0xff] }
 0x24c   : > { %3031 = vmatmul.f32.gmra.mxu3 %v7127_v59  ;;  %v2001_v9 = vsel %vm1874_vm1, %v1921_v25, 0 }
 0x24d   : > { %2882 = vmatmul.f32.gmra.mxu2 %v7160_v48  ;;  %v7169_v23 = vadd.f32 %v2526_v45, %v2411_v53  ;;  %8673 = vst [vmem:[#allocation90_spill] sm:$0xff] %v7174_v34  ;;  %v7179_v53 = vand.u32 4294901760, %v2888_v40  ;;  %v7182_v45 = vand.u32 4294901760, %v7174_v34  ;;  %v7184_v48 = vand.u32 4294901760, %v1998_v20 }
 0x24f   : > { %v2532_v28 = vpop.f32.mrf.mxu3  ;;  %8674 = vst [vmem:[#allocation91_spill] sm:$0xff] %v7179_v53 }
 0x250   : > { %v2097_v46 = vpop.f32.mrf.mxu0  ;;  %v2298_v17 = vpop.f32.mrf.mxu1  ;;  %8675 = vst [vmem:[#allocation92_spill] sm:$0xff] %v7182_v45 }
 0x251   : > { %v2299_v62 = vadd.f32 %v2298_v17, %v2089_v58  ;;  %v2415_v15 = vpop.f32.mrf.mxu2  ;;  %8676 = vst [vmem:[#allocation93_spill] sm:$0xff] %v7184_v48 }
 0x253   : > { %v2416_v56 = vadd.f32 %v2415_v15, %v2299_v62  ;;  %2688 = vmatmul.f32.gmra.mxu0 %v6797_v32  ;;  %2781 = vmatmul.f32.gmra.mxu1 %v6764_v13  ;;  %v2896_v62 = vsub.f32 %v7174_v34, %v7182_v45  ;;  %v7193_v15 = vsub.f32 %v1998_v20, %v7184_v48  ;;  %v1923_v20 = vld [vmem:[#allocation2 + $0x88] sm:$0xff] }
 0x254   : > { %3035 = vmatmul.f32.gmra.mxu3 %v7146_v19 }
 0x255   : > { %2890 = vmatmul.f32.gmra.mxu2 %v7179_v53  ;;  %v7188_v26 = vadd.f32 %v2532_v28, %v2416_v56  ;;  %8677 = vst [vmem:[#allocation94_spill] sm:$0xff] %v7193_v15  ;;  %v7198_v56 = vand.u32 4294901760, %v2896_v62  ;;  %v7201_v28 = vand.u32 4294901760, %v7193_v15  ;;  %v7203_v53 = vand.u32 4294901760, %v2001_v9 }
 0x257   : > { %v2538_v58 = vpop.f32.mrf.mxu3  ;;  %8678 = vst [vmem:[#allocation95_spill] sm:$0xff] %v7198_v56 }
 0x258   : > { %v2105_v40 = vpop.f32.mrf.mxu0  ;;  %v2302_v17 = vpop.f32.mrf.mxu1  ;;  %8679 = vst [vmem:[#allocation96_spill] sm:$0xff] %v7201_v28 }
 0x259   : > { %v2303_v13 = vadd.f32 %v2302_v17, %v2097_v46  ;;  %v2420_v35 = vpop.f32.mrf.mxu2  ;;  %8680 = vst [vmem:[#allocation97_spill] sm:$0xff] %v7203_v53 }
 0x25b   : > { %v2421_v52 = vadd.f32 %v2420_v35, %v2303_v13  ;;  %2692 = vmatmul.f32.gmra.mxu0 %v6822_v18  ;;  %2785 = vmatmul.f32.gmra.mxu1 %v6797_v32  ;;  %v2904_v13 = vsub.f32 %v7193_v15, %v7201_v28  ;;  %v7212_v35 = vsub.f32 %v2001_v9, %v7203_v53  ;;  %v2004_v32 = vsel %vm1874_vm1, %v1923_v20, 0  ;;  %v1925_v9 = vld [vmem:[#allocation2 + $0x98] sm:$0xff] }
 0x25c   : > { %3039 = vmatmul.f32.gmra.mxu3 %v7165_v7 }
 0x25d   : > { %2898 = vmatmul.f32.gmra.mxu2 %v7198_v56  ;;  %v7207_v25 = vadd.f32 %v2538_v58, %v2421_v52  ;;  %8681 = vst [vmem:[#allocation98_spill] sm:$0xff] %v7212_v35  ;;  %v7217_v52 = vand.u32 4294901760, %v2904_v13  ;;  %v7220_v58 = vand.u32 4294901760, %v7212_v35  ;;  %v7222_v56 = vand.u32 4294901760, %v2004_v32 }
 0x25f   : > { %v2544_v46 = vpop.f32.mrf.mxu3  ;;  %8682 = vst [vmem:[#allocation99_spill] sm:$0xff] %v7217_v52 }
 0x260   : > { %v2113_v62 = vpop.f32.mrf.mxu0  ;;  %v2306_v17 = vpop.f32.mrf.mxu1  ;;  %8683 = vst [vmem:[#allocation100_spill] sm:$0xff] %v7220_v58 }
 0x261   : > { %v2307_v4 = vadd.f32 %v2306_v17, %v2105_v40  ;;  %v2425_v10 = vpop.f32.mrf.mxu2  ;;  %8684 = vst [vmem:[#allocation101_spill] sm:$0xff] %v7222_v56 }
 0x263   : > { %v2426_v60 = vadd.f32 %v2425_v10, %v2307_v4  ;;  %2696 = vmatmul.f32.gmra.mxu0 %v6837_v43  ;;  %2789 = vmatmul.f32.gmra.mxu1 %v6822_v18  ;;  %v2912_v10 = vsub.f32 %v7212_v35, %v7220_v58  ;;  %v7231_v4 = vsub.f32 %v2004_v32, %v7222_v56  ;;  %v2007_v18 = vsel %vm1874_vm1, %v1925_v9, 0  ;;  %v1927_v32 = vld [vmem:[#allocation2 + $0xa8] sm:$0xff] }
 0x264   : > { %3043 = vmatmul.f32.gmra.mxu3 %v7184_v48 }
 0x265   : > { %2906 = vmatmul.f32.gmra.mxu2 %v7217_v52  ;;  %v7226_v20 = vadd.f32 %v2544_v46, %v2426_v60  ;;  %8685 = vst [vmem:[#allocation102_spill] sm:$0xff] %v7231_v4  ;;  %v7236_v60 = vand.u32 4294901760, %v2912_v10  ;;  %v7239_v46 = vand.u32 4294901760, %v7231_v4  ;;  %v7241_v52 = vand.u32 4294901760, %v2007_v18 }
 0x267   : > { %v2550_v40 = vpop.f32.mrf.mxu3  ;;  %8686 = vst [vmem:[#allocation103_spill] sm:$0xff] %v7236_v60 }
 0x268   : > { %v2121_v13 = vpop.f32.mrf.mxu0  ;;  %v2310_v17 = vpop.f32.mrf.mxu1  ;;  %8687 = vst [vmem:[#allocation104_spill] sm:$0xff] %v7239_v46 }
 0x269   : > { %v2311_v47 = vadd.f32 %v2310_v17, %v2113_v62  ;;  %v2430_v14 = vpop.f32.mrf.mxu2  ;;  %8688 = vst [vmem:[#allocation105_spill] sm:$0xff] %v7241_v52 }
 0x26b   : > { %v2431_v8 = vadd.f32 %v2430_v14, %v2311_v47  ;;  %2700 = vmatmul.f32.gmra.mxu0 %v6864_v30  ;;  %2793 = vmatmul.f32.gmra.mxu1 %v6837_v43  ;;  %v2920_v47 = vsub.f32 %v7231_v4, %v7239_v46  ;;  %v7250_v14 = vsub.f32 %v2007_v18, %v7241_v52  ;;  %v2010_v43 = vsel %vm1874_vm1, %v1927_v32, 0  ;;  %v1929_v18 = vld [vmem:[#allocation2 + $0xb8] sm:$0xff] }
 0x26c   : > { %3047 = vmatmul.f32.gmra.mxu3 %v7203_v53 }
 0x26d   : > { %2914 = vmatmul.f32.gmra.mxu2 %v7236_v60  ;;  %v7245_v9 = vadd.f32 %v2550_v40, %v2431_v8  ;;  %8689 = vst [vmem:[#allocation106_spill] sm:$0xff] %v7250_v14  ;;  %v7255_v8 = vand.u32 4294901760, %v2920_v47  ;;  %v7258_v40 = vand.u32 4294901760, %v7250_v14  ;;  %v7260_v60 = vand.u32 4294901760, %v2010_v43 }
 0x26f   : > { %v2556_v62 = vpop.f32.mrf.mxu3  ;;  %8690 = vst [vmem:[#allocation107_spill] sm:$0xff] %v7255_v8 }
 0x270   : > { %v2129_v10 = vpop.f32.mrf.mxu0  ;;  %v2314_v17 = vpop.f32.mrf.mxu1  ;;  %8691 = vst [vmem:[#allocation108_spill] sm:$0xff] %v7258_v40 }
 0x271   : > { %v2315_v38 = vadd.f32 %v2314_v17, %v2121_v13  ;;  %v2435_v21 = vpop.f32.mrf.mxu2  ;;  %8692 = vst [vmem:[#allocation109_spill] sm:$0xff] %v7260_v60 }
 0x273   : > { %v2436_v61 = vadd.f32 %v2435_v21, %v2315_v38  ;;  %2704 = vmatmul.f32.gmra.mxu0 %v6889_v3  ;;  %2797 = vmatmul.f32.gmra.mxu1 %v6864_v30  ;;  %v2928_v21 = vsub.f32 %v7250_v14, %v7258_v40  ;;  %v7269_v38 = vsub.f32 %v2010_v43, %v7260_v60  ;;  %v2013_v30 = vsel %vm1874_vm1, %v1929_v18, 0  ;;  %v1931_v43 = vld [vmem:[#allocation2 + $0xc8] sm:$0xff] }
 0x274   : > { %3051 = vmatmul.f32.gmra.mxu3 %v7222_v56 }
 0x275   : > { %2922 = vmatmul.f32.gmra.mxu2 %v7255_v8  ;;  %v7264_v32 = vadd.f32 %v2556_v62, %v2436_v61  ;;  %8693 = vst [vmem:[#allocation110_spill] sm:$0xff] %v7269_v38  ;;  %v7274_v61 = vand.u32 4294901760, %v2928_v21  ;;  %v7277_v62 = vand.u32 4294901760, %v7269_v38  ;;  %v7279_v8 = vand.u32 4294901760, %v2013_v30 }
 0x277   : > { %v2562_v13 = vpop.f32.mrf.mxu3  ;;  %8694 = vst [vmem:[#allocation111_spill] sm:$0xff] %v7274_v61 }
 0x278   : > { %v2137_v47 = vpop.f32.mrf.mxu0  ;;  %v2318_v17 = vpop.f32.mrf.mxu1  ;;  %8695 = vst [vmem:[#allocation112_spill] sm:$0xff] %v7277_v62 }
 0x279   : > { %v2319_v63 = vadd.f32 %v2318_v17, %v2129_v10  ;;  %v2440_v11 = vpop.f32.mrf.mxu2  ;;  %8696 = vst [vmem:[#allocation113_spill] sm:$0xff] %v7279_v8 }
 0x27b   : > { %v2441_v54 = vadd.f32 %v2440_v11, %v2319_v63  ;;  %2708 = vmatmul.f32.gmra.mxu0 %v6914_v49  ;;  %2801 = vmatmul.f32.gmra.mxu1 %v6889_v3  ;;  %v2936_v63 = vsub.f32 %v7269_v38, %v7277_v62  ;;  %v7288_v11 = vsub.f32 %v2013_v30, %v7279_v8  ;;  %v2016_v3 = vsel %vm1874_vm1, %v1931_v43, 0  ;;  %v1933_v30 = vld [vmem:[#allocation2 + $0xd8] sm:$0xff] }
 0x27c   : > { %3055 = vmatmul.f32.gmra.mxu3 %v7241_v52 }
 0x27d   : > { %2930 = vmatmul.f32.gmra.mxu2 %v7274_v61  ;;  %v7283_v18 = vadd.f32 %v2562_v13, %v2441_v54  ;;  %8697 = vst [vmem:[#allocation114_spill] sm:$0xff] %v7288_v11  ;;  %v7293_v54 = vand.u32 4294901760, %v2936_v63  ;;  %v7296_v13 = vand.u32 4294901760, %v7288_v11  ;;  %v7298_v61 = vand.u32 4294901760, %v2016_v3 }
 0x27f   : > { %v2568_v10 = vpop.f32.mrf.mxu3  ;;  %8698 = vst [vmem:[#allocation115_spill] sm:$0xff] %v7293_v54 }
 0x280   : > { %v2145_v21 = vpop.f32.mrf.mxu0  ;;  %v2322_v17 = vpop.f32.mrf.mxu1  ;;  %8699 = vst [vmem:[#allocation116_spill] sm:$0xff] %v7296_v13 }
 0x281   : > { %v2323_v27 = vadd.f32 %v2322_v17, %v2137_v47  ;;  %v2445_v41 = vpop.f32.mrf.mxu2  ;;  %8700 = vst [vmem:[#allocation117_spill] sm:$0xff] %v7298_v61 }
 0x283   : > { %v2446_v40 = vadd.f32 %v2445_v41, %v2323_v27  ;;  %2712 = vmatmul.f32.gmra.mxu0 %v6929_v50  ;;  %2805 = vmatmul.f32.gmra.mxu1 %v6914_v49  ;;  %v2944_v27 = vsub.f32 %v7288_v11, %v7296_v13  ;;  %v7307_v41 = vsub.f32 %v2016_v3, %v7298_v61  ;;  %v2019_v49 = vsel %vm1874_vm1, %v1933_v30, 0  ;;  %v1935_v3 = vld [vmem:[#allocation2 + $0xe8] sm:$0xff] }
 0x284   : > { %3059 = vmatmul.f32.gmra.mxu3 %v7260_v60 }
 0x285   : > { %2938 = vmatmul.f32.gmra.mxu2 %v7293_v54  ;;  %v7302_v43 = vadd.f32 %v2568_v10, %v2446_v40  ;;  %8701 = vst [vmem:[#allocation118_spill] sm:$0xff] %v7307_v41  ;;  %v7312_v40 = vand.u32 4294901760, %v2944_v27  ;;  %v7315_v10 = vand.u32 4294901760, %v7307_v41  ;;  %v7317_v54 = vand.u32 4294901760, %v2019_v49 }
 0x287   : > { %v2574_v47 = vpop.f32.mrf.mxu3  ;;  %8702 = vst [vmem:[#allocation119_spill] sm:$0xff] %v7312_v40 }
 0x288   : > { %v2153_v63 = vpop.f32.mrf.mxu0  ;;  %v2326_v17 = vpop.f32.mrf.mxu1  ;;  %8703 = vst [vmem:[#allocation120_spill] sm:$0xff] %v7315_v10 }
 0x289   : > { %v2327_v62 = vadd.f32 %v2326_v17, %v2145_v21  ;;  %v2450_v38 = vpop.f32.mrf.mxu2  ;;  %8704 = vst [vmem:[#allocation121_spill] sm:$0xff] %v7317_v54 }
 0x28b   : > { %v2451_v52 = vadd.f32 %v2450_v38, %v2327_v62  ;;  %2716 = vmatmul.f32.gmra.mxu0 %v6956_v55  ;;  %2809 = vmatmul.f32.gmra.mxu1 %v6929_v50  ;;  %v2952_v38 = vsub.f32 %v7307_v41, %v7315_v10  ;;  %v7326_v62 = vsub.f32 %v2019_v49, %v7317_v54  ;;  %v2022_v50 = vsel %vm1874_vm1, %v1935_v3, 0  ;;  %v1937_v49 = vld [vmem:[#allocation2 + $0xf8] sm:$0xff] }
 0x28c   : > { %3063 = vmatmul.f32.gmra.mxu3 %v7279_v8  ;;  %v2025_v10 = vsel %vm1874_vm1, %v1937_v49, 0 }
 0x28d   : > { %2946 = vmatmul.f32.gmra.mxu2 %v7312_v40  ;;  %v7321_v30 = vadd.f32 %v2574_v47, %v2451_v52  ;;  %8705 = vst [vmem:[#allocation122_spill] sm:$0xff] %v7326_v62  ;;  %v7331_v52 = vand.u32 4294901760, %v2952_v38  ;;  %v7334_v47 = vand.u32 4294901760, %v7326_v62  ;;  %v7336_v40 = vand.u32 4294901760, %v2022_v50  ;;  %v1969_v38 = vld [vmem:[#allocation3 + $0xf8] sm:$0xff] }
 0x28e   : > { %v7348_v41 = vand.u32 4294901760, %v1969_v38  ;;  %v7362_v49 = vand.u32 4294901760, %v2025_v10 }
 0x28f   : > { %v2580_v21 = vpop.f32.mrf.mxu3  ;;  %8706 = vst [vmem:[#allocation123_spill] sm:$0xff] %v7331_v52 }
 0x290   : > { %v2161_v27 = vpop.f32.mrf.mxu0  ;;  %v2330_v17 = vpop.f32.mrf.mxu1  ;;  %8707 = vst [vmem:[#allocation124_spill] sm:$0xff] %v7334_v47  ;;  %3484 = vmatpush.msra.mxu0 %v7348_v41  ;;  %3935 = vmatpush.msra.mxu3 %v7348_v41 }
 0x291   : > { %v2331_v13 = vadd.f32 %v2330_v17, %v2153_v63  ;;  %v2455_v11 = vpop.f32.mrf.mxu2  ;;  %8708 = vst [vmem:[#allocation125_spill] sm:$0xff] %v7336_v40 }
 0x292   : > { %8710 = vst [vmem:[#allocation127_spill] sm:$0xff] %v7348_v41 }
 0x293   : > { %v2456_v60 = vadd.f32 %v2455_v11, %v2331_v13  ;;  %2720 = vmatmul.f32.gmra.mxu0 %v6985_v39  ;;  %2813 = vmatmul.f32.gmra.mxu1 %v6956_v55  ;;  %v2960_v11 = vsub.f32 %v7326_v62, %v7334_v47  ;;  %v7345_v13 = vsub.f32 %v2022_v50, %v7336_v40 }
 0x294   : > { %3067 = vmatmul.f32.gmra.mxu3 %v7298_v61  ;;  %8713 = vst [vmem:[#allocation130_spill] sm:$0xff] %v7362_v49 }
 0x295   : > { %2954 = vmatmul.f32.gmra.mxu2 %v7331_v52  ;;  %v7340_v3 = vadd.f32 %v2580_v21, %v2456_v60  ;;  %8709 = vst [vmem:[#allocation126_spill] sm:$0xff] %v7345_v13  ;;  %v7351_v52 = vsub.f32 %v1969_v38, %v7348_v41  ;;  %v7357_v50 = vand.u32 4294901760, %v2960_v11  ;;  %v7360_v21 = vand.u32 4294901760, %v7345_v13 }
 0x296   : > { %v7376_v38 = vsub.f32 %v2025_v10, %v7362_v49 }
 0x297   : > { %v2586_v63 = vpop.f32.mrf.mxu3  ;;  %8711 = vst [vmem:[#allocation128_spill] sm:$0xff] %v7357_v50  ;;  %3807 = vmatpush.msra.mxu2 %v7351_v52  ;;  %v2968_v11 = vsub.f32 %v7345_v13, %v7360_v21 }
 0x298   : > { %v2169_v17 = vpop.f32.mrf.mxu0  ;;  %v2334_v55 = vpop.f32.mrf.mxu1  ;;  %8712 = vst [vmem:[#allocation129_spill] sm:$0xff] %v7360_v21  ;;  %v7389_v21 = vand.u32 4294901760, %v7376_v38 }
 0x299   : > { %v2335_v61 = vadd.f32 %v2334_v55, %v2161_v27  ;;  %v2460_v8 = vpop.f32.mrf.mxu2  ;;  %v8397_v55 = vand.u32 4294901760, %v7351_v52  ;;  %8714 = vst [vmem:[#allocation131_spill] sm:$0xff] %v7376_v38  ;;  %v7386_v10 = vand.u32 4294901760, %v2968_v11 }
 0x29a   : > { %8716 = vst [vmem:[#allocation133_spill] sm:$0xff] %v7389_v21 }
 0x29b   : > { %v2461_v60 = vadd.f32 %v2460_v8, %v2335_v61  ;;  %2724 = vmatmul.f32.gmra.mxu0 %v7006_v57  ;;  %2817 = vmatmul.f32.gmra.mxu1 %v6985_v39  ;;  %v3647_v61 = vsub.f32 %v7351_v52, %v8397_v55  ;;  %v1967_v39 = vld [vmem:[#allocation3 + $0xe8] sm:$0xff]  ;;  %8715 = vst [vmem:[#allocation132_spill] sm:$0xff] %v7386_v10 }
 0x29c   : > { %3071 = vmatmul.f32.gmra.mxu3 %v7317_v54  ;;  %v7378_v62 = vand.u32 4294901760, %v1967_v39 }
 0x29d   : > { %2962 = vmatmul.f32.gmra.mxu2 %v7357_v50  ;;  %v7368_v8 = vadd.f32 %v2586_v63, %v2461_v60  ;;  %v3648_v54 = vand.u32 4294901760, %v3647_v61  ;;  %v1965_v61 = vld [vmem:[#allocation3 + $0xd8] sm:$0xff] }
 0x29e   : > { %v7381_v60 = vsub.f32 %v1967_v39, %v7378_v62  ;;  %3486 = vmatpush.msra.mxu0 %v7378_v62  ;;  %3937 = vmatpush.msra.mxu3 %v7378_v62 }
 0x29f   : > { %v2592_v27 = vpop.f32.mrf.mxu3  ;;  %3649 = vmatpush.msra.mxu1 %v3648_v54 }
 0x2a0   : > { %v2177_v47 = vpop.f32.mrf.mxu0  ;;  %v2338_v41 = vpop.f32.mrf.mxu1  ;;  %3810 = vmatpush.msra.mxu2 %v7381_v60  ;;  %v8407_v54 = vand.u32 4294901760, %v7381_v60 }
 0x2a1   : > { %v2339_v50 = vadd.f32 %v2338_v41, %v2169_v17  ;;  %v2465_v63 = vpop.f32.mrf.mxu2 }
 0x2a2   : > { %v3653_v41 = vsub.f32 %v7381_v60, %v8407_v54 }
 0x2a3   : > { %v2466_v55 = vadd.f32 %v2465_v63, %v2339_v50  ;;  %2728 = vmatmul.f32.gmra.mxu0 %v7029_v24  ;;  %2821 = vmatmul.f32.gmra.mxu1 %v7006_v57  ;;  %v2976_v50 = vsub.f32 %v7376_v38, %v7389_v21 }
 0x2a4   : > { %3075 = vmatmul.f32.gmra.mxu3 %v7336_v40  ;;  %v3654_v57 = vand.u32 4294901760, %v3653_v41  ;;  %v7403_v40 = vand.u32 4294901760, %v1965_v61  ;;  %v1963_v41 = vld [vmem:[#allocation3 + $0xc8] sm:$0xff] }
 0x2a5   : > { %2970 = vmatmul.f32.gmra.mxu2 %v7386_v10  ;;  %v7396_v39 = vadd.f32 %v2592_v27, %v2466_v55  ;;  %v7411_v54 = vand.u32 4294901760, %v2976_v50 }
 0x2a6   : > { %3655 = vmatpush.msra.mxu1 %v3654_v57  ;;  %v7406_v55 = vsub.f32 %v1965_v61, %v7403_v40  ;;  %3488 = vmatpush.msra.mxu0 %v7403_v40 }
 0x2a7   : > { %v2598_v17 = vpop.f32.mrf.mxu3  ;;  %8717 = vst [vmem:[#allocation134_spill] sm:$0xff] %v7411_v54  ;;  %3939 = vmatpush.msra.mxu3 %v7403_v40 }
 0x2a8   : > { %v2185_v11 = vpop.f32.mrf.mxu0  ;;  %v2342_v63 = vpop.f32.mrf.mxu1  ;;  %3813 = vmatpush.msra.mxu2 %v7406_v55 }
 0x2a9   : > { %v2343_v13 = vadd.f32 %v2342_v63, %v2177_v47  ;;  %v2470_v10 = vpop.f32.mrf.mxu2  ;;  %v8415_v47 = vand.u32 4294901760, %v7406_v55 }
 0x2ab   : > { %v2471_v27 = vadd.f32 %v2470_v10, %v2343_v13  ;;  %2732 = vmatmul.f32.gmra.mxu0 %v7049_v6  ;;  %2825 = vmatmul.f32.gmra.mxu1 %v7029_v24  ;;  %v3659_v13 = vsub.f32 %v7406_v55, %v8415_v47  ;;  %v7423_v24 = vand.u32 4294901760, %v1963_v41 }
 0x2ac   : > { %3079 = vmatmul.f32.gmra.mxu3 %v7362_v49 }
 0x2ad   : > { %2978 = vmatmul.f32.gmra.mxu2 %v7411_v54  ;;  %v7418_v57 = vadd.f32 %v2598_v17, %v2471_v27  ;;  %v3660_v63 = vand.u32 4294901760, %v3659_v13  ;;  %v7426_v54 = vsub.f32 %v1963_v41, %v7423_v24  ;;  %3490 = vmatpush.msra.mxu0 %v7423_v24  ;;  %v1961_v41 = vld [vmem:[#allocation3 + $0xb8] sm:$0xff] }
 0x2ae   : > { %3941 = vmatpush.msra.mxu3 %v7423_v24 }
 0x2af   : > { %v2604_v10 = vpop.f32.mrf.mxu3  ;;  %3661 = vmatpush.msra.mxu1 %v3660_v63  ;;  %3816 = vmatpush.msra.mxu2 %v7426_v54  ;;  %v8423_v27 = vand.u32 4294901760, %v7426_v54 }
 0x2b0   : > { %v2346_v50 = vpop.f32.mrf.mxu1  ;;  %v2673_v61 = vpop.f32.mrf.mxu0 }
 0x2b1   : > { %v2347_v21 = vadd.f32 %v2346_v50, %v2185_v11  ;;  %v2475_v49 = vpop.f32.mrf.mxu2 }
 0x2b3   : > { %v2476_v17 = vadd.f32 %v2475_v49, %v2347_v21  ;;  %2829 = vmatmul.f32.gmra.mxu1 %v7049_v6  ;;  %3109 = vmatmul.f32.vlgmr.msrb.gmra.mxu0 %v7080_v2  ;;  %v3665_v21 = vsub.f32 %v7426_v54, %v8423_v27  ;;  %v2674_v49 = vadd.f32 %v2673_v61, %v7131_v36  ;;  %v7442_v2 = vand.u32 4294901760, %v1961_v41 }
 0x2b4   : > { %3419 = vmatmul.f32.vlgmr.msrb.gmra.mxu3 %v7071_v1 }
 0x2b5   : > { %3334 = vmatmul.f32.vlgmr.msrb.gmra.mxu2 %v7071_v1  ;;  %v7436_v11 = vadd.f32 %v2604_v10, %v2476_v17  ;;  %v3666_v47 = vand.u32 4294901760, %v3665_v21  ;;  %v7445_v1 = vsub.f32 %v1961_v41, %v7442_v2  ;;  %3492 = vmatpush.msra.mxu0 %v7442_v2  ;;  %v1959_v17 = vld [vmem:[#allocation3 + $0xa8] sm:$0xff] }
 0x2b6   : > { %3943 = vmatpush.msra.mxu3 %v7442_v2 }
 0x2b7   : > { %v3020_v13 = vpop.f32.mrf.mxu3  ;;  %3667 = vmatpush.msra.mxu1 %v3666_v47  ;;  %3819 = vmatpush.msra.mxu2 %v7445_v1  ;;  %v8426_v36 = vand.u32 4294901760, %v7445_v1 }
 0x2b8   : > { %v2677_v50 = vpop.f32.mrf.mxu0  ;;  %v2770_v63 = vpop.f32.mrf.mxu1 }
 0x2b9   : > { %v2771_v6 = vadd.f32 %v2770_v63, %v2674_v49  ;;  %v2859_v38 = vpop.f32.mrf.mxu2  ;;  %v7461_v63 = vand.u32 4294901760, %v1959_v17 }
 0x2bb   : > { %v2860_v10 = vadd.f32 %v2859_v38, %v2771_v6  ;;  %3114 = vmatmul.f32.gmra.mxu0 %v7099_v31  ;;  %3211 = vmatmul.f32.vlgmr.msrb.gmra.mxu1 %v7088_v37  ;;  %v3671_v6 = vsub.f32 %v7445_v1, %v8426_v36  ;;  %v2678_v38 = vadd.f32 %v2677_v50, %v7150_v22 }
 0x2bc   : > { %3423 = vmatmul.f32.gmra.mxu3 %v7090_v33  ;;  %v7464_v31 = vsub.f32 %v1959_v17, %v7461_v63  ;;  %3494 = vmatpush.msra.mxu0 %v7461_v63 }
 0x2bd   : > { %3338 = vmatmul.f32.gmra.mxu2 %v7090_v33  ;;  %v7455_v47 = vadd.f32 %v3020_v13, %v2860_v10  ;;  %v3672_v41 = vand.u32 4294901760, %v3671_v6  ;;  %3945 = vmatpush.msra.mxu3 %v7461_v63  ;;  %v1957_v6 = vld [vmem:[#allocation3 + $0x98] sm:$0xff] }
 0x2be   : > { %3822 = vmatpush.msra.mxu2 %v7464_v31  ;;  %v8429_v22 = vand.u32 4294901760, %v7464_v31 }
 0x2bf   : > { %v3024_v61 = vpop.f32.mrf.mxu3  ;;  %3673 = vmatpush.msra.mxu1 %v3672_v41  ;;  %v7480_v41 = vand.u32 4294901760, %v1957_v6 }
 0x2c0   : > { %v2681_v21 = vpop.f32.mrf.mxu0  ;;  %v2774_v49 = vpop.f32.mrf.mxu1 }
 0x2c1   : > { %v2775_v27 = vadd.f32 %v2774_v49, %v2678_v38  ;;  %v2867_v37 = vpop.f32.mrf.mxu2  ;;  %3496 = vmatpush.msra.mxu0 %v7480_v41  ;;  %3947 = vmatpush.msra.mxu3 %v7480_v41 }
 0x2c3   : > { %v2868_v13 = vadd.f32 %v2867_v37, %v2775_v27  ;;  %3119 = vmatmul.f32.gmra.mxu0 %v7117_v42  ;;  %3217 = vmatmul.f32.gmra.mxu1 %v7107_v44  ;;  %v3677_v37 = vsub.f32 %v7464_v31, %v8429_v22  ;;  %v2682_v27 = vadd.f32 %v2681_v21, %v7169_v23 }
 0x2c4   : > { %3427 = vmatmul.f32.gmra.mxu3 %v7109_v16  ;;  %v7483_v42 = vsub.f32 %v1957_v6, %v7480_v41 }
 0x2c5   : > { %3342 = vmatmul.f32.gmra.mxu2 %v7109_v16  ;;  %v7474_v50 = vadd.f32 %v3024_v61, %v2868_v13  ;;  %v3678_v49 = vand.u32 4294901760, %v3677_v37  ;;  %v1955_v37 = vld [vmem:[#allocation3 + $0x88] sm:$0xff] }
 0x2c6   : > { %3825 = vmatpush.msra.mxu2 %v7483_v42  ;;  %v8432_v23 = vand.u32 4294901760, %v7483_v42 }
 0x2c7   : > { %v3028_v10 = vpop.f32.mrf.mxu3  ;;  %3679 = vmatpush.msra.mxu1 %v3678_v49  ;;  %v7499_v49 = vand.u32 4294901760, %v1955_v37 }
 0x2c8   : > { %v2685_v38 = vpop.f32.mrf.mxu0  ;;  %v2778_v17 = vpop.f32.mrf.mxu1 }
 0x2c9   : > { %v2779_v36 = vadd.f32 %v2778_v17, %v2682_v27  ;;  %v2875_v44 = vpop.f32.mrf.mxu2  ;;  %3498 = vmatpush.msra.mxu0 %v7499_v49  ;;  %3949 = vmatpush.msra.mxu3 %v7499_v49 }
 0x2cb   : > { %v2876_v61 = vadd.f32 %v2875_v44, %v2779_v36  ;;  %3124 = vmatmul.f32.gmra.mxu0 %v7136_v12  ;;  %3223 = vmatmul.f32.gmra.mxu1 %v7125_v5  ;;  %v3683_v44 = vsub.f32 %v7483_v42, %v8432_v23  ;;  %v2686_v36 = vadd.f32 %v2685_v38, %v7188_v26 }
 0x2cc   : > { %3431 = vmatmul.f32.gmra.mxu3 %v7127_v59  ;;  %v7502_v12 = vsub.f32 %v1955_v37, %v7499_v49 }
 0x2cd   : > { %3346 = vmatmul.f32.gmra.mxu2 %v7127_v59  ;;  %v7493_v21 = vadd.f32 %v3028_v10, %v2876_v61  ;;  %v3684_v17 = vand.u32 4294901760, %v3683_v44  ;;  %v1953_v44 = vld [vmem:[#allocation3 + $0x78] sm:$0xff] }
 0x2ce   : > { %3828 = vmatpush.msra.mxu2 %v7502_v12  ;;  %v8435_v26 = vand.u32 4294901760, %v7502_v12 }
 0x2cf   : > { %v3032_v13 = vpop.f32.mrf.mxu3  ;;  %3685 = vmatpush.msra.mxu1 %v3684_v17  ;;  %v7518_v17 = vand.u32 4294901760, %v1953_v44 }
 0x2d0   : > { %v2689_v27 = vpop.f32.mrf.mxu0  ;;  %v2782_v6 = vpop.f32.mrf.mxu1 }
 0x2d1   : > { %v2783_v22 = vadd.f32 %v2782_v6, %v2686_v36  ;;  %v2883_v5 = vpop.f32.mrf.mxu2  ;;  %3500 = vmatpush.msra.mxu0 %v7518_v17  ;;  %3951 = vmatpush.msra.mxu3 %v7518_v17 }
 0x2d3   : > { %v2884_v10 = vadd.f32 %v2883_v5, %v2783_v22  ;;  %3129 = vmatmul.f32.gmra.mxu0 %v7155_v0  ;;  %3229 = vmatmul.f32.gmra.mxu1 %v7144_v29  ;;  %v3689_v5 = vsub.f32 %v7502_v12, %v8435_v26  ;;  %v2690_v22 = vadd.f32 %v2689_v27, %v7207_v25 }
 0x2d4   : > { %3435 = vmatmul.f32.gmra.mxu3 %v7146_v19  ;;  %v7521_v0 = vsub.f32 %v1953_v44, %v7518_v17 }
 0x2d5   : > { %3350 = vmatmul.f32.gmra.mxu2 %v7146_v19  ;;  %v7512_v38 = vadd.f32 %v3032_v13, %v2884_v10  ;;  %v3690_v6 = vand.u32 4294901760, %v3689_v5  ;;  %v1951_v5 = vld [vmem:[#allocation3 + $0x68] sm:$0xff] }
 0x2d6   : > { %3831 = vmatpush.msra.mxu2 %v7521_v0  ;;  %v8438_v25 = vand.u32 4294901760, %v7521_v0 }
 0x2d7   : > { %v3036_v61 = vpop.f32.mrf.mxu3  ;;  %3691 = vmatpush.msra.mxu1 %v3690_v6  ;;  %v7537_v6 = vand.u32 4294901760, %v1951_v5 }
 0x2d8   : > { %v2693_v36 = vpop.f32.mrf.mxu0  ;;  %v2786_v37 = vpop.f32.mrf.mxu1 }
 0x2d9   : > { %v2787_v23 = vadd.f32 %v2786_v37, %v2690_v22  ;;  %v2891_v29 = vpop.f32.mrf.mxu2  ;;  %3502 = vmatpush.msra.mxu0 %v7537_v6  ;;  %3953 = vmatpush.msra.mxu3 %v7537_v6 }
 0x2db   : > { %v2892_v13 = vadd.f32 %v2891_v29, %v2787_v23  ;;  %3134 = vmatmul.f32.gmra.mxu0 %v7174_v34  ;;  %3235 = vmatmul.f32.gmra.mxu1 %v7163_v51  ;;  %v3695_v29 = vsub.f32 %v7521_v0, %v8438_v25  ;;  %v2694_v23 = vadd.f32 %v2693_v36, %v7226_v20 }
 0x2dc   : > { %3439 = vmatmul.f32.gmra.mxu3 %v7165_v7  ;;  %v7540_v34 = vsub.f32 %v1951_v5, %v7537_v6 }
 0x2dd   : > { %3354 = vmatmul.f32.gmra.mxu2 %v7165_v7  ;;  %v7531_v27 = vadd.f32 %v3036_v61, %v2892_v13  ;;  %v3696_v37 = vand.u32 4294901760, %v3695_v29  ;;  %v1949_v29 = vld [vmem:[#allocation3 + $0x58] sm:$0xff] }
 0x2de   : > { %3834 = vmatpush.msra.mxu2 %v7540_v34  ;;  %v8441_v20 = vand.u32 4294901760, %v7540_v34 }
 0x2df   : > { %v3040_v10 = vpop.f32.mrf.mxu3  ;;  %3697 = vmatpush.msra.mxu1 %v3696_v37  ;;  %v7556_v37 = vand.u32 4294901760, %v1949_v29 }
 0x2e0   : > { %v2697_v22 = vpop.f32.mrf.mxu0  ;;  %v2790_v44 = vpop.f32.mrf.mxu1 }
 0x2e1   : > { %v2791_v26 = vadd.f32 %v2790_v44, %v2694_v23  ;;  %v2899_v51 = vpop.f32.mrf.mxu2  ;;  %3504 = vmatpush.msra.mxu0 %v7556_v37  ;;  %3955 = vmatpush.msra.mxu3 %v7556_v37 }
 0x2e3   : > { %v2900_v61 = vadd.f32 %v2899_v51, %v2791_v26  ;;  %3139 = vmatmul.f32.gmra.mxu0 %v7193_v15  ;;  %3241 = vmatmul.f32.gmra.mxu1 %v7182_v45  ;;  %v3701_v51 = vsub.f32 %v7540_v34, %v8441_v20  ;;  %v2698_v26 = vadd.f32 %v2697_v22, %v7245_v9 }
 0x2e4   : > { %3443 = vmatmul.f32.gmra.mxu3 %v7184_v48  ;;  %v7559_v15 = vsub.f32 %v1949_v29, %v7556_v37 }
 0x2e5   : > { %3358 = vmatmul.f32.gmra.mxu2 %v7184_v48  ;;  %v7550_v36 = vadd.f32 %v3040_v10, %v2900_v61  ;;  %v3702_v44 = vand.u32 4294901760, %v3701_v51  ;;  %v1947_v51 = vld [vmem:[#allocation3 + $0x48] sm:$0xff] }
 0x2e6   : > { %3837 = vmatpush.msra.mxu2 %v7559_v15  ;;  %v8444_v9 = vand.u32 4294901760, %v7559_v15 }
 0x2e7   : > { %v3044_v13 = vpop.f32.mrf.mxu3  ;;  %3703 = vmatpush.msra.mxu1 %v3702_v44  ;;  %v7575_v44 = vand.u32 4294901760, %v1947_v51 }
 0x2e8   : > { %v2701_v23 = vpop.f32.mrf.mxu0  ;;  %v2794_v5 = vpop.f32.mrf.mxu1 }
 0x2e9   : > { %v2795_v25 = vadd.f32 %v2794_v5, %v2698_v26  ;;  %v2907_v45 = vpop.f32.mrf.mxu2  ;;  %3506 = vmatpush.msra.mxu0 %v7575_v44  ;;  %3957 = vmatpush.msra.mxu3 %v7575_v44 }
 0x2eb   : > { %v2908_v10 = vadd.f32 %v2907_v45, %v2795_v25  ;;  %3144 = vmatmul.f32.gmra.mxu0 %v7212_v35  ;;  %3247 = vmatmul.f32.gmra.mxu1 %v7201_v28  ;;  %v3707_v45 = vsub.f32 %v7559_v15, %v8444_v9  ;;  %v2702_v25 = vadd.f32 %v2701_v23, %v7264_v32 }
 0x2ec   : > { %3447 = vmatmul.f32.gmra.mxu3 %v7203_v53  ;;  %v7578_v35 = vsub.f32 %v1947_v51, %v7575_v44 }
 0x2ed   : > { %3362 = vmatmul.f32.gmra.mxu2 %v7203_v53  ;;  %v7569_v22 = vadd.f32 %v3044_v13, %v2908_v10  ;;  %v3708_v5 = vand.u32 4294901760, %v3707_v45  ;;  %v1945_v45 = vld [vmem:[#allocation3 + $0x38] sm:$0xff] }
 0x2ee   : > { %3840 = vmatpush.msra.mxu2 %v7578_v35  ;;  %v8447_v32 = vand.u32 4294901760, %v7578_v35 }
 0x2ef   : > { %v3048_v61 = vpop.f32.mrf.mxu3  ;;  %3709 = vmatpush.msra.mxu1 %v3708_v5  ;;  %v7594_v5 = vand.u32 4294901760, %v1945_v45 }
 0x2f0   : > { %v2705_v26 = vpop.f32.mrf.mxu0  ;;  %v2798_v29 = vpop.f32.mrf.mxu1 }
 0x2f1   : > { %v2799_v20 = vadd.f32 %v2798_v29, %v2702_v25  ;;  %v2915_v28 = vpop.f32.mrf.mxu2  ;;  %3508 = vmatpush.msra.mxu0 %v7594_v5  ;;  %3959 = vmatpush.msra.mxu3 %v7594_v5 }
 0x2f3   : > { %v2916_v13 = vadd.f32 %v2915_v28, %v2799_v20  ;;  %3149 = vmatmul.f32.gmra.mxu0 %v7231_v4  ;;  %3253 = vmatmul.f32.gmra.mxu1 %v7220_v58  ;;  %v3713_v28 = vsub.f32 %v7578_v35, %v8447_v32  ;;  %v2706_v20 = vadd.f32 %v2705_v26, %v7283_v18  ;;  %v8718_v18 = vld [vmem:[#allocation105_spill] sm:$0xff] }
 0x2f4   : > { %3451 = vmatmul.f32.gmra.mxu3 %v7222_v56  ;;  %v7597_v4 = vsub.f32 %v1945_v45, %v7594_v5 }
 0x2f5   : > { %3366 = vmatmul.f32.gmra.mxu2 %v7222_v56  ;;  %v7588_v23 = vadd.f32 %v3048_v61, %v2916_v13  ;;  %v3714_v29 = vand.u32 4294901760, %v3713_v28 }
 0x2f6   : > { %3843 = vmatpush.msra.mxu2 %v7597_v4  ;;  %v8451_v26 = vand.u32 4294901760, %v7597_v4 }
 0x2f7   : > { %v3052_v10 = vpop.f32.mrf.mxu3  ;;  %3715 = vmatpush.msra.mxu1 %v3714_v29 }
 0x2f8   : > { %v2709_v25 = vpop.f32.mrf.mxu0  ;;  %v2802_v51 = vpop.f32.mrf.mxu1 }
 0x2f9   : > { %v2803_v9 = vadd.f32 %v2802_v51, %v2706_v20  ;;  %v2923_v58 = vpop.f32.mrf.mxu2  ;;  %v1943_v20 = vld [vmem:[#allocation3 + $0x28] sm:$0xff] }
 0x2fa   : > { %v7613_v32 = vand.u32 4294901760, %v1943_v20 }
 0x2fb   : > { %v2924_v61 = vadd.f32 %v2923_v58, %v2803_v9  ;;  %3154 = vmatmul.f32.gmra.mxu0 %v7250_v14  ;;  %3259 = vmatmul.f32.gmra.mxu1 %v7239_v46  ;;  %v3719_v58 = vsub.f32 %v7597_v4, %v8451_v26  ;;  %v2710_v9 = vadd.f32 %v2709_v25, %v7302_v43  ;;  %v8720_v26 = vld [vmem:[#allocation108_spill] sm:$0xff]  ;;  %v8721_v43 = vld [vmem:[#allocation109_spill] sm:$0xff] }
 0x2fc   : > { %3455 = vmatmul.f32.gmra.mxu3 %v8718_v18  ;;  %3510 = vmatpush.msra.mxu0 %v7613_v32 }
 0x2fd   : > { %3370 = vmatmul.f32.gmra.mxu2 %v8718_v18  ;;  %v7607_v13 = vadd.f32 %v3052_v10, %v2924_v61  ;;  %v3720_v29 = vand.u32 4294901760, %v3719_v58  ;;  %v7616_v18 = vsub.f32 %v1943_v20, %v7613_v32  ;;  %v8719_v61 = vld [vmem:[#allocation110_spill] sm:$0xff]  ;;  %3961 = vmatpush.msra.mxu3 %v7613_v32  ;;  %v1941_v20 = vld [vmem:[#allocation3 + $0x18] sm:$0xff] }
 0x2ff   : > { %v3056_v28 = vpop.f32.mrf.mxu3  ;;  %3721 = vmatpush.msra.mxu1 %v3720_v29  ;;  %3846 = vmatpush.msra.mxu2 %v7616_v18  ;;  %v8457_v25 = vand.u32 4294901760, %v7616_v18 }
 0x300   : > { %v2713_v45 = vpop.f32.mrf.mxu0  ;;  %v2806_v51 = vpop.f32.mrf.mxu1 }
 0x301   : > { %v2807_v46 = vadd.f32 %v2806_v51, %v2710_v9  ;;  %v2931_v14 = vpop.f32.mrf.mxu2 }
 0x303   : > { %v2932_v10 = vadd.f32 %v2931_v14, %v2807_v46  ;;  %3159 = vmatmul.f32.gmra.mxu0 %v8719_v61  ;;  %3265 = vmatmul.f32.gmra.mxu1 %v8720_v26  ;;  %v3725_v46 = vsub.f32 %v7616_v18, %v8457_v25  ;;  %v2714_v14 = vadd.f32 %v2713_v45, %v7321_v30  ;;  %v7632_v61 = vand.u32 4294901760, %v1941_v20  ;;  %v8723_v25 = vld [vmem:[#allocation112_spill] sm:$0xff]  ;;  %v8724_v30 = vld [vmem:[#allocation113_spill] sm:$0xff] }
 0x304   : > { %3459 = vmatmul.f32.gmra.mxu3 %v8721_v43 }
 0x305   : > { %3374 = vmatmul.f32.gmra.mxu2 %v8721_v43  ;;  %v7626_v58 = vadd.f32 %v3056_v28, %v2932_v10  ;;  %v3726_v26 = vand.u32 4294901760, %v3725_v46  ;;  %v7635_v43 = vsub.f32 %v1941_v20, %v7632_v61  ;;  %3512 = vmatpush.msra.mxu0 %v7632_v61  ;;  %v8722_v10 = vld [vmem:[#allocation114_spill] sm:$0xff] }
 0x306   : > { %3963 = vmatpush.msra.mxu3 %v7632_v61 }
 0x307   : > { %v3060_v9 = vpop.f32.mrf.mxu3  ;;  %3727 = vmatpush.msra.mxu1 %v3726_v26  ;;  %3849 = vmatpush.msra.mxu2 %v7635_v43  ;;  %v8463_v45 = vand.u32 4294901760, %v7635_v43 }
 0x308   : > { %v2717_v51 = vpop.f32.mrf.mxu0  ;;  %v2810_v29 = vpop.f32.mrf.mxu1 }
 0x309   : > { %v2811_v56 = vadd.f32 %v2810_v29, %v2714_v14  ;;  %v2939_v53 = vpop.f32.mrf.mxu2  ;;  %v1939_v14 = vld [vmem:[#allocation3 + $0x8] sm:$0xff] }
 0x30b   : > { %v2940_v28 = vadd.f32 %v2939_v53, %v2811_v56  ;;  %3164 = vmatmul.f32.gmra.mxu0 %v8722_v10  ;;  %3271 = vmatmul.f32.gmra.mxu1 %v8723_v25  ;;  %v3731_v53 = vsub.f32 %v7635_v43, %v8463_v45  ;;  %v2718_v56 = vadd.f32 %v2717_v51, %v7340_v3  ;;  %v7651_v10 = vand.u32 4294901760, %v1939_v14  ;;  %v8726_v45 = vld [vmem:[#allocation116_spill] sm:$0xff]  ;;  %v8727_v3 = vld [vmem:[#allocation117_spill] sm:$0xff] }
 0x30c   : > { %3463 = vmatmul.f32.gmra.mxu3 %v8724_v30 }
 0x30d   : > { %3378 = vmatmul.f32.gmra.mxu2 %v8724_v30  ;;  %v7645_v26 = vadd.f32 %v3060_v9, %v2940_v28  ;;  %v3732_v25 = vand.u32 4294901760, %v3731_v53  ;;  %v7654_v30 = vsub.f32 %v1939_v14, %v7651_v10  ;;  %3514 = vmatpush.msra.mxu0 %v7651_v10  ;;  %v8725_v28 = vld [vmem:[#allocation118_spill] sm:$0xff]  ;;  %v1977_v14 = vld [vmem:[#allocation3 + $0x138] sm:$0xff] }
 0x30e   : > { %3965 = vmatpush.msra.mxu3 %v7651_v10  ;;  %v7672_v19 = vand.u32 4294901760, %v1977_v14 }
 0x30f   : > { %v3064_v46 = vpop.f32.mrf.mxu3  ;;  %3733 = vmatpush.msra.mxu1 %v3732_v25  ;;  %3852 = vmatpush.msra.mxu2 %v7654_v30  ;;  %v8467_v51 = vand.u32 4294901760, %v7654_v30 }
 0x310   : > { %v2721_v20 = vpop.f32.mrf.mxu0  ;;  %v2814_v29 = vpop.f32.mrf.mxu1 }
 0x311   : > { %v2815_v48 = vadd.f32 %v2814_v29, %v2718_v56  ;;  %v2947_v7 = vpop.f32.mrf.mxu2  ;;  %v2722_v53 = vadd.f32 %v2721_v20, %v7368_v8  ;;  %4302 = vmatpush.msrb.mxu2 %v7672_v19  ;;  %v8732_v8 = vld [vmem:[#allocation121_spill] sm:$0xff]  ;;  %v8733_v20 = vld [vmem:[#allocation127_spill] sm:$0xff] }
 0x313   : > { %v2948_v9 = vadd.f32 %v2947_v7, %v2815_v48  ;;  %3169 = vmatmul.f32.gmra.mxu0 %v8725_v28  ;;  %3277 = vmatmul.f32.gmra.mxu1 %v8726_v45  ;;  %v3737_v7 = vsub.f32 %v7654_v30, %v8467_v51  ;;  %v8728_v48 = vand.u32 4294901760, %v7351_v52  ;;  %v8730_v52 = vld [vmem:[#allocation122_spill] sm:$0xff] }
 0x314   : > { %3467 = vmatmul.f32.gmra.mxu3 %v8727_v3 }
 0x315   : > { %3382 = vmatmul.f32.gmra.mxu2 %v8727_v3  ;;  %v7664_v25 = vadd.f32 %v3064_v46, %v2948_v9  ;;  %4066 = vmatpush.msrb.mxu0 %v8728_v48  ;;  %v3738_v28 = vand.u32 4294901760, %v3737_v7  ;;  %v8729_v3 = vand.u32 4294901760, %v7381_v60  ;;  %v8731_v48 = vld [vmem:[#allocation120_spill] sm:$0xff]  ;;  %v8734_v7 = vand.u32 4294901760, %v7406_v55 }
 0x317   : > { %v3068_v56 = vpop.f32.mrf.mxu3  ;;  %4070 = vmatpush.msrb.mxu0 %v8729_v3  ;;  %3739 = vmatpush.msra.mxu1 %v3738_v28  ;;  %v7689_v3 = vsub.f32 %v1977_v14, %v7672_v19 }
 0x318   : > { %v2725_v29 = vpop.f32.mrf.mxu0  ;;  %v2818_v45 = vpop.f32.mrf.mxu1 }
 0x319   : > { %v2819_v46 = vadd.f32 %v2818_v45, %v2722_v53  ;;  %v2955_v9 = vpop.f32.mrf.mxu2  ;;  %4193 = vmatpush.msrb.mxu1 %v8733_v20  ;;  %4074 = vmatpush.msrb.mxu0 %v8734_v7  ;;  %v2726_v45 = vadd.f32 %v2725_v29, %v7396_v39  ;;  %v8735_v53 = vand.u32 4294901760, %v7426_v54  ;;  %v8737_v39 = vld [vmem:[#allocation126_spill] sm:$0xff]  ;;  %v4452_v14 = vand.u32 4294901760, %v7689_v3  ;;  %v8739_v54 = vld [vmem:[#allocation125_spill] sm:$0xff] }
 0x31b   : > { %v2956_v51 = vadd.f32 %v2955_v9, %v2819_v46  ;;  %3174 = vmatmul.f32.gmra.mxu0 %v8730_v52  ;;  %3283 = vmatmul.f32.gmra.mxu1 %v8731_v48 }
 0x31c   : > { %3471 = vmatmul.f32.gmra.mxu3 %v8732_v8  ;;  %4195 = vmatpush.msrb.mxu1 %v7378_v62 }
 0x31d   : > { %3386 = vmatmul.f32.gmra.mxu2 %v8732_v8  ;;  %v7684_v60 = vadd.f32 %v3068_v56, %v2956_v51  ;;  %4078 = vmatpush.msrb.mxu0 %v8735_v53  ;;  %v8736_v51 = vand.u32 4294901760, %v7445_v1  ;;  %v8738_v56 = vld [vmem:[#allocation124_spill] sm:$0xff]  ;;  %v4453_v1 = vsub.f32 %v7689_v3, %v4452_v14  ;;  %v8741_v53 = vand.u32 4294901760, %v7483_v42 }
 0x31e   : > { %4197 = vmatpush.msrb.mxu1 %v7403_v40  ;;  %v8740_v40 = vand.u32 4294901760, %v7464_v31  ;;  %v8742_v31 = vand.u32 4294901760, %v7502_v12  ;;  %v8746_v42 = vand.u32 4294901760, %v7521_v0  ;;  %v8747_v12 = vand.u32 4294901760, %v7540_v34  ;;  %v8750_v34 = vld [vmem:[#allocation133_spill] sm:$0xff] }
 0x31f   : > { %v3072_v28 = vpop.f32.mrf.mxu3  ;;  %4082 = vmatpush.msrb.mxu0 %v8736_v51  ;;  %v8748_v0 = vand.u32 4294901760, %v7559_v15  ;;  %v8753_v15 = vld [vmem:[#allocation31_spill] sm:$0xff] }
 0x320   : > { %v2729_v46 = vpop.f32.mrf.mxu0  ;;  %v2822_v9 = vpop.f32.mrf.mxu1  ;;  %4199 = vmatpush.msrb.mxu1 %v7423_v24 }
 0x321   : > { %v2823_v20 = vadd.f32 %v2822_v9, %v2726_v45  ;;  %v2963_v55 = vpop.f32.mrf.mxu2  ;;  %4086 = vmatpush.msrb.mxu0 %v8740_v40  ;;  %v2730_v29 = vadd.f32 %v2729_v46, %v7418_v57  ;;  %v4454_v45 = vand.u32 4294901760, %v4453_v1  ;;  %v8744_v57 = vld [vmem:[#allocation129_spill] sm:$0xff]  ;;  %v8745_v46 = vld [vmem:[#allocation130_spill] sm:$0xff] }
 0x322   : > { %4201 = vmatpush.msrb.mxu1 %v7442_v2 }
 0x323   : > { %v2964_v62 = vadd.f32 %v2963_v55, %v2823_v20  ;;  %3179 = vmatmul.f32.gmra.mxu0 %v8737_v39  ;;  %3289 = vmatmul.f32.gmra.mxu1 %v8738_v56 }
 0x324   : > { %3475 = vmatmul.f32.gmra.mxu3 %v8739_v54  ;;  %4203 = vmatpush.msrb.mxu1 %v7461_v63 }
 0x325   : > { %3390 = vmatmul.f32.gmra.mxu2 %v8739_v54  ;;  %v7708_v24 = vadd.f32 %v3072_v28, %v2964_v62  ;;  %4090 = vmatpush.msrb.mxu0 %v8741_v53  ;;  %v8743_v28 = vld [vmem:[#allocation131_spill] sm:$0xff] }
 0x326   : > { %4205 = vmatpush.msrb.mxu1 %v7480_v41  ;;  %4455 = vmatpush.msrb.mxu3 %v4454_v45  ;;  %v8751_v45 = vld [vmem:[#allocation36_spill] sm:$0xff] }
 0x327   : > { %v3076_v7 = vpop.f32.mrf.mxu3  ;;  %4094 = vmatpush.msrb.mxu0 %v8742_v31 }
 0x328   : > { %v2733_v2 = vpop.f32.mrf.mxu0  ;;  %v2826_v9 = vpop.f32.mrf.mxu1  ;;  %4207 = vmatpush.msrb.mxu1 %v7499_v49 }
 0x329   : > { %v2827_v20 = vadd.f32 %v2826_v9, %v2730_v29  ;;  %v2971_v55 = vpop.f32.mrf.mxu2  ;;  %4098 = vmatpush.msrb.mxu0 %v8746_v42  ;;  %v2734_v49 = vadd.f32 %v2733_v2, %v7436_v11  ;;  %v8752_v11 = vld [vmem:[#allocation30_spill] sm:$0xff]  ;;  %v8759_v42 = vld [vmem:[#allocation37_spill] sm:$0xff] }
 0x32a   : > { %4209 = vmatpush.msrb.mxu1 %v7518_v17  ;;  %v8749_v17 = vand.u32 4294901760, %v7578_v35 }
 0x32b   : > { %v2972_v63 = vadd.f32 %v2971_v55, %v2827_v20  ;;  %3184 = vmatmul.f32.gmra.mxu0 %v8743_v28  ;;  %3295 = vmatmul.f32.gmra.mxu1 %v8744_v57  ;;  %v4971_v55 = vld [vmem:[%s7750_s6] sm:$0xff] }
 0x32c   : > { %3479 = vmatmul.f32.gmra.mxu3 %v8745_v46  ;;  %4102 = vmatpush.msrb.mxu0 %v8747_v12 }
 0x32d   : > { %3394 = vmatmul.f32.gmra.mxu2 %v8745_v46  ;;  %v7725_v41 = vadd.f32 %v3076_v7, %v2972_v63  ;;  %4211 = vmatpush.msrb.mxu1 %v7537_v6  ;;  %v8754_v6 = vand.u32 4294901760, %v7597_v4  ;;  %v8758_v63 = vld [vmem:[#allocation28_spill] sm:$0xff] }
 0x32e   : > { %4106 = vmatpush.msrb.mxu0 %v8748_v0 }
 0x32f   : > { %v3080_v51 = vpop.f32.mrf.mxu3  ;;  %4213 = vmatpush.msrb.mxu1 %v7556_v37 }
 0x330   : > { %v2830_v62 = vpop.f32.mrf.mxu1  ;;  %v3110_v1 = vpop.f32.mrf.mxu0  ;;  %4110 = vmatpush.msrb.mxu0 %v8749_v17 }
 0x331   : > { %v2831_v40 = vadd.f32 %v2830_v62, %v2734_v49  ;;  %v2979_v29 = vpop.f32.mrf.mxu2  ;;  %4215 = vmatpush.msrb.mxu1 %v7575_v44  ;;  %v3111_v35 = vadd.f32 %v3110_v1, %v7455_v47  ;;  %v8755_v44 = vand.u32 4294901760, %v7616_v18  ;;  %v8757_v47 = vld [vmem:[#allocation39_spill] sm:$0xff]  ;;  %v1975_v18 = vld [vmem:[#allocation3 + $0x128] sm:$0xff]  ;;  %v5003_v49 = vmul.f32 0.1, %v4971_v55 }
 0x332   : > { %4114 = vmatpush.msrb.mxu0 %v8754_v6  ;;  %v7764_v12 = vand.u32 4294901760, %v1975_v18 }
 0x333   : > { %v2980_v7 = vadd.f32 %v2979_v29, %v2831_v40  ;;  %3301 = vmatmul.f32.gmra.mxu1 %v8750_v34  ;;  %3520 = vmatmul.f32.vlgmr.msra.gmra.mxu0 %v8751_v45  ;;  %v8762_v45 = vld [vmem:[#allocation9_spill] sm:$0xff] }
 0x334   : > { %3969 = vmatmul.f32.vlgmr.msra.gmra.mxu3 %v8752_v11  ;;  %4217 = vmatpush.msrb.mxu1 %v7594_v5  ;;  %v8756_v5 = vand.u32 4294901760, %v7635_v43  ;;  %v7784_v11 = vsub.f32 %v1975_v18, %v7764_v12 }
 0x335   : > { %3855 = vmatmul.f32.vlgmr.msra.gmra.mxu2 %v8753_v15  ;;  %v7744_v37 = vadd.f32 %v3080_v51, %v2980_v7  ;;  %4118 = vmatpush.msrb.mxu0 %v8755_v44  ;;  %v8761_v51 = vld [vmem:[#allocation34_spill] sm:$0xff]  ;;  %v4973_v7 = vld [vmem:[%s7750_s6 + $0x10] sm:$0xff]  ;;  %v8764_v15 = vld [vmem:[#allocation33_spill] sm:$0xff] }
 0x336   : > { %4219 = vmatpush.msrb.mxu1 %v7613_v32  ;;  %v8760_v32 = vand.u32 4294901760, %v7654_v30  ;;  %4304 = vmatpush.msrb.mxu2 %v7764_v12  ;;  %v4458_v44 = vand.u32 4294901760, %v7784_v11 }
 0x337   : > { %v3420_v53 = vpop.f32.mrf.mxu3  ;;  %4122 = vmatpush.msrb.mxu0 %v8756_v5 }
 0x338   : > { %v3115_v2 = vpop.f32.mrf.mxu0  ;;  %v3212_v4 = vpop.f32.mrf.mxu1  ;;  %4221 = vmatpush.msrb.mxu1 %v7632_v61 }
 0x339   : > { %v3213_v9 = vadd.f32 %v3212_v4, %v3111_v35  ;;  %v3335_v20 = vpop.f32.mrf.mxu2  ;;  %4126 = vmatpush.msrb.mxu0 %v8760_v32  ;;  %v3116_v61 = vadd.f32 %v3115_v2, %v7474_v50  ;;  %v8763_v50 = vld [vmem:[#allocation32_spill] sm:$0xff]  ;;  %v5005_v35 = vmul.f32 0.1, %v4973_v7  ;;  %v4975_v32 = vld [vmem:[%s7750_s6 + $0x20] sm:$0xff] }
 0x33a   : > { %4223 = vmatpush.msrb.mxu1 %v7651_v10 }
 0x33b   : > { %v3336_v31 = vadd.f32 %v3335_v20, %v3213_v9  ;;  %3528 = vmatmul.f32.gmra.mxu0 %v8757_v47  ;;  %3741 = vmatmul.f32.vlgmr.msra.gmra.mxu1 %v8758_v63  ;;  %v4459_v20 = vsub.f32 %v7784_v11, %v4458_v44 }
 0x33c   : > { %3975 = vmatmul.f32.gmra.mxu3 %v8759_v42  ;;  %4553 = vmatpush.msra.mxu0 %v7689_v3 }
 0x33d   : > { %v3421_v43 = vadd.f32 %v3420_v53, %v3336_v31  ;;  %3860 = vmatmul.f32.gmra.mxu2 %v8761_v51  ;;  %4657 = vmatpush.msra.mxu1 %v7672_v19  ;;  %v8765_v53 = vld [vmem:[#allocation38_spill] sm:$0xff]  ;;  %v4460_v42 = vand.u32 4294901760, %v4459_v20  ;;  %v8767_v51 = vld [vmem:[#allocation35_spill] sm:$0xff] }
 0x33e   : > { %4556 = vmatpush.msra.mxu0 %v7784_v11 }
 0x33f   : > { %v4939_v62 = vmul.f32 0.5, %v3421_v43  ;;  %v3424_v1 = vpop.f32.mrf.mxu3  ;;  %4659 = vmatpush.msra.mxu1 %v7764_v12  ;;  %4461 = vmatpush.msrb.mxu3 %v4460_v42 }
 0x340   : > { %v3120_v30 = vpop.f32.mrf.mxu0  ;;  %v3218_v0 = vpop.f32.mrf.mxu1 }
 0x341   : > { %v5035_v40 = vadd.f32 %v5003_v49, %v4939_v62  ;;  %v3219_v29 = vadd.f32 %v3218_v0, %v3116_v61  ;;  %v3339_v17 = vpop.f32.mrf.mxu2  ;;  %v3121_v2 = vadd.f32 %v3120_v30, %v7493_v21  ;;  %v8766_v49 = vld [vmem:[#allocation11_spill] sm:$0xff]  ;;  %v8768_v21 = vld [vmem:[#allocation41_spill] sm:$0xff]  ;;  %v5007_v62 = vmul.f32 0.1, %v4975_v32 }
 0x343   : > { %5067 = vst [vmem:[%s7778_s8] sm:$0xff] %v5035_v40  ;;  %v3340_v10 = vadd.f32 %v3339_v17, %v3219_v29  ;;  %3536 = vmatmul.f32.gmra.mxu0 %v8762_v45  ;;  %3745 = vmatmul.f32.gmra.mxu1 %v8763_v50 }
 0x344   : > { %3981 = vmatmul.f32.gmra.mxu3 %v8764_v15  ;;  %v4977_v15 = vld [vmem:[%s7750_s6 + $0x30] sm:$0xff] }
 0x345   : > { %v3425_v6 = vadd.f32 %v3424_v1, %v3340_v10  ;;  %3865 = vmatmul.f32.gmra.mxu2 %v8765_v53  ;;  %v8769_v1 = vld [vmem:[#allocation40_spill] sm:$0xff]  ;;  %v8771_v53 = vld [vmem:[#allocation10_spill] sm:$0xff] }
 0x347   : > { %v4941_v4 = vmul.f32 0.5, %v3425_v6  ;;  %v3428_v9 = vpop.f32.mrf.mxu3 }
 0x348   : > { %v3125_v5 = vpop.f32.mrf.mxu0  ;;  %v3224_v55 = vpop.f32.mrf.mxu1 }
 0x349   : > { %v5037_v31 = vadd.f32 %v5005_v35, %v4941_v4  ;;  %v3225_v47 = vadd.f32 %v3224_v55, %v3121_v2  ;;  %v3343_v18 = vpop.f32.mrf.mxu2  ;;  %v3126_v30 = vadd.f32 %v3125_v5, %v7512_v38  ;;  %v8770_v35 = vld [vmem:[#allocation16_spill] sm:$0xff]  ;;  %v8772_v2 = vld [vmem:[#allocation43_spill] sm:$0xff]  ;;  %v5009_v38 = vmul.f32 0.1, %v4977_v15 }
 0x34b   : > { %5069 = vst [vmem:[%s7778_s8 + $0x10] sm:$0xff] %v5037_v31  ;;  %v3344_v43 = vadd.f32 %v3343_v18, %v3225_v47  ;;  %3544 = vmatmul.f32.gmra.mxu0 %v8766_v49  ;;  %3749 = vmatmul.f32.gmra.mxu1 %v8767_v51 }
 0x34c   : > { %3987 = vmatmul.f32.gmra.mxu3 %v8768_v21  ;;  %v8774_v21 = vld [vmem:[#allocation47_spill] sm:$0xff] }
 0x34d   : > { %v3429_v61 = vadd.f32 %v3428_v9, %v3344_v43  ;;  %3870 = vmatmul.f32.gmra.mxu2 %v8769_v1  ;;  %v8773_v9 = vld [vmem:[#allocation42_spill] sm:$0xff]  ;;  %v4979_v43 = vld [vmem:[%s7750_s6 + $0x40] sm:$0xff] }
 0x34e   : > { %v8776_v1 = vld [vmem:[#allocation45_spill] sm:$0xff] }
 0x34f   : > { %v4943_v0 = vmul.f32 0.5, %v3429_v61  ;;  %v3432_v40 = vpop.f32.mrf.mxu3  ;;  %v8775_v61 = vld [vmem:[#allocation12_spill] sm:$0xff] }
 0x350   : > { %v3130_v29 = vpop.f32.mrf.mxu0  ;;  %v3230_v17 = vpop.f32.mrf.mxu1 }
 0x351   : > { %v5039_v7 = vadd.f32 %v5007_v62, %v4943_v0  ;;  %v3231_v10 = vadd.f32 %v3230_v17, %v3126_v30  ;;  %v3347_v45 = vpop.f32.mrf.mxu2  ;;  %v3131_v20 = vadd.f32 %v3130_v29, %v7531_v27  ;;  %v1973_v62 = vld [vmem:[#allocation3 + $0x118] sm:$0xff]  ;;  %v5011_v0 = vmul.f32 0.1, %v4979_v43 }
 0x352   : > { %v7813_v27 = vand.u32 4294901760, %v1973_v62 }
 0x353   : > { %5071 = vst [vmem:[%s7778_s8 + $0x20] sm:$0xff] %v5039_v7  ;;  %v3348_v6 = vadd.f32 %v3347_v45, %v3231_v10  ;;  %3552 = vmatmul.f32.gmra.mxu0 %v8770_v35  ;;  %3753 = vmatmul.f32.gmra.mxu1 %v8771_v53 }
 0x354   : > { %3993 = vmatmul.f32.gmra.mxu3 %v8772_v2  ;;  %4306 = vmatpush.msrb.mxu2 %v7813_v27  ;;  %v4981_v2 = vld [vmem:[%s7750_s6 + $0x50] sm:$0xff] }
 0x355   : > { %v3433_v4 = vadd.f32 %v3432_v40, %v3348_v6  ;;  %3875 = vmatmul.f32.gmra.mxu2 %v8773_v9  ;;  %v8777_v40 = vld [vmem:[#allocation44_spill] sm:$0xff]  ;;  %4661 = vmatpush.msra.mxu1 %v7813_v27  ;;  %v8779_v9 = vld [vmem:[#allocation14_spill] sm:$0xff] }
 0x357   : > { %v4945_v5 = vmul.f32 0.5, %v3433_v4  ;;  %v3436_v55 = vpop.f32.mrf.mxu3 }
 0x358   : > { %v3135_v31 = vpop.f32.mrf.mxu0  ;;  %v3236_v47 = vpop.f32.mrf.mxu1 }
 0x359   : > { %v5041_v18 = vadd.f32 %v5009_v38, %v4945_v5  ;;  %v3237_v42 = vadd.f32 %v3236_v47, %v3131_v20  ;;  %v3351_v32 = vpop.f32.mrf.mxu2  ;;  %v3136_v29 = vadd.f32 %v3135_v31, %v7550_v36  ;;  %v8778_v38 = vld [vmem:[#allocation17_spill] sm:$0xff]  ;;  %v7824_v20 = vsub.f32 %v1973_v62, %v7813_v27  ;;  %v8780_v5 = vld [vmem:[#allocation15_spill] sm:$0xff]  ;;  %v8781_v31 = vld [vmem:[#allocation46_spill] sm:$0xff] }
 0x35b   : > { %5073 = vst [vmem:[%s7778_s8 + $0x30] sm:$0xff] %v5041_v18  ;;  %v3352_v49 = vadd.f32 %v3351_v32, %v3237_v42  ;;  %3560 = vmatmul.f32.gmra.mxu0 %v8774_v21  ;;  %3757 = vmatmul.f32.gmra.mxu1 %v8775_v61  ;;  %v4464_v47 = vand.u32 4294901760, %v7824_v20 }
 0x35c   : > { %3999 = vmatmul.f32.gmra.mxu3 %v8776_v1  ;;  %4559 = vmatpush.msra.mxu0 %v7824_v20 }
 0x35d   : > { %v3437_v30 = vadd.f32 %v3436_v55, %v3352_v49  ;;  %3880 = vmatmul.f32.gmra.mxu2 %v8777_v40  ;;  %v5013_v55 = vmul.f32 0.1, %v4981_v2  ;;  %v4465_v43 = vsub.f32 %v7824_v20, %v4464_v47  ;;  %v4983_v40 = vld [vmem:[%s7750_s6 + $0x60] sm:$0xff] }
 0x35f   : > { %v4947_v17 = vmul.f32 0.5, %v3437_v30  ;;  %v3440_v7 = vpop.f32.mrf.mxu3 }
 0x360   : > { %v3140_v10 = vpop.f32.mrf.mxu0  ;;  %v3242_v45 = vpop.f32.mrf.mxu1 }
 0x361   : > { %v5043_v15 = vadd.f32 %v5011_v0, %v4947_v17  ;;  %v3243_v6 = vadd.f32 %v3242_v45, %v3136_v29  ;;  %v3355_v35 = vpop.f32.mrf.mxu2  ;;  %v3141_v18 = vadd.f32 %v3140_v10, %v7569_v22  ;;  %v4466_v0 = vand.u32 4294901760, %v4465_v43  ;;  %v8782_v17 = vld [vmem:[#allocation19_spill] sm:$0xff]  ;;  %v8784_v22 = vld [vmem:[#allocation49_spill] sm:$0xff] }
 0x362   : > { %v5015_v45 = vmul.f32 0.1, %v4983_v40  ;;  %v8788_v43 = vld [vmem:[#allocation51_spill] sm:$0xff] }
 0x363   : > { %5075 = vst [vmem:[%s7778_s8 + $0x40] sm:$0xff] %v5043_v15  ;;  %v3356_v4 = vadd.f32 %v3355_v35, %v3243_v6  ;;  %3568 = vmatmul.f32.gmra.mxu0 %v8778_v38  ;;  %3761 = vmatmul.f32.gmra.mxu1 %v8779_v9  ;;  %v8785_v15 = vld [vmem:[#allocation48_spill] sm:$0xff] }
 0x364   : > { %4005 = vmatmul.f32.gmra.mxu3 %v8780_v5 }
 0x365   : > { %v3441_v36 = vadd.f32 %v3440_v7, %v3356_v4  ;;  %3885 = vmatmul.f32.gmra.mxu2 %v8781_v31  ;;  %v8783_v7 = vld [vmem:[#allocation13_spill] sm:$0xff]  ;;  %4467 = vmatpush.msrb.mxu3 %v4466_v0  ;;  %v4985_v31 = vld [vmem:[%s7750_s6 + $0x70] sm:$0xff] }
 0x367   : > { %v4949_v42 = vmul.f32 0.5, %v3441_v36  ;;  %v3444_v32 = vpop.f32.mrf.mxu3 }
 0x368   : > { %v3145_v49 = vpop.f32.mrf.mxu0  ;;  %v3248_v21 = vpop.f32.mrf.mxu1 }
 0x369   : > { %v5045_v62 = vadd.f32 %v5013_v55, %v4949_v42  ;;  %v3249_v1 = vadd.f32 %v3248_v21, %v3141_v18  ;;  %v3359_v30 = vpop.f32.mrf.mxu2  ;;  %v3146_v6 = vadd.f32 %v3145_v49, %v7588_v23  ;;  %v8786_v42 = vld [vmem:[#allocation24_spill] sm:$0xff]  ;;  %v5017_v23 = vmul.f32 0.1, %v4985_v31  ;;  %v8789_v49 = vld [vmem:[#allocation50_spill] sm:$0xff] }
 0x36b   : > { %5077 = vst [vmem:[%s7778_s8 + $0x50] sm:$0xff] %v5045_v62  ;;  %v3360_v29 = vadd.f32 %v3359_v30, %v3249_v1  ;;  %3576 = vmatmul.f32.gmra.mxu0 %v8782_v17  ;;  %3765 = vmatmul.f32.gmra.mxu1 %v8783_v7 }
 0x36c   : > { %4011 = vmatmul.f32.gmra.mxu3 %v8784_v22 }
 0x36d   : > { %v3445_v10 = vadd.f32 %v3444_v32, %v3360_v29  ;;  %3890 = vmatmul.f32.gmra.mxu2 %v8785_v15  ;;  %v8787_v32 = vld [vmem:[#allocation18_spill] sm:$0xff]  ;;  %v8790_v15 = vld [vmem:[#allocation55_spill] sm:$0xff] }
 0x36f   : > { %v4951_v35 = vmul.f32 0.5, %v3445_v10  ;;  %v3448_v2 = vpop.f32.mrf.mxu3  ;;  %v4987_v10 = vld [vmem:[%s7750_s6 + $0x80] sm:$0xff] }
 0x370   : > { %v3150_v4 = vpop.f32.mrf.mxu0  ;;  %v3254_v38 = vpop.f32.mrf.mxu1 }
 0x371   : > { %v5047_v5 = vadd.f32 %v5015_v45, %v4951_v35  ;;  %v3255_v36 = vadd.f32 %v3254_v38, %v3146_v6  ;;  %v3363_v55 = vpop.f32.mrf.mxu2  ;;  %v3151_v62 = vadd.f32 %v3150_v4, %v7607_v13  ;;  %v8791_v6 = vld [vmem:[#allocation20_spill] sm:$0xff]  ;;  %v1971_v35 = vld [vmem:[#allocation3 + $0x108] sm:$0xff]  ;;  %v5019_v4 = vmul.f32 0.1, %v4987_v10 }
 0x372   : > { %v7853_v38 = vand.u32 4294901760, %v1971_v35 }
 0x373   : > { %5079 = vst [vmem:[%s7778_s8 + $0x60] sm:$0xff] %v5047_v5  ;;  %v3364_v18 = vadd.f32 %v3363_v55, %v3255_v36  ;;  %3584 = vmatmul.f32.gmra.mxu0 %v8786_v42  ;;  %3769 = vmatmul.f32.gmra.mxu1 %v8787_v32  ;;  %v8793_v5 = vld [vmem:[#allocation52_spill] sm:$0xff] }
 0x374   : > { %4017 = vmatmul.f32.gmra.mxu3 %v8788_v43  ;;  %4308 = vmatpush.msrb.mxu2 %v7853_v38 }
 0x375   : > { %v3449_v21 = vadd.f32 %v3448_v2, %v3364_v18  ;;  %3895 = vmatmul.f32.gmra.mxu2 %v8789_v49  ;;  %v8792_v2 = vld [vmem:[#allocation53_spill] sm:$0xff]  ;;  %4663 = vmatpush.msra.mxu1 %v7853_v38  ;;  %v4989_v49 = vld [vmem:[%s7750_s6 + $0x90] sm:$0xff] }
 0x376   : > { %4776 = vmatpush.msra.mxu2 %v4452_v14  ;;  %v5021_v14 = vmul.f32 0.1, %v4989_v49 }
 0x377   : > { %v4953_v1 = vmul.f32 0.5, %v3449_v21  ;;  %v3452_v30 = vpop.f32.mrf.mxu3 }
 0x378   : > { %v3155_v0 = vpop.f32.mrf.mxu0  ;;  %v3260_v40 = vpop.f32.mrf.mxu1  ;;  %4780 = vmatpush.msra.mxu2 %v4458_v44 }
 0x379   : > { %v5049_v29 = vadd.f32 %v5017_v23, %v4953_v1  ;;  %v3261_v17 = vadd.f32 %v3260_v40, %v3151_v62  ;;  %v3367_v22 = vpop.f32.mrf.mxu2  ;;  %v3156_v36 = vadd.f32 %v3155_v0, %v7626_v58  ;;  %v8794_v1 = vld [vmem:[#allocation25_spill] sm:$0xff]  ;;  %v4469_v58 = vsub.f32 %v1971_v35, %v7853_v38  ;;  %v8796_v0 = vld [vmem:[#allocation23_spill] sm:$0xff]  ;;  %v8797_v40 = vld [vmem:[#allocation54_spill] sm:$0xff] }
 0x37a   : > { %4784 = vmatpush.msra.mxu2 %v4464_v47 }
 0x37b   : > { %5081 = vst [vmem:[%s7778_s8 + $0x70] sm:$0xff] %v5049_v29  ;;  %v3368_v45 = vadd.f32 %v3367_v22, %v3261_v17  ;;  %3592 = vmatmul.f32.gmra.mxu0 %v8790_v15  ;;  %3773 = vmatmul.f32.gmra.mxu1 %v8791_v6  ;;  %v4470_v11 = vand.u32 4294901760, %v4469_v58 }
 0x37c   : > { %4023 = vmatmul.f32.gmra.mxu3 %v8792_v2  ;;  %4562 = vmatpush.msra.mxu0 %v4469_v58  ;;  %v4991_v2 = vld [vmem:[%s7750_s6 + $0xa0] sm:$0xff] }
 0x37d   : > { %v3453_v13 = vadd.f32 %v3452_v30, %v3368_v45  ;;  %3900 = vmatmul.f32.gmra.mxu2 %v8793_v5  ;;  %v8795_v30 = vld [vmem:[#allocation22_spill] sm:$0xff]  ;;  %v4471_v22 = vsub.f32 %v4469_v58, %v4470_v11  ;;  %v8799_v5 = vld [vmem:[#allocation21_spill] sm:$0xff]  ;;  %v4993_v58 = vld [vmem:[%s7750_s6 + $0xb0] sm:$0xff] }
 0x37e   : > { %4788 = vmatpush.msra.mxu2 %v4470_v11  ;;  %v8805_v11 = vld [vmem:[#allocation59_spill] sm:$0xff] }
 0x37f   : > { %v4955_v55 = vmul.f32 0.5, %v3453_v13  ;;  %v3456_v31 = vpop.f32.mrf.mxu3  ;;  %v4472_v47 = vand.u32 4294901760, %v4471_v22 }
 0x380   : > { %v3160_v18 = vpop.f32.mrf.mxu0  ;;  %v3266_v42 = vpop.f32.mrf.mxu1 }
 0x381   : > { %v5051_v43 = vadd.f32 %v5019_v4, %v4955_v55  ;;  %v3267_v21 = vadd.f32 %v3266_v42, %v3156_v36  ;;  %v3371_v23 = vpop.f32.mrf.mxu2  ;;  %v3161_v44 = vadd.f32 %v3160_v18, %v7645_v26  ;;  %v8798_v4 = vld [vmem:[#allocation27_spill] sm:$0xff]  ;;  %v8800_v36 = vld [vmem:[#allocation57_spill] sm:$0xff]  ;;  %v5023_v55 = vmul.f32 0.1, %v4991_v2  ;;  %4473 = vmatpush.msrb.mxu3 %v4472_v47  ;;  %v8807_v47 = vld [vmem:[#allocation58_spill] sm:$0xff] }
 0x382   : > { %v8808_v2 = vld [vmem:[#allocation63_spill] sm:$0xff] }
 0x383   : > { %5083 = vst [vmem:[%s7778_s8 + $0x80] sm:$0xff] %v5051_v43  ;;  %v3372_v62 = vadd.f32 %v3371_v23, %v3267_v21  ;;  %3600 = vmatmul.f32.gmra.mxu0 %v8794_v1  ;;  %3777 = vmatmul.f32.gmra.mxu1 %v8795_v30 }
 0x384   : > { %4029 = vmatmul.f32.gmra.mxu3 %v8796_v0 }
 0x385   : > { %v3457_v3 = vadd.f32 %v3456_v31, %v3372_v62  ;;  %3905 = vmatmul.f32.gmra.mxu2 %v8797_v40  ;;  %v8801_v31 = vld [vmem:[#allocation56_spill] sm:$0xff]  ;;  %4867 = vmatpush.msra.mxu3 %v7672_v19  ;;  %v8803_v19 = vld [vmem:[#allocation26_spill] sm:$0xff]  ;;  %v5025_v40 = vmul.f32 0.1, %v4993_v58 }
 0x387   : > { %v4957_v29 = vmul.f32 0.5, %v3457_v3  ;;  %v3460_v17 = vpop.f32.mrf.mxu3  ;;  %4869 = vmatpush.msra.mxu3 %v7764_v12  ;;  %v8802_v3 = vld [vmem:[#allocation29_spill] sm:$0xff] }
 0x388   : > { %v3165_v10 = vpop.f32.mrf.mxu0  ;;  %v3272_v45 = vpop.f32.mrf.mxu1 }
 0x389   : > { %v5053_v15 = vadd.f32 %v5021_v14, %v4957_v29  ;;  %v3273_v35 = vadd.f32 %v3272_v45, %v3161_v44  ;;  %v3375_v20 = vpop.f32.mrf.mxu2  ;;  %v3166_v18 = vadd.f32 %v3165_v10, %v7664_v25  ;;  %4871 = vmatpush.msra.mxu3 %v7813_v27  ;;  %v8804_v25 = vld [vmem:[#allocation60_spill] sm:$0xff] }
 0x38b   : > { %5085 = vst [vmem:[%s7778_s8 + $0x90] sm:$0xff] %v5053_v15  ;;  %v3376_v13 = vadd.f32 %v3375_v20, %v3273_v35  ;;  %3608 = vmatmul.f32.gmra.mxu0 %v8798_v4  ;;  %3781 = vmatmul.f32.gmra.mxu1 %v8799_v5  ;;  %v4995_v15 = vld [vmem:[%s7750_s6 + $0xc0] sm:$0xff]  ;;  %v8806_v20 = vld [vmem:[#allocation66_spill] sm:$0xff] }
 0x38c   : > { %4035 = vmatmul.f32.gmra.mxu3 %v8800_v36 }
 0x38d   : > { %v3461_v26 = vadd.f32 %v3460_v17, %v3376_v13  ;;  %3910 = vmatmul.f32.gmra.mxu2 %v8801_v31  ;;  %4873 = vmatpush.msra.mxu3 %v7853_v38  ;;  %v8809_v13 = vld [vmem:[#allocation62_spill] sm:$0xff] }
 0x38f   : > { %v4959_v42 = vmul.f32 0.5, %v3461_v26  ;;  %v3464_v43 = vpop.f32.mrf.mxu3 }
 0x390   : > { %v3170_v21 = vpop.f32.mrf.mxu0  ;;  %v3278_v23 = vpop.f32.mrf.mxu1 }
 0x391   : > { %v5055_v49 = vadd.f32 %v5023_v55, %v4959_v42  ;;  %v3279_v62 = vadd.f32 %v3278_v23, %v3166_v18  ;;  %v3379_v1 = vpop.f32.mrf.mxu2  ;;  %v3171_v12 = vadd.f32 %v3170_v21, %v7684_v60  ;;  %v5027_v60 = vmul.f32 0.1, %v4995_v15  ;;  %v4997_v21 = vld [vmem:[%s7750_s6 + $0xd0] sm:$0xff] }
 0x393   : > { %5087 = vst [vmem:[%s7778_s8 + $0xa0] sm:$0xff] %v5055_v49  ;;  %v3380_v0 = vadd.f32 %v3379_v1, %v3279_v62  ;;  %3616 = vmatmul.f32.gmra.mxu0 %v8802_v3  ;;  %3785 = vmatmul.f32.gmra.mxu1 %v8803_v19  ;;  %v8810_v49 = vld [vmem:[#allocation70_spill] sm:$0xff]  ;;  %v8811_v62 = vld [vmem:[#allocation61_spill] sm:$0xff]  ;;  %v8812_v1 = vld [vmem:[#allocation67_spill] sm:$0xff] }
 0x394   : > { %4041 = vmatmul.f32.gmra.mxu3 %v8804_v25 }
 0x395   : > { %v3465_v14 = vadd.f32 %v3464_v43, %v3380_v0  ;;  %3915 = vmatmul.f32.gmra.mxu2 %v8805_v11  ;;  %v8813_v0 = vld [vmem:[#allocation65_spill] sm:$0xff] }
 0x397   : > { %v4961_v44 = vmul.f32 0.5, %v3465_v14  ;;  %v3468_v27 = vpop.f32.mrf.mxu3 }
 0x398   : > { %v3175_v29 = vpop.f32.mrf.mxu0  ;;  %v3284_v17 = vpop.f32.mrf.mxu1 }
 0x399   : > { %v5057_v22 = vadd.f32 %v5025_v40, %v4961_v44  ;;  %v3285_v10 = vadd.f32 %v3284_v17, %v3171_v12  ;;  %v3383_v45 = vpop.f32.mrf.mxu2  ;;  %v3176_v4 = vadd.f32 %v3175_v29, %v7708_v24  ;;  %v5029_v24 = vmul.f32 0.1, %v4997_v21  ;;  %v4999_v29 = vld [vmem:[%s7750_s6 + $0xe0] sm:$0xff] }
 0x39b   : > { %5089 = vst [vmem:[%s7778_s8 + $0xb0] sm:$0xff] %v5057_v22  ;;  %v3384_v35 = vadd.f32 %v3383_v45, %v3285_v10  ;;  %3624 = vmatmul.f32.gmra.mxu0 %v8806_v20  ;;  %3789 = vmatmul.f32.gmra.mxu1 %v8807_v47  ;;  %v8814_v22 = vld [vmem:[#allocation74_spill] sm:$0xff]  ;;  %v8815_v10 = vld [vmem:[#allocation64_spill] sm:$0xff]  ;;  %v8816_v45 = vld [vmem:[#allocation71_spill] sm:$0xff] }
 0x39c   : > { %4047 = vmatmul.f32.gmra.mxu3 %v8808_v2 }
 0x39d   : > { %v3469_v38 = vadd.f32 %v3468_v27, %v3384_v35  ;;  %3920 = vmatmul.f32.gmra.mxu2 %v8809_v13  ;;  %v8817_v35 = vld [vmem:[#allocation69_spill] sm:$0xff] }
 0x39f   : > { %v4963_v36 = vmul.f32 0.5, %v3469_v38  ;;  %v3472_v26 = vpop.f32.mrf.mxu3 }
 0x3a0   : > { %v3180_v55 = vpop.f32.mrf.mxu0  ;;  %v3290_v31 = vpop.f32.mrf.mxu1 }
 0x3a1   : > { %v5059_v18 = vadd.f32 %v5027_v60, %v4963_v36  ;;  %v3291_v42 = vadd.f32 %v3290_v31, %v3176_v4  ;;  %v3387_v43 = vpop.f32.mrf.mxu2  ;;  %v3181_v3 = vadd.f32 %v3180_v55, %v7725_v41  ;;  %v5031_v41 = vmul.f32 0.1, %v4999_v29  ;;  %v5001_v55 = vld [vmem:[%s7750_s6 + $0xf0] sm:$0xff] }
 0x3a2   : > { %v5033_v21 = vmul.f32 0.1, %v5001_v55 }
 0x3a3   : > { %5091 = vst [vmem:[%s7778_s8 + $0xc0] sm:$0xff] %v5059_v18  ;;  %v3388_v23 = vadd.f32 %v3387_v43, %v3291_v42  ;;  %3632 = vmatmul.f32.gmra.mxu0 %v8810_v49  ;;  %3793 = vmatmul.f32.gmra.mxu1 %v8811_v62  ;;  %v8818_v18 = vld [vmem:[#allocation68_spill] sm:$0xff] }
 0x3a4   : > { %4053 = vmatmul.f32.gmra.mxu3 %v8812_v1  ;;  %v8819_v42 = vld [vmem:[#allocation72_spill] sm:$0xff] }
 0x3a5   : > { %v3473_v58 = vadd.f32 %v3472_v26, %v3388_v23  ;;  %3925 = vmatmul.f32.gmra.mxu2 %v8813_v0 }
 0x3a7   : > { %v4965_v25 = vmul.f32 0.5, %v3473_v58  ;;  %v3476_v14 = vpop.f32.mrf.mxu3 }
 0x3a8   : > { %v3185_v40 = vpop.f32.mrf.mxu0  ;;  %v3296_v11 = vpop.f32.mrf.mxu1 }
 0x3a9   : > { %v5061_v12 = vadd.f32 %v5029_v24, %v4965_v25  ;;  %v3297_v44 = vadd.f32 %v3296_v11, %v3181_v3  ;;  %v3391_v27 = vpop.f32.mrf.mxu2  ;;  %v3186_v20 = vadd.f32 %v3185_v40, %v7744_v37  ;;  %v8820_v37 = vld [vmem:[#allocation77_spill] sm:$0xff] }
 0x3ab   : > { %5093 = vst [vmem:[%s7778_s8 + $0xd0] sm:$0xff] %v5061_v12  ;;  %v3392_v17 = vadd.f32 %v3391_v27, %v3297_v44  ;;  %3640 = vmatmul.f32.gmra.mxu0 %v8814_v22  ;;  %3797 = vmatmul.f32.gmra.mxu1 %v8815_v10  ;;  %v8822_v22 = vld [vmem:[#allocation83_spill] sm:$0xff] }
 0x3ac   : > { %4059 = vmatmul.f32.gmra.mxu3 %v8816_v45 }
 0x3ad   : > { %v3477_v15 = vadd.f32 %v3476_v14, %v3392_v17  ;;  %3930 = vmatmul.f32.gmra.mxu2 %v8817_v35  ;;  %v8821_v14 = vld [vmem:[#allocation80_spill] sm:$0xff] }
 0x3af   : > { %v4967_v2 = vmul.f32 0.5, %v3477_v15  ;;  %v3480_v38 = vpop.f32.mrf.mxu3 }
 0x3b0   : > { %v3302_v60 = vpop.f32.mrf.mxu1  ;;  %v3521_v13 = vpop.f32.mrf.mxu0 }
 0x3b1   : > { %v5063_v4 = vadd.f32 %v5031_v41, %v4967_v2  ;;  %v3303_v36 = vadd.f32 %v3302_v60, %v3186_v20  ;;  %v3395_v26 = vpop.f32.mrf.mxu2 }
 0x3b3   : > { %5095 = vst [vmem:[%s7778_s8 + $0xe0] sm:$0xff] %v5063_v4  ;;  %v3396_v31 = vadd.f32 %v3395_v26, %v3303_v36  ;;  %3801 = vmatmul.f32.gmra.mxu1 %v8818_v18  ;;  %4128 = vmatmul.f32.vlgmr.msrb.gmra.mxu0 %v8758_v63 }
 0x3b4   : > { %4475 = vmatmul.f32.vlgmr.msrb.gmra.mxu3 %v8819_v42 }
 0x3b5   : > { %v3481_v43 = vadd.f32 %v3480_v38, %v3396_v31  ;;  %4314 = vmatmul.f32.vlgmr.msrb.gmra.mxu2 %v8820_v37  ;;  %v8823_v38 = vld [vmem:[#allocation87_spill] sm:$0xff]  ;;  %v8824_v31 = vld [vmem:[#allocation85_spill] sm:$0xff] }
 0x3b7   : > { %v4969_v23 = vmul.f32 0.5, %v3481_v43  ;;  %v3970_v49 = vpop.f32.mrf.mxu3  ;;  %v8825_v43 = vld [vmem:[#allocation91_spill] sm:$0xff] }
 0x3b8   : > { %v3529_v1 = vpop.f32.mrf.mxu0  ;;  %v3742_v58 = vpop.f32.mrf.mxu1 }
 0x3b9   : > { %v5065_v24 = vadd.f32 %v5033_v21, %v4969_v23  ;;  %v3743_v0 = vadd.f32 %v3742_v58, %v3521_v13  ;;  %v3856_v3 = vpop.f32.mrf.mxu2 }
 0x3bb   : > { %5097 = vst [vmem:[%s7778_s8 + $0xf0] sm:$0xff] %v5065_v24  ;;  %v3857_v25 = vadd.f32 %v3856_v3, %v3743_v0  ;;  %4132 = vmatmul.f32.gmra.mxu0 %v8763_v50  ;;  %4225 = vmatmul.f32.vlgmr.msrb.gmra.mxu1 %v8758_v63  ;;  %v8826_v24 = vld [vmem:[#allocation89_spill] sm:$0xff]  ;;  %v8827_v0 = vld [vmem:[#allocation95_spill] sm:$0xff] }
 0x3bc   : > { %4479 = vmatmul.f32.gmra.mxu3 %v7090_v33 }
 0x3bd   : > { %4322 = vmatmul.f32.gmra.mxu2 %v8821_v14  ;;  %v7923_v40 = vadd.f32 %v3970_v49, %v3857_v25 }
 0x3bf   : > { %v3976_v11 = vpop.f32.mrf.mxu3 }
 0x3c0   : > { %v3537_v12 = vpop.f32.mrf.mxu0  ;;  %v3746_v44 = vpop.f32.mrf.mxu1 }
 0x3c1   : > { %v3747_v27 = vadd.f32 %v3746_v44, %v3529_v1  ;;  %v3861_v29 = vpop.f32.mrf.mxu2 }
 0x3c3   : > { %v3862_v17 = vadd.f32 %v3861_v29, %v3747_v27  ;;  %4136 = vmatmul.f32.gmra.mxu0 %v8767_v51  ;;  %4229 = vmatmul.f32.gmra.mxu1 %v8763_v50  ;;  %v8828_v27 = vld [vmem:[#allocation93_spill] sm:$0xff]  ;;  %v8829_v29 = vld [vmem:[#allocation99_spill] sm:$0xff] }
 0x3c4   : > { %4483 = vmatmul.f32.gmra.mxu3 %v7109_v16 }
 0x3c5   : > { %4330 = vmatmul.f32.gmra.mxu2 %v8822_v22  ;;  %v7929_v63 = vadd.f32 %v3976_v11, %v3862_v17 }
 0x3c7   : > { %v3982_v45 = vpop.f32.mrf.mxu3 }
 0x3c8   : > { %v3545_v15 = vpop.f32.mrf.mxu0  ;;  %v3750_v41 = vpop.f32.mrf.mxu1 }
 0x3c9   : > { %v3751_v35 = vadd.f32 %v3750_v41, %v3537_v12  ;;  %v3866_v20 = vpop.f32.mrf.mxu2 }
 0x3cb   : > { %v3867_v2 = vadd.f32 %v3866_v20, %v3751_v35  ;;  %4140 = vmatmul.f32.gmra.mxu0 %v8771_v53  ;;  %4233 = vmatmul.f32.gmra.mxu1 %v8767_v51  ;;  %v8830_v20 = vld [vmem:[#allocation97_spill] sm:$0xff] }
 0x3cc   : > { %4487 = vmatmul.f32.gmra.mxu3 %v7127_v59 }
 0x3cd   : > { %4338 = vmatmul.f32.gmra.mxu2 %v8823_v38  ;;  %v7935_v50 = vadd.f32 %v3982_v45, %v3867_v2  ;;  %v8831_v2 = vld [vmem:[#allocation103_spill] sm:$0xff] }
 0x3cf   : > { %v3988_v60 = vpop.f32.mrf.mxu3 }
 0x3d0   : > { %v3553_v13 = vpop.f32.mrf.mxu0  ;;  %v3754_v4 = vpop.f32.mrf.mxu1 }
 0x3d1   : > { %v3755_v36 = vadd.f32 %v3754_v4, %v3545_v15  ;;  %v3871_v26 = vpop.f32.mrf.mxu2 }
 0x3d3   : > { %v3872_v55 = vadd.f32 %v3871_v26, %v3755_v36  ;;  %4144 = vmatmul.f32.gmra.mxu0 %v8775_v61  ;;  %4237 = vmatmul.f32.gmra.mxu1 %v8771_v53 }
 0x3d4   : > { %4491 = vmatmul.f32.gmra.mxu3 %v8824_v31 }
 0x3d5   : > { %4346 = vmatmul.f32.gmra.mxu2 %v8825_v43  ;;  %v7941_v51 = vadd.f32 %v3988_v60, %v3872_v55  ;;  %v8832_v55 = vld [vmem:[#allocation101_spill] sm:$0xff]  ;;  %v8833_v43 = vld [vmem:[#allocation107_spill] sm:$0xff] }
 0x3d7   : > { %v3994_v21 = vpop.f32.mrf.mxu3 }
 0x3d8   : > { %v3561_v37 = vpop.f32.mrf.mxu0  ;;  %v3758_v23 = vpop.f32.mrf.mxu1 }
 0x3d9   : > { %v3759_v49 = vadd.f32 %v3758_v23, %v3553_v13  ;;  %v3876_v1 = vpop.f32.mrf.mxu2 }
 0x3db   : > { %v3877_v58 = vadd.f32 %v3876_v1, %v3759_v49  ;;  %4148 = vmatmul.f32.gmra.mxu0 %v8779_v9  ;;  %4241 = vmatmul.f32.gmra.mxu1 %v8775_v61 }
 0x3dc   : > { %4495 = vmatmul.f32.gmra.mxu3 %v8826_v24 }
 0x3dd   : > { %4354 = vmatmul.f32.gmra.mxu2 %v8827_v0  ;;  %v7947_v53 = vadd.f32 %v3994_v21, %v3877_v58  ;;  %v8834_v0 = vld [vmem:[#allocation105_spill] sm:$0xff] }
 0x3df   : > { %v4000_v3 = vpop.f32.mrf.mxu3 }
 0x3e0   : > { %v3569_v25 = vpop.f32.mrf.mxu0  ;;  %v3762_v14 = vpop.f32.mrf.mxu1 }
 0x3e1   : > { %v3763_v11 = vadd.f32 %v3762_v14, %v3561_v37  ;;  %v3881_v12 = vpop.f32.mrf.mxu2 }
 0x3e3   : > { %v3882_v44 = vadd.f32 %v3881_v12, %v3763_v11  ;;  %4152 = vmatmul.f32.gmra.mxu0 %v8783_v7  ;;  %4245 = vmatmul.f32.gmra.mxu1 %v8779_v9 }
 0x3e4   : > { %4499 = vmatmul.f32.gmra.mxu3 %v8828_v27 }
 0x3e5   : > { %4362 = vmatmul.f32.gmra.mxu2 %v8829_v29  ;;  %v7953_v61 = vadd.f32 %v4000_v3, %v3882_v44  ;;  %v8835_v3 = vld [vmem:[#allocation111_spill] sm:$0xff] }
 0x3e7   : > { %v4006_v17 = vpop.f32.mrf.mxu3 }
 0x3e8   : > { %v3577_v22 = vpop.f32.mrf.mxu0  ;;  %v3766_v45 = vpop.f32.mrf.mxu1 }
 0x3e9   : > { %v3767_v15 = vadd.f32 %v3766_v45, %v3569_v25  ;;  %v3886_v41 = vpop.f32.mrf.mxu2 }
 0x3eb   : > { %v3887_v35 = vadd.f32 %v3886_v41, %v3767_v15  ;;  %4156 = vmatmul.f32.gmra.mxu0 %v8787_v32  ;;  %4249 = vmatmul.f32.gmra.mxu1 %v8783_v7 }
 0x3ec   : > { %4503 = vmatmul.f32.gmra.mxu3 %v8830_v20 }
 0x3ed   : > { %4370 = vmatmul.f32.gmra.mxu2 %v8831_v2  ;;  %v7959_v9 = vadd.f32 %v4006_v17, %v3887_v35  ;;  %v8836_v17 = vld [vmem:[#allocation109_spill] sm:$0xff] }
 0x3ef   : > { %v4012_v38 = vpop.f32.mrf.mxu3 }
 0x3f0   : > { %v3585_v60 = vpop.f32.mrf.mxu0  ;;  %v3770_v13 = vpop.f32.mrf.mxu1 }
 0x3f1   : > { %v3771_v4 = vadd.f32 %v3770_v13, %v3577_v22  ;;  %v3891_v36 = vpop.f32.mrf.mxu2  ;;  %v8837_v22 = vld [vmem:[#allocation115_spill] sm:$0xff] }
 0x3f2   : > { %v8839_v13 = vld [vmem:[#allocation119_spill] sm:$0xff] }
 0x3f3   : > { %v3892_v26 = vadd.f32 %v3891_v36, %v3771_v4  ;;  %4160 = vmatmul.f32.gmra.mxu0 %v8791_v6  ;;  %4253 = vmatmul.f32.gmra.mxu1 %v8787_v32 }
 0x3f4   : > { %4507 = vmatmul.f32.gmra.mxu3 %v8832_v55 }
 0x3f5   : > { %4378 = vmatmul.f32.gmra.mxu2 %v8833_v43  ;;  %v7965_v7 = vadd.f32 %v4012_v38, %v3892_v26 }
 0x3f7   : > { %v4018_v21 = vpop.f32.mrf.mxu3 }
 0x3f8   : > { %v3593_v37 = vpop.f32.mrf.mxu0  ;;  %v3774_v23 = vpop.f32.mrf.mxu1 }
 0x3f9   : > { %v3775_v49 = vadd.f32 %v3774_v23, %v3585_v60  ;;  %v3896_v1 = vpop.f32.mrf.mxu2  ;;  %v8838_v60 = vld [vmem:[#allocation113_spill] sm:$0xff] }
 0x3fa   : > { %v8840_v23 = vld [vmem:[#allocation117_spill] sm:$0xff] }
 0x3fb   : > { %v3897_v58 = vadd.f32 %v3896_v1, %v3775_v49  ;;  %4164 = vmatmul.f32.gmra.mxu0 %v8795_v30  ;;  %4257 = vmatmul.f32.gmra.mxu1 %v8791_v6  ;;  %v8841_v49 = vld [vmem:[#allocation123_spill] sm:$0xff] }
 0x3fc   : > { %4511 = vmatmul.f32.gmra.mxu3 %v8834_v0 }
 0x3fd   : > { %4386 = vmatmul.f32.gmra.mxu2 %v8835_v3  ;;  %v7971_v32 = vadd.f32 %v4018_v21, %v3897_v58 }
 0x3ff   : > { %v4024_v25 = vpop.f32.mrf.mxu3 }
 0x400   : > { %v3601_v14 = vpop.f32.mrf.mxu0  ;;  %v3778_v11 = vpop.f32.mrf.mxu1 }
 0x401   : > { %v3779_v12 = vadd.f32 %v3778_v11, %v3593_v37  ;;  %v3901_v44 = vpop.f32.mrf.mxu2 }
 0x403   : > { %v3902_v29 = vadd.f32 %v3901_v44, %v3779_v12  ;;  %4168 = vmatmul.f32.gmra.mxu0 %v8799_v5  ;;  %4261 = vmatmul.f32.gmra.mxu1 %v8795_v30  ;;  %v8842_v12 = vld [vmem:[#allocation128_spill] sm:$0xff] }
 0x404   : > { %4515 = vmatmul.f32.gmra.mxu3 %v8836_v17 }
 0x405   : > { %4394 = vmatmul.f32.gmra.mxu2 %v8837_v22  ;;  %v7977_v6 = vadd.f32 %v4024_v25, %v3902_v29 }
 0x407   : > { %v4030_v45 = vpop.f32.mrf.mxu3 }
 0x408   : > { %v3609_v15 = vpop.f32.mrf.mxu0  ;;  %v3782_v41 = vpop.f32.mrf.mxu1 }
 0x409   : > { %v3783_v35 = vadd.f32 %v3782_v41, %v3601_v14  ;;  %v3906_v2 = vpop.f32.mrf.mxu2 }
 0x40b   : > { %v3907_v38 = vadd.f32 %v3906_v2, %v3783_v35  ;;  %4172 = vmatmul.f32.gmra.mxu0 %v8803_v19  ;;  %4265 = vmatmul.f32.gmra.mxu1 %v8799_v5  ;;  %v8843_v35 = vld [vmem:[#allocation132_spill] sm:$0xff] }
 0x40c   : > { %4519 = vmatmul.f32.gmra.mxu3 %v8838_v60 }
 0x40d   : > { %4402 = vmatmul.f32.gmra.mxu2 %v8839_v13  ;;  %v7983_v30 = vadd.f32 %v4030_v45, %v3907_v38 }
 0x40f   : > { %v4036_v4 = vpop.f32.mrf.mxu3 }
 0x410   : > { %v3617_v36 = vpop.f32.mrf.mxu0  ;;  %v3786_v26 = vpop.f32.mrf.mxu1 }
 0x411   : > { %v3787_v43 = vadd.f32 %v3786_v26, %v3609_v15  ;;  %v3911_v21 = vpop.f32.mrf.mxu2 }
 0x413   : > { %v3912_v37 = vadd.f32 %v3911_v21, %v3787_v43  ;;  %4176 = vmatmul.f32.gmra.mxu0 %v8807_v47  ;;  %4269 = vmatmul.f32.gmra.mxu1 %v8803_v19  ;;  %v8844_v43 = vld [vmem:[#allocation134_spill] sm:$0xff] }
 0x414   : > { %4523 = vmatmul.f32.gmra.mxu3 %v8840_v23 }
 0x415   : > { %4410 = vmatmul.f32.gmra.mxu2 %v8841_v49  ;;  %v7989_v5 = vadd.f32 %v4036_v4, %v3912_v37 }
 0x417   : > { %v4042_v1 = vpop.f32.mrf.mxu3 }
 0x418   : > { %v3625_v58 = vpop.f32.mrf.mxu0  ;;  %v3790_v3 = vpop.f32.mrf.mxu1 }
 0x419   : > { %v3791_v25 = vadd.f32 %v3790_v3, %v3617_v36  ;;  %v3916_v14 = vpop.f32.mrf.mxu2 }
 0x41b   : > { %v3917_v11 = vadd.f32 %v3916_v14, %v3791_v25  ;;  %4180 = vmatmul.f32.gmra.mxu0 %v8811_v62  ;;  %4273 = vmatmul.f32.gmra.mxu1 %v8807_v47  ;;  %v8845_v25 = vld [vmem:[#allocation73_spill] sm:$0xff] }
 0x41c   : > { %4527 = vmatmul.f32.gmra.mxu3 %v8732_v8 }
 0x41d   : > { %4418 = vmatmul.f32.gmra.mxu2 %v8842_v12  ;;  %v7995_v19 = vadd.f32 %v4042_v1, %v3917_v11 }
 0x41f   : > { %v4048_v44 = vpop.f32.mrf.mxu3 }
 0x420   : > { %v3633_v29 = vpop.f32.mrf.mxu0  ;;  %v3794_v22 = vpop.f32.mrf.mxu1 }
 0x421   : > { %v3795_v45 = vadd.f32 %v3794_v22, %v3625_v58  ;;  %v3921_v15 = vpop.f32.mrf.mxu2 }
 0x423   : > { %v3922_v41 = vadd.f32 %v3921_v15, %v3795_v45  ;;  %4184 = vmatmul.f32.gmra.mxu0 %v8815_v10  ;;  %4277 = vmatmul.f32.gmra.mxu1 %v8811_v62  ;;  %v8846_v15 = vld [vmem:[#allocation76_spill] sm:$0xff] }
 0x424   : > { %4531 = vmatmul.f32.gmra.mxu3 %v8739_v54 }
 0x425   : > { %4426 = vmatmul.f32.gmra.mxu2 %v8843_v35  ;;  %v8001_v47 = vadd.f32 %v4048_v44, %v3922_v41  ;;  %v8847_v41 = vld [vmem:[#allocation75_spill] sm:$0xff] }
 0x427   : > { %v4054_v2 = vpop.f32.mrf.mxu3 }
 0x428   : > { %v3641_v38 = vpop.f32.mrf.mxu0  ;;  %v3798_v13 = vpop.f32.mrf.mxu1 }
 0x429   : > { %v3799_v4 = vadd.f32 %v3798_v13, %v3633_v29  ;;  %v3926_v36 = vpop.f32.mrf.mxu2 }
 0x42b   : > { %v3927_v26 = vadd.f32 %v3926_v36, %v3799_v4  ;;  %4188 = vmatmul.f32.gmra.mxu0 %v8818_v18  ;;  %4281 = vmatmul.f32.gmra.mxu1 %v8815_v10  ;;  %v8848_v36 = vld [vmem:[#allocation79_spill] sm:$0xff] }
 0x42c   : > { %4535 = vmatmul.f32.gmra.mxu3 %v8745_v46 }
 0x42d   : > { %4434 = vmatmul.f32.gmra.mxu2 %v8844_v43  ;;  %v8007_v62 = vadd.f32 %v4054_v2, %v3927_v26  ;;  %v8849_v26 = vld [vmem:[#allocation78_spill] sm:$0xff] }
 0x42f   : > { %v4060_v21 = vpop.f32.mrf.mxu3 }
 0x430   : > { %v3802_v37 = vpop.f32.mrf.mxu1  ;;  %v4129_v49 = vpop.f32.mrf.mxu0 }
 0x431   : > { %v3803_v1 = vadd.f32 %v3802_v37, %v3641_v38  ;;  %v3931_v58 = vpop.f32.mrf.mxu2  ;;  %v4130_v14 = vadd.f32 %v4129_v49, %v7923_v40 }
 0x433   : > { %v3932_v3 = vadd.f32 %v3931_v58, %v3803_v1  ;;  %4285 = vmatmul.f32.gmra.mxu1 %v8818_v18  ;;  %4565 = vmatmul.f32.vlgmr.msra.gmra.mxu0 %v8845_v25  ;;  %v8851_v25 = vld [vmem:[#allocation81_spill] sm:$0xff] }
 0x434   : > { %4875 = vmatmul.f32.vlgmr.msra.gmra.mxu3 %v8819_v42 }
 0x435   : > { %4790 = vmatmul.f32.vlgmr.msra.gmra.mxu2 %v8819_v42  ;;  %v8013_v10 = vadd.f32 %v4060_v21, %v3932_v3  ;;  %v8850_v3 = vld [vmem:[#allocation82_spill] sm:$0xff] }
 0x437   : > { %v4476_v11 = vpop.f32.mrf.mxu3 }
 0x438   : > { %v4133_v12 = vpop.f32.mrf.mxu0  ;;  %v4226_v44 = vpop.f32.mrf.mxu1 }
 0x439   : > { %v4227_v29 = vadd.f32 %v4226_v44, %v4130_v14  ;;  %v4315_v22 = vpop.f32.mrf.mxu2  ;;  %v4134_v42 = vadd.f32 %v4133_v12, %v7929_v63 }
 0x43b   : > { %v4316_v45 = vadd.f32 %v4315_v22, %v4227_v29  ;;  %4570 = vmatmul.f32.gmra.mxu0 %v8846_v15  ;;  %4667 = vmatmul.f32.vlgmr.msra.gmra.mxu1 %v8847_v41  ;;  %v8853_v15 = vld [vmem:[#allocation84_spill] sm:$0xff] }
 0x43c   : > { %4879 = vmatmul.f32.gmra.mxu3 %v7090_v33 }
 0x43d   : > { %4794 = vmatmul.f32.gmra.mxu2 %v7090_v33  ;;  %v8020_v18 = vadd.f32 %v4476_v11, %v4316_v45  ;;  %v8852_v45 = vld [vmem:[#allocation86_spill] sm:$0xff] }
 0x43f   : > { %v4480_v35 = vpop.f32.mrf.mxu3 }
 0x440   : > { %v4137_v40 = vpop.f32.mrf.mxu0  ;;  %v4230_v2 = vpop.f32.mrf.mxu1 }
 0x441   : > { %v4231_v38 = vadd.f32 %v4230_v2, %v4134_v42  ;;  %v4323_v13 = vpop.f32.mrf.mxu2  ;;  %v4138_v33 = vadd.f32 %v4137_v40, %v7935_v50 }
 0x443   : > { %v4324_v4 = vadd.f32 %v4323_v13, %v4231_v38  ;;  %4575 = vmatmul.f32.gmra.mxu0 %v8848_v36  ;;  %4673 = vmatmul.f32.gmra.mxu1 %v8849_v26  ;;  %v8854_v13 = vld [vmem:[#allocation90_spill] sm:$0xff] }
 0x444   : > { %4883 = vmatmul.f32.gmra.mxu3 %v7109_v16 }
 0x445   : > { %4798 = vmatmul.f32.gmra.mxu2 %v7109_v16  ;;  %v8027_v43 = vadd.f32 %v4480_v35, %v4324_v4  ;;  %v8855_v4 = vld [vmem:[#allocation88_spill] sm:$0xff] }
 0x447   : > { %v4484_v21 = vpop.f32.mrf.mxu3 }
 0x448   : > { %v4141_v63 = vpop.f32.mrf.mxu0  ;;  %v4234_v37 = vpop.f32.mrf.mxu1 }
 0x449   : > { %v4235_v49 = vadd.f32 %v4234_v37, %v4138_v33  ;;  %v4331_v1 = vpop.f32.mrf.mxu2  ;;  %v4142_v16 = vadd.f32 %v4141_v63, %v7941_v51 }
 0x44b   : > { %v4332_v58 = vadd.f32 %v4331_v1, %v4235_v49  ;;  %4580 = vmatmul.f32.gmra.mxu0 %v8850_v3  ;;  %4679 = vmatmul.f32.gmra.mxu1 %v8851_v25  ;;  %v8856_v49 = vld [vmem:[#allocation94_spill] sm:$0xff]  ;;  %v8857_v1 = vld [vmem:[#allocation92_spill] sm:$0xff] }
 0x44c   : > { %4887 = vmatmul.f32.gmra.mxu3 %v7127_v59 }
 0x44d   : > { %4802 = vmatmul.f32.gmra.mxu2 %v7127_v59  ;;  %v8034_v14 = vadd.f32 %v4484_v21, %v4332_v58 }
 0x44f   : > { %v4488_v11 = vpop.f32.mrf.mxu3 }
 0x450   : > { %v4145_v50 = vpop.f32.mrf.mxu0  ;;  %v4238_v12 = vpop.f32.mrf.mxu1 }
 0x451   : > { %v4239_v44 = vadd.f32 %v4238_v12, %v4142_v16  ;;  %v4339_v29 = vpop.f32.mrf.mxu2  ;;  %v4146_v59 = vadd.f32 %v4145_v50, %v7947_v53  ;;  %v8858_v12 = vld [vmem:[#allocation98_spill] sm:$0xff] }
 0x453   : > { %v4340_v22 = vadd.f32 %v4339_v29, %v4239_v44  ;;  %4585 = vmatmul.f32.gmra.mxu0 %v8852_v45  ;;  %4685 = vmatmul.f32.gmra.mxu1 %v8853_v15  ;;  %v8859_v44 = vld [vmem:[#allocation96_spill] sm:$0xff] }
 0x454   : > { %4891 = vmatmul.f32.gmra.mxu3 %v8824_v31 }
 0x455   : > { %4806 = vmatmul.f32.gmra.mxu2 %v8824_v31  ;;  %v8041_v41 = vadd.f32 %v4488_v11, %v4340_v22 }
 0x457   : > { %v4492_v42 = vpop.f32.mrf.mxu3 }
 0x458   : > { %v4149_v51 = vpop.f32.mrf.mxu0  ;;  %v4242_v35 = vpop.f32.mrf.mxu1 }
 0x459   : > { %v4243_v40 = vadd.f32 %v4242_v35, %v4146_v59  ;;  %v4347_v2 = vpop.f32.mrf.mxu2  ;;  %v4150_v31 = vadd.f32 %v4149_v51, %v7953_v61  ;;  %v8860_v35 = vld [vmem:[#allocation102_spill] sm:$0xff] }
 0x45b   : > { %v4348_v38 = vadd.f32 %v4347_v2, %v4243_v40  ;;  %4590 = vmatmul.f32.gmra.mxu0 %v8854_v13  ;;  %4691 = vmatmul.f32.gmra.mxu1 %v8855_v4  ;;  %v8861_v40 = vld [vmem:[#allocation100_spill] sm:$0xff] }
 0x45c   : > { %4895 = vmatmul.f32.gmra.mxu3 %v8826_v24 }
 0x45d   : > { %4810 = vmatmul.f32.gmra.mxu2 %v8826_v24  ;;  %v8048_v36 = vadd.f32 %v4492_v42, %v4348_v38 }
 0x45f   : > { %v4496_v26 = vpop.f32.mrf.mxu3 }
 0x460   : > { %v4153_v53 = vpop.f32.mrf.mxu0  ;;  %v4246_v33 = vpop.f32.mrf.mxu1 }
 0x461   : > { %v4247_v21 = vadd.f32 %v4246_v33, %v4150_v31  ;;  %v4355_v63 = vpop.f32.mrf.mxu2  ;;  %v4154_v24 = vadd.f32 %v4153_v53, %v7959_v9  ;;  %v8863_v53 = vld [vmem:[#allocation104_spill] sm:$0xff] }
 0x463   : > { %v4356_v37 = vadd.f32 %v4355_v63, %v4247_v21  ;;  %4595 = vmatmul.f32.gmra.mxu0 %v8856_v49  ;;  %4697 = vmatmul.f32.gmra.mxu1 %v8857_v1 }
 0x464   : > { %4899 = vmatmul.f32.gmra.mxu3 %v8828_v27 }
 0x465   : > { %4814 = vmatmul.f32.gmra.mxu2 %v8828_v27  ;;  %v8055_v58 = vadd.f32 %v4496_v26, %v4356_v37  ;;  %v8862_v26 = vld [vmem:[#allocation106_spill] sm:$0xff] }
 0x467   : > { %v4500_v3 = vpop.f32.mrf.mxu3 }
 0x468   : > { %v4157_v61 = vpop.f32.mrf.mxu0  ;;  %v4250_v25 = vpop.f32.mrf.mxu1 }
 0x469   : > { %v4251_v16 = vadd.f32 %v4250_v25, %v4154_v24  ;;  %v4363_v11 = vpop.f32.mrf.mxu2  ;;  %v4158_v27 = vadd.f32 %v4157_v61, %v7965_v7  ;;  %v8864_v24 = vld [vmem:[#allocation110_spill] sm:$0xff] }
 0x46b   : > { %v4364_v50 = vadd.f32 %v4363_v11, %v4251_v16  ;;  %4600 = vmatmul.f32.gmra.mxu0 %v8858_v12  ;;  %4703 = vmatmul.f32.gmra.mxu1 %v8859_v44  ;;  %v8866_v44 = vld [vmem:[#allocation114_spill] sm:$0xff] }
 0x46c   : > { %4903 = vmatmul.f32.gmra.mxu3 %v8830_v20 }
 0x46d   : > { %4818 = vmatmul.f32.gmra.mxu2 %v8830_v20  ;;  %v8062_v29 = vadd.f32 %v4500_v3, %v4364_v50  ;;  %v8865_v3 = vld [vmem:[#allocation108_spill] sm:$0xff] }
 0x46f   : > { %v4504_v22 = vpop.f32.mrf.mxu3 }
 0x470   : > { %v4161_v9 = vpop.f32.mrf.mxu0  ;;  %v4254_v45 = vpop.f32.mrf.mxu1 }
 0x471   : > { %v4162_v15 = vadd.f32 %v4161_v9, %v7971_v32  ;;  %v4255_v59 = vadd.f32 %v4254_v45, %v4158_v27  ;;  %v4371_v42 = vpop.f32.mrf.mxu2  ;;  %v8867_v27 = vld [vmem:[#allocation112_spill] sm:$0xff] }
 0x473   : > { %v4372_v51 = vadd.f32 %v4371_v42, %v4255_v59  ;;  %4605 = vmatmul.f32.gmra.mxu0 %v8860_v35  ;;  %4709 = vmatmul.f32.gmra.mxu1 %v8861_v40  ;;  %v8869_v35 = vld [vmem:[#allocation116_spill] sm:$0xff] }
 0x474   : > { %4907 = vmatmul.f32.gmra.mxu3 %v8832_v55 }
 0x475   : > { %4822 = vmatmul.f32.gmra.mxu2 %v8832_v55  ;;  %v8070_v20 = vadd.f32 %v4504_v22, %v4372_v51  ;;  %v8868_v51 = vld [vmem:[#allocation118_spill] sm:$0xff] }
 0x477   : > { %v4508_v2 = vpop.f32.mrf.mxu3 }
 0x478   : > { %v4165_v7 = vpop.f32.mrf.mxu0  ;;  %v4258_v38 = vpop.f32.mrf.mxu1 }
 0x479   : > { %v4166_v13 = vadd.f32 %v4165_v7, %v7977_v6  ;;  %v4259_v4 = vadd.f32 %v4258_v38, %v4162_v15  ;;  %v4379_v32 = vpop.f32.mrf.mxu2 }
 0x47b   : > { %v4380_v31 = vadd.f32 %v4379_v32, %v4259_v4  ;;  %4610 = vmatmul.f32.gmra.mxu0 %v8862_v26  ;;  %4715 = vmatmul.f32.gmra.mxu1 %v8863_v53 }
 0x47c   : > { %4911 = vmatmul.f32.gmra.mxu3 %v8834_v0 }
 0x47d   : > { %4826 = vmatmul.f32.gmra.mxu2 %v8834_v0  ;;  %v8077_v33 = vadd.f32 %v4508_v2, %v4380_v31 }
 0x47f   : > { %v4512_v55 = vpop.f32.mrf.mxu3 }
 0x480   : > { %v4169_v21 = vpop.f32.mrf.mxu0  ;;  %v4262_v63 = vpop.f32.mrf.mxu1 }
 0x481   : > { %v4170_v37 = vadd.f32 %v4169_v21, %v7983_v30  ;;  %v4263_v49 = vadd.f32 %v4262_v63, %v4166_v13  ;;  %v4387_v6 = vpop.f32.mrf.mxu2 }
 0x483   : > { %v4388_v1 = vadd.f32 %v4387_v6, %v4263_v49  ;;  %4615 = vmatmul.f32.gmra.mxu0 %v8864_v24  ;;  %4721 = vmatmul.f32.gmra.mxu1 %v8865_v3 }
 0x484   : > { %4915 = vmatmul.f32.gmra.mxu3 %v8836_v17 }
 0x485   : > { %4830 = vmatmul.f32.gmra.mxu2 %v8836_v17  ;;  %v8084_v61 = vadd.f32 %v4512_v55, %v4388_v1 }
 0x487   : > { %v4516_v0 = vpop.f32.mrf.mxu3 }
 0x488   : > { %v4173_v25 = vpop.f32.mrf.mxu0  ;;  %v4266_v16 = vpop.f32.mrf.mxu1 }
 0x489   : > { %v4174_v11 = vadd.f32 %v4173_v25, %v7989_v5  ;;  %v4267_v50 = vadd.f32 %v4266_v16, %v4170_v37  ;;  %v4395_v30 = vpop.f32.mrf.mxu2 }
 0x48b   : > { %v4396_v12 = vadd.f32 %v4395_v30, %v4267_v50  ;;  %4620 = vmatmul.f32.gmra.mxu0 %v8866_v44  ;;  %4727 = vmatmul.f32.gmra.mxu1 %v8867_v27  ;;  %v4972_v50 = vld [vmem:[%s7750_s6 + $0x8] sm:$0xff] }
 0x48c   : > { %4919 = vmatmul.f32.gmra.mxu3 %v8838_v60  ;;  %v5004_v44 = vmul.f32 0.1, %v4972_v50 }
 0x48d   : > { %4834 = vmatmul.f32.gmra.mxu2 %v8838_v60  ;;  %v8091_v22 = vadd.f32 %v4516_v0, %v4396_v12 }
 0x48f   : > { %v4520_v17 = vpop.f32.mrf.mxu3 }
 0x490   : > { %v4177_v9 = vpop.f32.mrf.mxu0  ;;  %v4270_v45 = vpop.f32.mrf.mxu1 }
 0x491   : > { %v4178_v15 = vadd.f32 %v4177_v9, %v7995_v19  ;;  %v4271_v59 = vadd.f32 %v4270_v45, %v4174_v11  ;;  %v4403_v5 = vpop.f32.mrf.mxu2 }
 0x493   : > { %v4404_v42 = vadd.f32 %v4403_v5, %v4271_v59  ;;  %4625 = vmatmul.f32.gmra.mxu0 %v8868_v51  ;;  %4733 = vmatmul.f32.gmra.mxu1 %v8869_v35  ;;  %v4974_v5 = vld [vmem:[%s7750_s6 + $0x18] sm:$0xff] }
 0x494   : > { %4923 = vmatmul.f32.gmra.mxu3 %v8840_v23  ;;  %v5006_v35 = vmul.f32 0.1, %v4974_v5 }
 0x495   : > { %4838 = vmatmul.f32.gmra.mxu2 %v8840_v23  ;;  %v8098_v40 = vadd.f32 %v4520_v17, %v4404_v42 }
 0x497   : > { %v4524_v60 = vpop.f32.mrf.mxu3 }
 0x498   : > { %v4181_v2 = vpop.f32.mrf.mxu0  ;;  %v4274_v7 = vpop.f32.mrf.mxu1 }
 0x499   : > { %v4182_v38 = vadd.f32 %v4181_v2, %v8001_v47  ;;  %v4275_v13 = vadd.f32 %v4274_v7, %v4178_v15  ;;  %v4411_v19 = vpop.f32.mrf.mxu2 }
 0x49b   : > { %v4412_v4 = vadd.f32 %v4411_v19, %v4275_v13  ;;  %4630 = vmatmul.f32.gmra.mxu0 %v8730_v52  ;;  %4739 = vmatmul.f32.gmra.mxu1 %v8731_v48 }
 0x49c   : > { %4927 = vmatmul.f32.gmra.mxu3 %v8732_v8 }
 0x49d   : > { %4842 = vmatmul.f32.gmra.mxu2 %v8732_v8  ;;  %v8105_v32 = vadd.f32 %v4524_v60, %v4412_v4 }
 0x49f   : > { %v4528_v23 = vpop.f32.mrf.mxu3 }
 0x4a0   : > { %v4185_v31 = vpop.f32.mrf.mxu0  ;;  %v4278_v26 = vpop.f32.mrf.mxu1 }
 0x4a1   : > { %v4186_v53 = vadd.f32 %v4185_v31, %v8007_v62  ;;  %v4279_v55 = vadd.f32 %v4278_v26, %v4182_v38  ;;  %v4419_v47 = vpop.f32.mrf.mxu2 }
 0x4a3   : > { %v4420_v21 = vadd.f32 %v4419_v47, %v4279_v55  ;;  %4635 = vmatmul.f32.gmra.mxu0 %v8737_v39  ;;  %4745 = vmatmul.f32.gmra.mxu1 %v8738_v56 }
 0x4a4   : > { %4931 = vmatmul.f32.gmra.mxu3 %v8739_v54 }
 0x4a5   : > { %4846 = vmatmul.f32.gmra.mxu2 %v8739_v54  ;;  %v8112_v52 = vadd.f32 %v4528_v23, %v4420_v21  ;;  %v4976_v23 = vld [vmem:[%s7750_s6 + $0x28] sm:$0xff] }
 0x4a7   : > { %v4532_v48 = vpop.f32.mrf.mxu3 }
 0x4a8   : > { %v4189_v8 = vpop.f32.mrf.mxu0  ;;  %v4282_v63 = vpop.f32.mrf.mxu1 }
 0x4a9   : > { %v4190_v37 = vadd.f32 %v4189_v8, %v8013_v10  ;;  %v4283_v49 = vadd.f32 %v4282_v63, %v4186_v53  ;;  %v4427_v62 = vpop.f32.mrf.mxu2  ;;  %v5008_v53 = vmul.f32 0.1, %v4976_v23 }
 0x4ab   : > { %v4428_v6 = vadd.f32 %v4427_v62, %v4283_v49  ;;  %4640 = vmatmul.f32.gmra.mxu0 %v8743_v28  ;;  %4751 = vmatmul.f32.gmra.mxu1 %v8744_v57  ;;  %v4978_v49 = vld [vmem:[%s7750_s6 + $0x38] sm:$0xff] }
 0x4ac   : > { %4935 = vmatmul.f32.gmra.mxu3 %v8745_v46 }
 0x4ad   : > { %4850 = vmatmul.f32.gmra.mxu2 %v8745_v46  ;;  %v8119_v39 = vadd.f32 %v4532_v48, %v4428_v6 }
 0x4af   : > { %v4536_v56 = vpop.f32.mrf.mxu3 }
 0x4b0   : > { %v4286_v54 = vpop.f32.mrf.mxu1  ;;  %v4566_v1 = vpop.f32.mrf.mxu0 }
 0x4b1   : > { %v4287_v24 = vadd.f32 %v4286_v54, %v4190_v37  ;;  %v4435_v3 = vpop.f32.mrf.mxu2  ;;  %v4567_v28 = vadd.f32 %v4566_v1, %v8020_v18 }
 0x4b3   : > { %v4436_v10 = vadd.f32 %v4435_v3, %v4287_v24  ;;  %4757 = vmatmul.f32.gmra.mxu1 %v8750_v34 }
 0x4b5   : > { %v8122_v0 = vadd.f32 %v4536_v56, %v4436_v10  ;;  %v5010_v56 = vmul.f32 0.1, %v4978_v49 }
 0x4b7   : > { %v4876_v57 = vpop.f32.mrf.mxu3 }
 0x4b8   : > { %v4571_v25 = vpop.f32.mrf.mxu0  ;;  %v4668_v16 = vpop.f32.mrf.mxu1 }
 0x4b9   : > { %v4669_v46 = vadd.f32 %v4668_v16, %v4567_v28  ;;  %v4791_v11 = vpop.f32.mrf.mxu2  ;;  %v4572_v27 = vadd.f32 %v4571_v25, %v8027_v43  ;;  %v4980_v25 = vld [vmem:[%s7750_s6 + $0x48] sm:$0xff] }
 0x4bb   : > { %v4792_v30 = vadd.f32 %v4791_v11, %v4669_v46  ;;  %v5012_v11 = vmul.f32 0.1, %v4980_v25 }
 0x4bd   : > { %v4877_v12 = vadd.f32 %v4876_v57, %v4792_v30 }
 0x4bf   : > { %v4940_v17 = vmul.f32 0.5, %v4877_v12  ;;  %v4880_v9 = vpop.f32.mrf.mxu3 }
 0x4c0   : > { %v4576_v34 = vpop.f32.mrf.mxu0  ;;  %v4674_v45 = vpop.f32.mrf.mxu1 }
 0x4c1   : > { %v5036_v15 = vadd.f32 %v5004_v44, %v4940_v17  ;;  %v4675_v18 = vadd.f32 %v4674_v45, %v4572_v27  ;;  %v4795_v59 = vpop.f32.mrf.mxu2  ;;  %v4577_v60 = vadd.f32 %v4576_v34, %v8034_v14  ;;  %v4982_v34 = vld [vmem:[%s7750_s6 + $0x58] sm:$0xff] }
 0x4c3   : > { %5068 = vst [vmem:[%s7778_s8 + $0x8] sm:$0xff] %v5036_v15  ;;  %v4796_v42 = vadd.f32 %v4795_v59, %v4675_v18  ;;  %v5014_v18 = vmul.f32 0.1, %v4982_v34 }
 0x4c5   : > { %v4881_v51 = vadd.f32 %v4880_v9, %v4796_v42 }
 0x4c7   : > { %v4942_v2 = vmul.f32 0.5, %v4881_v51  ;;  %v4884_v7 = vpop.f32.mrf.mxu3 }
 0x4c8   : > { %v4581_v38 = vpop.f32.mrf.mxu0  ;;  %v4680_v43 = vpop.f32.mrf.mxu1 }
 0x4c9   : > { %v5038_v13 = vadd.f32 %v5006_v35, %v4942_v2  ;;  %v4681_v19 = vadd.f32 %v4680_v43, %v4577_v60  ;;  %v4799_v4 = vpop.f32.mrf.mxu2  ;;  %v4582_v55 = vadd.f32 %v4581_v38, %v8041_v41 }
 0x4cb   : > { %5070 = vst [vmem:[%s7778_s8 + $0x18] sm:$0xff] %v5038_v13  ;;  %v4800_v31 = vadd.f32 %v4799_v4, %v4681_v19 }
 0x4cd   : > { %v4885_v26 = vadd.f32 %v4884_v7, %v4800_v31  ;;  %v4984_v7 = vld [vmem:[%s7750_s6 + $0x68] sm:$0xff] }
 0x4ce   : > { %v5016_v13 = vmul.f32 0.1, %v4984_v7 }
 0x4cf   : > { %v4944_v47 = vmul.f32 0.5, %v4885_v26  ;;  %v4888_v21 = vpop.f32.mrf.mxu3 }
 0x4d0   : > { %v4586_v48 = vpop.f32.mrf.mxu0  ;;  %v4686_v14 = vpop.f32.mrf.mxu1 }
 0x4d1   : > { %v5040_v8 = vadd.f32 %v5008_v53, %v4944_v47  ;;  %v4687_v63 = vadd.f32 %v4686_v14, %v4582_v55  ;;  %v4803_v37 = vpop.f32.mrf.mxu2  ;;  %v4587_v54 = vadd.f32 %v4586_v48, %v8048_v36  ;;  %v4986_v47 = vld [vmem:[%s7750_s6 + $0x78] sm:$0xff] }
 0x4d2   : > { %v5018_v14 = vmul.f32 0.1, %v4986_v47  ;;  %v4996_v47 = vld [vmem:[%s7750_s6 + $0xc8] sm:$0xff] }
 0x4d3   : > { %5072 = vst [vmem:[%s7778_s8 + $0x28] sm:$0xff] %v5040_v8  ;;  %v4804_v62 = vadd.f32 %v4803_v37, %v4687_v63 }
 0x4d5   : > { %v4889_v6 = vadd.f32 %v4888_v21, %v4804_v62 }
 0x4d7   : > { %v4946_v1 = vmul.f32 0.5, %v4889_v6  ;;  %v4892_v24 = vpop.f32.mrf.mxu3 }
 0x4d8   : > { %v4591_v3 = vpop.f32.mrf.mxu0  ;;  %v4692_v41 = vpop.f32.mrf.mxu1 }
 0x4d9   : > { %v5042_v10 = vadd.f32 %v5010_v56, %v4946_v1  ;;  %v4693_v28 = vadd.f32 %v4692_v41, %v4587_v54  ;;  %v4807_v57 = vpop.f32.mrf.mxu2  ;;  %v4592_v50 = vadd.f32 %v4591_v3, %v8055_v58  ;;  %v4988_v54 = vld [vmem:[%s7750_s6 + $0x88] sm:$0xff] }
 0x4da   : > { %v5020_v3 = vmul.f32 0.1, %v4988_v54 }
 0x4db   : > { %5074 = vst [vmem:[%s7778_s8 + $0x38] sm:$0xff] %v5042_v10  ;;  %v4808_v16 = vadd.f32 %v4807_v57, %v4693_v28 }
 0x4dd   : > { %v4893_v46 = vadd.f32 %v4892_v24, %v4808_v16 }
 0x4df   : > { %v4948_v30 = vmul.f32 0.5, %v4893_v46  ;;  %v4896_v12 = vpop.f32.mrf.mxu3 }
 0x4e0   : > { %v4596_v44 = vpop.f32.mrf.mxu0  ;;  %v4698_v36 = vpop.f32.mrf.mxu1 }
 0x4e1   : > { %v5044_v27 = vadd.f32 %v5012_v11, %v4948_v30  ;;  %v4699_v17 = vadd.f32 %v4698_v36, %v4592_v50  ;;  %v4811_v9 = vpop.f32.mrf.mxu2  ;;  %v4597_v59 = vadd.f32 %v4596_v44, %v8062_v29  ;;  %v4990_v11 = vld [vmem:[%s7750_s6 + $0x98] sm:$0xff] }
 0x4e3   : > { %5076 = vst [vmem:[%s7778_s8 + $0x48] sm:$0xff] %v5044_v27  ;;  %v4812_v45 = vadd.f32 %v4811_v9, %v4699_v17 }
 0x4e5   : > { %v4897_v15 = vadd.f32 %v4896_v12, %v4812_v45  ;;  %v5022_v12 = vmul.f32 0.1, %v4990_v11 }
 0x4e7   : > { %v4950_v5 = vmul.f32 0.5, %v4897_v15  ;;  %v4900_v42 = vpop.f32.mrf.mxu3  ;;  %v4992_v15 = vld [vmem:[%s7750_s6 + $0xa8] sm:$0xff] }
 0x4e8   : > { %v4601_v51 = vpop.f32.mrf.mxu0  ;;  %v4704_v58 = vpop.f32.mrf.mxu1 }
 0x4e9   : > { %v5046_v35 = vadd.f32 %v5014_v18, %v4950_v5  ;;  %v4705_v60 = vadd.f32 %v4704_v58, %v4597_v59  ;;  %v4815_v2 = vpop.f32.mrf.mxu2  ;;  %v4602_v19 = vadd.f32 %v4601_v51, %v8070_v20  ;;  %v5024_v5 = vmul.f32 0.1, %v4992_v15 }
 0x4eb   : > { %5078 = vst [vmem:[%s7778_s8 + $0x58] sm:$0xff] %v5046_v35  ;;  %v4816_v38 = vadd.f32 %v4815_v2, %v4705_v60 }
 0x4ed   : > { %v4901_v43 = vadd.f32 %v4900_v42, %v4816_v38  ;;  %v4994_v38 = vld [vmem:[%s7750_s6 + $0xb8] sm:$0xff] }
 0x4ef   : > { %v4952_v4 = vmul.f32 0.5, %v4901_v43  ;;  %v4904_v23 = vpop.f32.mrf.mxu3 }
 0x4f0   : > { %v4606_v31 = vpop.f32.mrf.mxu0  ;;  %v4710_v29 = vpop.f32.mrf.mxu1 }
 0x4f1   : > { %v5048_v26 = vadd.f32 %v5016_v13, %v4952_v4  ;;  %v4711_v53 = vadd.f32 %v4710_v29, %v4602_v19  ;;  %v4819_v55 = vpop.f32.mrf.mxu2  ;;  %v4607_v8 = vadd.f32 %v4606_v31, %v8077_v33  ;;  %v5026_v19 = vmul.f32 0.1, %v4994_v38 }
 0x4f3   : > { %5080 = vst [vmem:[%s7778_s8 + $0x68] sm:$0xff] %v5048_v26  ;;  %v4820_v21 = vadd.f32 %v4819_v55, %v4711_v53 }
 0x4f5   : > { %v4905_v48 = vadd.f32 %v4904_v23, %v4820_v21 }
 0x4f7   : > { %v4954_v63 = vmul.f32 0.5, %v4905_v48  ;;  %v4908_v37 = vpop.f32.mrf.mxu3 }
 0x4f8   : > { %v4611_v49 = vpop.f32.mrf.mxu0  ;;  %v4716_v20 = vpop.f32.mrf.mxu1 }
 0x4f9   : > { %v5050_v62 = vadd.f32 %v5018_v14, %v4954_v63  ;;  %v4717_v6 = vadd.f32 %v4716_v20, %v4607_v8  ;;  %v4823_v56 = vpop.f32.mrf.mxu2  ;;  %v4612_v41 = vadd.f32 %v4611_v49, %v8084_v61  ;;  %v5028_v14 = vmul.f32 0.1, %v4996_v47 }
 0x4fb   : > { %5082 = vst [vmem:[%s7778_s8 + $0x78] sm:$0xff] %v5050_v62  ;;  %v4824_v1 = vadd.f32 %v4823_v56, %v4717_v6  ;;  %v4998_v56 = vld [vmem:[%s7750_s6 + $0xd8] sm:$0xff] }
 0x4fd   : > { %v4909_v24 = vadd.f32 %v4908_v37, %v4824_v1 }
 0x4ff   : > { %v4956_v10 = vmul.f32 0.5, %v4909_v24  ;;  %v4912_v28 = vpop.f32.mrf.mxu3  ;;  %v5030_v24 = vmul.f32 0.1, %v4998_v56 }
 0x500   : > { %v4616_v57 = vpop.f32.mrf.mxu0  ;;  %v4722_v33 = vpop.f32.mrf.mxu1 }
 0x501   : > { %v5052_v25 = vadd.f32 %v5020_v3, %v4956_v10  ;;  %v4723_v16 = vadd.f32 %v4722_v33, %v4612_v41  ;;  %v4827_v46 = vpop.f32.mrf.mxu2  ;;  %v4617_v44 = vadd.f32 %v4616_v57, %v8091_v22 }
 0x503   : > { %5084 = vst [vmem:[%s7778_s8 + $0x88] sm:$0xff] %v5052_v25  ;;  %v4828_v50 = vadd.f32 %v4827_v46, %v4723_v16  ;;  %v5000_v25 = vld [vmem:[%s7750_s6 + $0xe8] sm:$0xff] }
 0x505   : > { %v4913_v30 = vadd.f32 %v4912_v28, %v4828_v50  ;;  %v5032_v50 = vmul.f32 0.1, %v5000_v25 }
 0x507   : > { %v4958_v36 = vmul.f32 0.5, %v4913_v30  ;;  %v4916_v27 = vpop.f32.mrf.mxu3 }
 0x508   : > { %v4621_v17 = vpop.f32.mrf.mxu0  ;;  %v4728_v61 = vpop.f32.mrf.mxu1 }
 0x509   : > { %v5054_v9 = vadd.f32 %v5022_v12, %v4958_v36  ;;  %v4729_v34 = vadd.f32 %v4728_v61, %v4617_v44  ;;  %v4831_v45 = vpop.f32.mrf.mxu2  ;;  %v4622_v42 = vadd.f32 %v4621_v17, %v8098_v40  ;;  %v5002_v17 = vld [vmem:[%s7750_s6 + $0xf8] sm:$0xff] }
 0x50b   : > { %5086 = vst [vmem:[%s7778_s8 + $0x98] sm:$0xff] %v5054_v9  ;;  %v4832_v18 = vadd.f32 %v4831_v45, %v4729_v34  ;;  %v5034_v45 = vmul.f32 0.1, %v5002_v17 }
 0x50d   : > { %v4917_v59 = vadd.f32 %v4916_v27, %v4832_v18 }
 0x50f   : > { %v4960_v51 = vmul.f32 0.5, %v4917_v59  ;;  %v4920_v58 = vpop.f32.mrf.mxu3 }
 0x510   : > { %v4626_v35 = vpop.f32.mrf.mxu0  ;;  %v4734_v22 = vpop.f32.mrf.mxu1 }
 0x511   : > { %v5056_v60 = vadd.f32 %v5024_v5, %v4960_v51  ;;  %v4735_v2 = vadd.f32 %v4734_v22, %v4622_v42  ;;  %v4835_v7 = vpop.f32.mrf.mxu2  ;;  %v4627_v4 = vadd.f32 %v4626_v35, %v8105_v32 }
 0x513   : > { %5088 = vst [vmem:[%s7778_s8 + $0xa8] sm:$0xff] %v5056_v60  ;;  %v4836_v43 = vadd.f32 %v4835_v7, %v4735_v2 }
 0x515   : > { %v4921_v13 = vadd.f32 %v4920_v58, %v4836_v43 }
 0x517   : > { %v4962_v23 = vmul.f32 0.5, %v4921_v13  ;;  %v4924_v31 = vpop.f32.mrf.mxu3 }
 0x518   : > { %v4631_v29 = vpop.f32.mrf.mxu0  ;;  %v4740_v40 = vpop.f32.mrf.mxu1 }
 0x519   : > { %v5058_v26 = vadd.f32 %v5026_v19, %v4962_v23  ;;  %v4741_v53 = vadd.f32 %v4740_v40, %v4627_v4  ;;  %v4839_v55 = vpop.f32.mrf.mxu2  ;;  %v4632_v8 = vadd.f32 %v4631_v29, %v8112_v52 }
 0x51b   : > { %5090 = vst [vmem:[%s7778_s8 + $0xb8] sm:$0xff] %v5058_v26  ;;  %v4840_v21 = vadd.f32 %v4839_v55, %v4741_v53 }
 0x51d   : > { %v4925_v48 = vadd.f32 %v4924_v31, %v4840_v21 }
 0x51f   : > { %v4964_v63 = vmul.f32 0.5, %v4925_v48  ;;  %v4928_v37 = vpop.f32.mrf.mxu3 }
 0x520   : > { %v4746_v49 = vpop.f32.mrf.mxu1  ;;  %v4636_v6 = vpop.f32.mrf.mxu0 }
 0x521   : > { %v5060_v32 = vadd.f32 %v5028_v14, %v4964_v63  ;;  %v4747_v20 = vadd.f32 %v4746_v49, %v4632_v8  ;;  %v4843_v62 = vpop.f32.mrf.mxu2  ;;  %v4637_v3 = vadd.f32 %v4636_v6, %v8119_v39 }
 0x523   : > { %5092 = vst [vmem:[%s7778_s8 + $0xc8] sm:$0xff] %v5060_v32  ;;  %v4844_v54 = vadd.f32 %v4843_v62, %v4747_v20 }
 0x525   : > { %v4929_v1 = vadd.f32 %v4928_v37, %v4844_v54 }
 0x527   : > { %v4966_v41 = vmul.f32 0.5, %v4929_v1  ;;  %v4932_v33 = vpop.f32.mrf.mxu3 }
 0x528   : > { %v4752_v10 = vpop.f32.mrf.mxu1  ;;  %v4641_v46 = vpop.f32.mrf.mxu0 }
 0x529   : > { %v5062_v52 = vadd.f32 %v5030_v24, %v4966_v41  ;;  %v4753_v28 = vadd.f32 %v4752_v10, %v4637_v3  ;;  %v4847_v57 = vpop.f32.mrf.mxu2  ;;  %v4642_v30 = vadd.f32 %v4641_v46, %v8122_v0 }
 0x52b   : > { %5094 = vst [vmem:[%s7778_s8 + $0xd8] sm:$0xff] %v5062_v52  ;;  %v4848_v16 = vadd.f32 %v4847_v57, %v4753_v28 }
 0x52d   : > { %v4933_v11 = vadd.f32 %v4932_v33, %v4848_v16 }
 0x52f   : > { %v4968_v12 = vmul.f32 0.5, %v4933_v11  ;;  %v4936_v9 = vpop.f32.mrf.mxu3 }
 0x530   : > { %v4758_v39 = vpop.f32.mrf.mxu1 }
 0x531   : > { %v5064_v44 = vadd.f32 %v5032_v50, %v4968_v12  ;;  %v4759_v36 = vadd.f32 %v4758_v39, %v4642_v30  ;;  %v4851_v27 = vpop.f32.mrf.mxu2 }
 0x533   : > { %5096 = vst [vmem:[%s7778_s8 + $0xe8] sm:$0xff] %v5064_v44  ;;  %v4852_v61 = vadd.f32 %v4851_v27, %v4759_v36 }
 0x535   : > { %v4937_v34 = vadd.f32 %v4936_v9, %v4852_v61 }
 0x537   : > { %v4970_v0 = vmul.f32 0.5, %v4937_v34 }
 0x539   : > { %v5066_v15 = vadd.f32 %v5034_v45, %v4970_v0 }
 0x53b   : > { %5098 = vst [vmem:[%s7778_s8 + $0xf8] sm:$0xff] %v5066_v15 }
 0x53c   : > { %5370 = shalt.err (!%p5367_p9)
}
 0x53d   : > { %s5430_s10 = smov 256   ;;  %s5431_s7 = smov 16  }
 0x53e   : > { %5247 = dma.vmem_to_hbm [thread:$0]  (%p5497_p4), %s5116_s14, 4096, %s5118_s21, %s5100_s18, %s5430_s10, %s5430_s10, %s5431_s7  }
 0x53f PF: > { %p5259_p10 = scmp.ge.s32.totalorder %s5425_s20, 2  ;;  %s5132_s8 = sand.u32 1, %s5405_s15  }
 0x540   : > { %s5133_s9 = scalar_lea.sflag [#allocation5], %s5132_s8 }
 0x541   : > { %p5254_p11 = pnand %p5259_p10, %p5504_p8 }
 0x543   : > { %p5255_p12 = pneg %p5254_p11 }
 0x545   : > { %5400 = dma.done.wait (%p5255_p12), %s5133_s9, 4096  }
 0x546   : > { %5402 = vsyncadd (%p5255_p12), %s5133_s9, 4294963200  ;;  %s18_s20 = sadd.s32 1, %s5425_s20   ;;  %s8870_s15 = smov %s5409_s16 }
 0x547   : > { %p15_p13 = scmp.ge.s32.totalorder %s18_s20, 4   ;;  %s8871_s16 = smov %s5413_s17 }
 0x548   : > { %s8872_s17 = smov %s5510_s28  ;;  %s8873_s18 = smov %s5421_s19 }
 0x549   : > { %s8874_s19 = smov %s8876_s23  ;;  %17 = sbr.rel (!%p15_p13) target bundleno = 5 (0x5), region = 83 }
 0x54e   :  { %5139 = vsyncpa [#allocation4], 1 }
 0x54f   :  { %5141 = vsyncpa [#allocation4 + $0x1], 1 }
 0x550   :  { %5142 = vsyncpa [#allocation5], 1 }
 0x551   :  { %5144 = vsyncpa [#allocation5 + $0x1], 1 }

</bundles_post_ra>
